<compile_context>
chip_gen: v7x
topology: tpu7x:2x2x1
jax: 0.10.0
libtpu: 0.0.40
codegen_flags: <defaults>
</compile_context>

<pallas_src>
import functools
import math

import jax
import jax.numpy as jnp
from jax import lax
from jax.experimental import pallas as pl
from jax.experimental.pallas import tpu as pltpu

NEG_INF = -1e30


# ---------------------------------------------------------------------------
# Kernel 1: per-layer fused projection (q | skip | k | v), one pass per node.
# ---------------------------------------------------------------------------
def _proj_kernel(x_ref, w_ref, b_ref, q_ref, skip_ref, kv_ref, *, d_pad, f_in, use_mxu):
    b = b_ref[...]
    if use_mxu:
        # layer 2: bf16 x (inter-layer activation) @ bf16 weight slab, f32 accumulate.
        proj = jnp.dot(x_ref[...].astype(jnp.bfloat16), w_ref[...],
                       preferred_element_type=jnp.float32) + b
    else:
        # layer 1 (K = 2): skip the MXU, unrolled VPU broadcast-FMAs in exact f32.
        x = x_ref[...].astype(jnp.float32)
        w = w_ref[...]
        acc = x[:, 0:1] * w[0:1, :]
        for r in range(1, f_in):
            acc = acc + x[:, r:r + 1] * w[r:r + 1, :]
        proj = acc + b
    q_ref[...] = proj[:, :d_pad].astype(q_ref.dtype)
    skip_ref[...] = proj[:, d_pad:2 * d_pad].astype(skip_ref.dtype)
    kv_ref[...] = proj[:, 2 * d_pad:].astype(kv_ref.dtype)


def project_layer(x, w, b, *, d_pad, block_r=256):
    n_pad, f_in = x.shape
    assert n_pad % block_r == 0
    use_mxu = f_in >= 16
    kernel = functools.partial(_proj_kernel, d_pad=d_pad, f_in=f_in, use_mxu=use_mxu)
    return pl.pallas_call(
        kernel,
        out_shape=(
            jax.ShapeDtypeStruct((n_pad, d_pad), jnp.bfloat16),       # q   (feeds MXU)
            jax.ShapeDtypeStruct((n_pad, d_pad), jnp.float32),        # skip (added in f32)
            jax.ShapeDtypeStruct((n_pad, 2 * d_pad), jnp.bfloat16),   # k | v (feeds MXU)
        ),
        grid_spec=pltpu.PrefetchScalarGridSpec(
            num_scalar_prefetch=0,
            grid=(n_pad // block_r,),
            in_specs=[
                pl.BlockSpec((block_r, f_in), lambda i: (i, 0)),
                pl.BlockSpec((f_in, 4 * d_pad), lambda i: (0, 0)),
                pl.BlockSpec((1, 4 * d_pad), lambda i: (0, 0)),
            ],
            out_specs=[
                pl.BlockSpec((block_r, d_pad), lambda i: (i, 0)),
                pl.BlockSpec((block_r, d_pad), lambda i: (i, 0)),
                pl.BlockSpec((block_r, 2 * d_pad), lambda i: (i, 0)),
            ],
        ),
        compiler_params=pltpu.CompilerParams(
            dimension_semantics=("parallel",),
            vmem_limit_bytes=24 * 1024 * 1024,
        ),
    )(x, w, b)


# ---------------------------------------------------------------------------
# Kernel 2: flash-style TransformerConv attention with online softmax and
# block-sparse kv skipping driven by scalar prefetch.
# ---------------------------------------------------------------------------
def _attn_kernel(cnt_ref, ids_ref, q_ref, skip_ref, kv_ref, adj_ref, out_ref,
                 m_sc, l_sc, acc_sc, *, d_pad, d_actual, activation):
    del ids_ref  # consumed by the index_maps only
    qi = pl.program_id(0)
    ki = pl.program_id(1)
    nk = pl.num_programs(1)
    scale = jnp.float32(1.0 / math.sqrt(d_actual))

    @pl.when(ki == 0)
    def _init():
        m_sc[...] = jnp.full_like(m_sc, NEG_INF)
        l_sc[...] = jnp.zeros_like(l_sc)
        acc_sc[...] = jnp.zeros_like(acc_sc)

    # Only the first cnt_ref[qi] kv steps carry non-empty adjacency blocks; later
    # steps re-point the DMA at the last valid block (no new traffic) and skip compute.
    @pl.when(ki < cnt_ref[qi])
    def _compute():
        q = q_ref[...]                                   # bf16 [bq, d_pad]
        k = kv_ref[:, :d_pad]                            # bf16 [bkv, d_pad]
        v = kv_ref[:, d_pad:]                            # bf16 [bkv, d_pad]
        s = lax.dot_general(q, k, (((1,), (1,)), ((), ())),
                            preferred_element_type=jnp.float32) * scale
        mask = adj_ref[...] > 0                          # adj[i, j] = 1 iff edge j -> i
        s = jnp.where(mask, s, NEG_INF)
        m_prev = m_sc[...]
        m_new = jnp.maximum(m_prev, jnp.max(s, axis=-1, keepdims=True))
        alpha = jnp.exp(m_prev - m_new)
        # Fused mask + exp; select (not multiply) so dead lanes stay exactly 0.
        p = jnp.where(mask, jnp.exp(s - m_new), 0.0)
        l_sc[...] = alpha * l_sc[...] + jnp.sum(p, axis=-1, keepdims=True)
        acc_sc[...] = alpha * acc_sc[...] + jnp.dot(
            p.astype(jnp.bfloat16), v, preferred_element_type=jnp.float32)
        m_sc[...] = m_new

    @pl.when(ki == nk - 1)
    def _finalize():
        l = l_sc[...]
        denom = jnp.where(l > 0, l, 1.0)                 # no in-edges -> skip-only output
        out = acc_sc[...] * pl.reciprocal(denom, approx=True) + skip_ref[...]
        if activation == "relu":
            out = jnp.maximum(out, 0.0)
        elif activation == "log_softmax":
            lane = lax.broadcasted_iota(jnp.int32, out.shape, 1)
            valid = lane < d_actual                      # ignore padded class lanes
            h = jnp.where(valid, out, NEG_INF)
            hmax = jnp.max(h, axis=-1, keepdims=True)
            z = h - hmax
            lse = jnp.log(jnp.sum(jnp.exp(z), axis=-1, keepdims=True))
            out = z - lse
        out_ref[...] = out.astype(out_ref.dtype)


def attention_layer(counts, kv_ids, q, skip, kv, adj, *, d_pad, d_actual,
                    activation, out_dtype, block_q=256, block_kv=512):
    n_pad = q.shape[0]
    assert n_pad % block_q == 0 and n_pad % block_kv == 0
    nq = n_pad // block_q
    nkv = n_pad // block_kv

    kernel = functools.partial(_attn_kernel, d_pad=d_pad, d_actual=d_actual,
                               activation=activation)
    return pl.pallas_call(
        kernel,
        out_shape=jax.ShapeDtypeStruct((n_pad, d_pad), out_dtype),
        grid_spec=pltpu.PrefetchScalarGridSpec(
            num_scalar_prefetch=2,                       # counts, kv_ids (flat)
            grid=(nq, nkv),
            in_specs=[
                pl.BlockSpec((block_q, d_pad),
                             lambda qi, ki, cnt, ids: (qi, 0)),                     # q
                pl.BlockSpec((block_q, d_pad),
                             lambda qi, ki, cnt, ids: (qi, 0)),                     # skip
                pl.BlockSpec((block_kv, 2 * d_pad),
                             lambda qi, ki, cnt, ids: (ids[qi * nkv + ki], 0)),     # k|v
                pl.BlockSpec((block_q, block_kv),
                             lambda qi, ki, cnt, ids: (qi, ids[qi * nkv + ki])),    # adj
            ],
            out_specs=pl.BlockSpec((block_q, d_pad),
                                   lambda qi, ki, cnt, ids: (qi, 0)),
            scratch_shapes=[
                pltpu.VMEM((block_q, 1), jnp.float32),    # running max
                pltpu.VMEM((block_q, 1), jnp.float32),    # running denominator
                pltpu.VMEM((block_q, d_pad), jnp.float32),  # running weighted sum
            ],
        ),
        compiler_params=pltpu.CompilerParams(
            dimension_semantics=("parallel", "arbitrary"),
            vmem_limit_bytes=24 * 1024 * 1024,
        ),
    )(counts, kv_ids, q, skip, kv, adj)


# ---------------------------------------------------------------------------
# Full network
# ---------------------------------------------------------------------------
def transformer_net(x, edge_index, params, *, block_q=256, block_kv=512):
    """x: [N, 2] float32 node features; edge_index: [2, E] int32 (row 0=src j, row 1=dst i)."""
    w1, b1, w2, b2 = params
    assert block_kv % block_q == 0
    n = x.shape[0]
    n_pad = ((n + block_kv - 1) // block_kv) * block_kv
    x_pad = jnp.pad(x.astype(jnp.float32), ((0, n_pad - n), (0, 0)))

    # Dense 0/1 mask in int8: adj[i, j] = 1 iff edge j -> i.  Padded rows/cols stay 0,
    # so padded nodes get skip-only output and padded keys are excluded from softmax.
    # (Duplicate edges collapse to one; the demo graph is duplicate-free.)
    adj = (jnp.zeros((n_pad, n_pad), jnp.int32)
           .at[edge_index[1], edge_index[0]].set(1)
           .astype(jnp.int8))

    # Block-occupancy table for block-sparse kv skipping (scalar-prefetched to SMEM).
    nq, nkv = n_pad // block_q, n_pad // block_kv
    occ = jnp.any(adj.reshape(nq, block_q, nkv, block_kv) != 0, axis=(1, 3))   # [nq, nkv]
    counts = jnp.sum(occ, axis=1).astype(jnp.int32)                            # [nq]
    order = jnp.argsort(jnp.where(occ, 0, 1), axis=1).astype(jnp.int32)        # occupied first
    last = jnp.take_along_axis(order, jnp.maximum(counts - 1, 0)[:, None], axis=1)
    col = jnp.arange(nkv, dtype=jnp.int32)[None, :]
    kv_ids = jnp.where(col < counts[:, None], order, last).reshape(-1).astype(jnp.int32)

    # layer 1: 2 -> 256, relu; activations carried bf16 into layer 2.
    q1, skip1, kv1 = project_layer(x_pad, w1, b1, d_pad=256, block_r=block_q)
    h = attention_layer(counts, kv_ids, q1, skip1, kv1, adj,
                        d_pad=256, d_actual=256, activation="relu",
                        out_dtype=jnp.bfloat16, block_q=block_q, block_kv=block_kv)
    # F.dropout(training=False) and in-conv attention dropout are identity in eval mode.

    # layer 2: 256 -> 2 (lane-padded to 128), log_softmax.
    q2, skip2, kv2 = project_layer(h, w2, b2, d_pad=128, block_r=block_q)
    out = attention_layer(counts, kv_ids, q2, skip2, kv2, adj,
                          d_pad=128, d_actual=2, activation="log_softmax",
                          out_dtype=jnp.float32, block_q=block_q, block_kv=block_kv)
    return out[:n, :2]


# ---------------------------------------------------------------------------
# Parameters (PyTorch nn.Linear-style init) packed as fused [F, 4*d_pad] slabs
# with column order (q | skip | k | v); segments zero-padded to 128-lane multiples.
# ---------------------------------------------------------------------------
def _init_fused_layer(key, fan_in, d, d_pad, w_dtype):
    bound = 1.0 / math.sqrt(fan_in)
    w = jnp.zeros((fan_in, 4 * d_pad), jnp.float32)
    b = jnp.zeros((1, 4 * d_pad), jnp.float32)
    for i, kk in enumerate(jax.random.split(key, 4)):
        kw, kb = jax.random.split(kk)
        w = w.at[:, i * d_pad:i * d_pad + d].set(
            jax.random.uniform(kw, (fan_in, d), jnp.float32, -bound, bound))
        b = b.at[:, i * d_pad:i * d_pad + d].set(
            jax.random.uniform(kb, (1, d), jnp.float32, -bound, bound))
    return w.astype(w_dtype), b


def init_params(key):
    k1, k2 = jax.random.split(key)
    # conv1: 2 -> 256.  K=2 projection runs on the VPU in f32, so keep w1 in f32.
    w1, b1 = _init_fused_layer(k1, 2, 256, 256, jnp.float32)
    # conv2: 256 -> 2 (lane-padded to 128).  Pre-cast the slab to bf16 on the host;
    # the in-kernel MXU path is bf16 anyway.
    w2, b2 = _init_fused_layer(k2, 256, 2, 128, jnp.bfloat16)
    return (w1, b1, w2, b2)


# ---------------------------------------------------------------------------
# Pure-JAX reference mirroring the kernel's storage/MXU precision choices.
# ---------------------------------------------------------------------------
def _bf16_round(a):
    return a.astype(jnp.bfloat16).astype(jnp.float32)


def _reference_net(x, edge_index, params):
    w1, b1, w2, b2 = params
    n = x.shape[0]
    adj = jnp.zeros((n, n), jnp.float32).at[edge_index[1], edge_index[0]].set(1.0)
    mask = adj > 0
    hi = lax.Precision.HIGHEST

    def conv(q, k, v, skip, d):
        s = jnp.dot(q, k.T, precision=hi) / math.sqrt(d)
        s = jnp.where(mask, s, NEG_INF)
        m = jnp.max(s, axis=-1, keepdims=True)
        p = jnp.where(mask, jnp.exp(s - m), 0.0)
        denom = jnp.sum(p, axis=-1, keepdims=True)
        denom = jnp.where(denom > 0, denom, 1.0)
        agg = jnp.dot(_bf16_round(p), v, precision=hi) / denom
        return agg + skip

    # layer 1: exact f32 K=2 projection; q/k/v stored bf16, skip kept f32.
    proj1 = x[:, 0:1] * w1[0:1, :] + x[:, 1:2] * w1[1:2, :] + b1
    q1, skip1 = _bf16_round(proj1[:, 0:256]), proj1[:, 256:512]
    k1, v1 = _bf16_round(proj1[:, 512:768]), _bf16_round(proj1[:, 768:1024])
    h = jnp.maximum(conv(q1, k1, v1, skip1, 256), 0.0)
    h = _bf16_round(h)                                    # inter-layer activation is bf16

    # layer 2: bf16 weights, bf16 MXU projection with f32 accumulation.
    proj2 = jnp.dot(h, w2.astype(jnp.float32), precision=hi) + b2
    q2, skip2 = _bf16_round(proj2[:, 0:2]), proj2[:, 128:130]
    k2, v2 = _bf16_round(proj2[:, 256:258]), _bf16_round(proj2[:, 384:386])
    out = conv(q2, k2, v2, skip2, 2)
    return jax.nn.log_softmax(out, axis=1)


if __name__ == "__main__":
    key = jax.random.PRNGKey(0)
    k_x, k_p = jax.random.split(key)

    N = 200                                   # pads to 512 -> attention grid (2, 1)
    x = jax.random.normal(k_x, (N, 2), jnp.float32)

    # Deterministic duplicate-free ring(+1,+2) edge list; PyG convention [src; dst].
    idx = jnp.arange(N, dtype=jnp.int32)
    src = jnp.concatenate([idx, idx])
    dst = jnp.concatenate([(idx + 1) % N, (idx + 2) % N]).astype(jnp.int32)
    edge_index = jnp.stack([src, dst], axis=0)            # [2, 400]

    params = init_params(k_p)

    out = transformer_net(x, edge_index, params)
    out = jax.block_until_ready(out)

    assert out.shape == (N, 2)
    assert bool(jnp.all(jnp.isfinite(out)))
    # log_softmax rows should sum (in prob space) to ~1
    assert bool(jnp.allclose(jnp.sum(jnp.exp(out), axis=1), 1.0, atol=1e-3))
    # check against the pure-JAX dense reference
    ref = _reference_net(x, edge_index, params)
    max_err = float(jnp.max(jnp.abs(out - ref)))
    assert max_err < 5e-2, f"max |kernel - reference| = {max_err}"
    print("KERNEL_OK")
</pallas_src>

<mosaic_0001>
module attributes {stable_mosaic.version = 11 : i64} {
  func.func @_proj_kernel(%arg0: i32, %arg1: memref<256x2xf32, #tpu.memory_space<vmem>>, %arg2: memref<2x1024xf32, #tpu.memory_space<vmem>>, %arg3: memref<1x1024xf32, #tpu.memory_space<vmem>>, %arg4: memref<256x256xbf16, #tpu.memory_space<vmem>>, %arg5: memref<256x256xf32, #tpu.memory_space<vmem>>, %arg6: memref<256x512xbf16, #tpu.memory_space<vmem>>) attributes {dimension_semantics = [#tpu.dimension_semantics<parallel>], iteration_bounds = array<i64: 2>, scalar_prefetch = 0 : i64, scratch_operands = 0 : i64, tpu.core_type = #tpu.core_type<tc>, window_params = [{transform_indices = @transform_0, window_bounds = array<i64: 256, 2>}, {pipeline_mode = #tpu.pipeline_mode<synchronous>, transform_indices = @transform_1, window_bounds = array<i64: 2, 1024>}, {pipeline_mode = #tpu.pipeline_mode<synchronous>, transform_indices = @transform_2, window_bounds = array<i64: 1, 1024>}, {transform_indices = @transform_3, window_bounds = array<i64: 256, 256>}, {transform_indices = @transform_4, window_bounds = array<i64: 256, 256>}, {transform_indices = @transform_5, window_bounds = array<i64: 256, 512>}]} {
    %c0 = arith.constant 0 : index
    %c0_0 = arith.constant 0 : index
    %0 = vector.load %arg3[%c0, %c0_0] : memref<1x1024xf32, #tpu.memory_space<vmem>>, vector<1x1024xf32>
    %c0_1 = arith.constant 0 : index
    %c0_2 = arith.constant 0 : index
    %1 = vector.load %arg1[%c0_1, %c0_2] : memref<256x2xf32, #tpu.memory_space<vmem>>, vector<256x2xf32>
    %c0_3 = arith.constant 0 : index
    %c0_4 = arith.constant 0 : index
    %2 = vector.load %arg2[%c0_3, %c0_4] : memref<2x1024xf32, #tpu.memory_space<vmem>>, vector<2x1024xf32>
    %3 = vector.extract_strided_slice %1 {offsets = [0, 0], sizes = [256, 1], strides = [1, 1]} : vector<256x2xf32> to vector<256x1xf32>
    %4 = vector.extract_strided_slice %2 {offsets = [0, 0], sizes = [1, 1024], strides = [1, 1]} : vector<2x1024xf32> to vector<1x1024xf32>
    %5 = vector.broadcast %3 : vector<256x1xf32> to vector<256x1024xf32>
    %6 = vector.broadcast %4 : vector<1x1024xf32> to vector<256x1024xf32>
    %7 = arith.mulf %5, %6 : vector<256x1024xf32>
    %8 = vector.extract_strided_slice %1 {offsets = [0, 1], sizes = [256, 1], strides = [1, 1]} : vector<256x2xf32> to vector<256x1xf32>
    %9 = vector.extract_strided_slice %2 {offsets = [1, 0], sizes = [1, 1024], strides = [1, 1]} : vector<2x1024xf32> to vector<1x1024xf32>
    %10 = vector.broadcast %8 : vector<256x1xf32> to vector<256x1024xf32>
    %11 = vector.broadcast %9 : vector<1x1024xf32> to vector<256x1024xf32>
    %12 = arith.mulf %10, %11 : vector<256x1024xf32>
    %13 = arith.addf %7, %12 : vector<256x1024xf32>
    %14 = vector.broadcast %0 : vector<1x1024xf32> to vector<256x1024xf32>
    %15 = arith.addf %13, %14 : vector<256x1024xf32>
    %16 = vector.extract_strided_slice %15 {offsets = [0, 0], sizes = [256, 256], strides = [1, 1]} : vector<256x1024xf32> to vector<256x256xf32>
    %17 = arith.truncf %16 : vector<256x256xf32> to vector<256x256xbf16>
    %c0_5 = arith.constant 0 : index
    %c0_6 = arith.constant 0 : index
    %18 = vector.load %arg4[%c0_5, %c0_6] : memref<256x256xbf16, #tpu.memory_space<vmem>>, vector<256x256xbf16>
    tpu.vector_store %arg4[%c0_5, %c0_6], %17 {strides = array<i32>} : memref<256x256xbf16, #tpu.memory_space<vmem>>, vector<256x256xbf16>,
    %19 = vector.extract_strided_slice %15 {offsets = [0, 256], sizes = [256, 256], strides = [1, 1]} : vector<256x1024xf32> to vector<256x256xf32>
    %c0_7 = arith.constant 0 : index
    %c0_8 = arith.constant 0 : index
    %20 = vector.load %arg5[%c0_7, %c0_8] : memref<256x256xf32, #tpu.memory_space<vmem>>, vector<256x256xf32>
    tpu.vector_store %arg5[%c0_7, %c0_8], %19 {strides = array<i32>} : memref<256x256xf32, #tpu.memory_space<vmem>>, vector<256x256xf32>,
    %21 = vector.extract_strided_slice %15 {offsets = [0, 512], sizes = [256, 512], strides = [1, 1]} : vector<256x1024xf32> to vector<256x512xf32>
    %22 = arith.truncf %21 : vector<256x512xf32> to vector<256x512xbf16>
    %c0_9 = arith.constant 0 : index
    %c0_10 = arith.constant 0 : index
    %23 = vector.load %arg6[%c0_9, %c0_10] : memref<256x512xbf16, #tpu.memory_space<vmem>>, vector<256x512xbf16>
    tpu.vector_store %arg6[%c0_9, %c0_10], %22 {strides = array<i32>} : memref<256x512xbf16, #tpu.memory_space<vmem>>, vector<256x512xbf16>,
    return
  }
  func.func @transform_0(%arg0: i32) -> (i32, i32) {
    %c0_i32 = arith.constant 0 : i32
    %c0_i32_0 = arith.constant 0 : i32
    return %arg0, %c0_i32 : i32, i32
  }
  func.func @transform_1(%arg0: i32) -> (i32, i32) {
    %c0_i32 = arith.constant 0 : i32
    %c0_i32_0 = arith.constant 0 : i32
    %c0_i32_1 = arith.constant 0 : i32
    return %c0_i32, %c0_i32_0 : i32, i32
  }
  func.func @transform_2(%arg0: i32) -> (i32, i32) {
    %c0_i32 = arith.constant 0 : i32
    %c0_i32_0 = arith.constant 0 : i32
    %c0_i32_1 = arith.constant 0 : i32
    return %c0_i32, %c0_i32_0 : i32, i32
  }
  func.func @transform_3(%arg0: i32) -> (i32, i32) {
    %c0_i32 = arith.constant 0 : i32
    %c0_i32_0 = arith.constant 0 : i32
    return %arg0, %c0_i32 : i32, i32
  }
  func.func @transform_4(%arg0: i32) -> (i32, i32) {
    %c0_i32 = arith.constant 0 : i32
    %c0_i32_0 = arith.constant 0 : i32
    return %arg0, %c0_i32 : i32, i32
  }
  func.func @transform_5(%arg0: i32) -> (i32, i32) {
    %c0_i32 = arith.constant 0 : i32
    %c0_i32_0 = arith.constant 0 : i32
    return %arg0, %c0_i32 : i32, i32
  }
}

</mosaic_0001>

<bundles_post_ra>
// kernel: tpu_custom_call.1
= control target key start
LH: loop header
LB: loop body
LE: loop exit
PB: predicated region body
PF: predicated region fallthrough
CT: control target
= control target key end

     0   :  { %s5119_s0 = inlined_call_operand.vmem [shape: f32[512,2], index: 0, kind: input, shape index: {}]   ;;  %s5120_s1 = inlined_call_operand.vmem [shape: f32[2,1024], index: 1, kind: input, shape index: {}]   ;;  %s5121_s2 = inlined_call_operand.vmem [shape: f32[1,1024], index: 2, kind: input, shape index: {}]   ;;  %s5122_s3 = inlined_call_operand.hbm [shape: bf16[512,256], index: 3, kind: output, shape index: {0}]   ;;  %s5123_s4 = inlined_call_operand.hbm [shape: f32[512,256], index: 4, kind: output, shape index: {1}]   ;;  %s5124_s5 = inlined_call_operand.hbm [shape: bf16[512,512], index: 5, kind: output, shape index: {2}]  }
   0x1   :  { %5144 = sst [smem:[#allocation229_spill]] %s5119_s0 }
   0x2   :  { %11 = vsyncpa [#allocation3], 0 }
   0x3   :  { %13 = vsyncpa [#allocation3 + $0x1], 0 }
   0x4   :  { %14 = vsyncpa [#allocation5], 0 }
   0x5   :  { %16 = vsyncpa [#allocation5 + $0x1], 0  ;;  %s3141_s18 = smov 0   ;;  %s3143_s19 = smov 0  }
   0x6   :  { %s3145_s20 = smov 0   ;;  %s3147_s21 = smov 0  }
   0x7 LB: > { %s3162_s22 = sadd.s32 4294967295, %s3100_s21   ;;  %s5143_s23 = sadd.s32 4294967294, %s3100_s21   ;;  %s3100_s21 = sphi %s3147_s21, %s5593_s21   ;;  %s3096_s20 = sphi %s3145_s20, %s5592_s20   ;;  %s3092_s19 = sphi %s3143_s19, %s5591_s19   ;;  %s3088_s18 = sphi %s3141_s18, %s5590_s18  }
   0x8   : > { %s3166_s24 = sadd.s32 1, %s3100_s21   ;;  %s97_s25 = sadd.s32 1, %s3096_s20 }
   0x9   : > { %s94_s26 = ssub.s32 %s3100_s21, %s3166_s24  ;;  %p107_p0 = scmp.ne.s32.totalorder %s3096_s20, %s3092_s19 }
   0xa   : > { %p95_p1 = scmp.eq.s32.totalorder %s94_s26, 0  ;;  %p108_p2 = scmp.eq.s32.totalorder %s3162_s22, 1 }
   0xb   : > { %p113_p3 = scmp.ne.s32.totalorder %s3092_s19, %s3088_s18  ;;  %p114_p4 = scmp.eq.s32.totalorder %s5143_s23, 1 }
   0xc   : > { %s3179_s27 = scalar_select %p95_p1, %s3096_s20, %s97_s25  }
   0xd   : > { %p3181_p5 = por %p108_p2, %p107_p0  ;;  %p3185_p6 = por %p114_p4, %p113_p3 }
   0xe   : > { %p2701_p7 = scmp.ge.s32.totalorder %s3100_s21, 1  ;;  %p199_p8 = scmp.lt.s32.totalorder %s3100_s21, 3 }
  0x10   : > { %p200_p9 = pnand %p2701_p7, %p199_p8 }
  0x12   : > { %203 = sbr.rel (%p200_p9) target bundleno = 568 (0x238), region = 32 }
  0x19   : > { %s2705_s30 = sshll.u32 %s3162_s22, 5  ;;  %v3102_v0 = vmov 0   ;;  %s5147_s0 = sld [smem:[#allocation229_spill]]  ;;  %v3103_v33 = vmov 1   ;;  %v443_v34 = vlaneseq  ;;  %v279_v37 = vld [vmem:[%s5120_s1] sm:$0xff]  ;;  %v280_v41 = vld [vmem:[%s5120_s1 + $0x8] sm:$0xff] }
  0x1a   : > { %2975 = vset.pattern.permute.xlu1 %v3102_v0  ;;  %2974 = vset.pattern.permute.xlu0 %v3102_v0  ;;  %p238_p10 = scmp.lt.s32.totalorder %s2705_s30, 63  ;;  %v246_v58 = vld [vmem:[%s5121_s2] sm:$0xff]  ;;  %s4003_s16 = sand.u32 1, %s3092_s19  }
  0x1b   : > { %v444_v35 = vshrl.u32 %v443_v34, 7  ;;  %s2703_s17 = sshll.u32 %s4003_s16, 9  ;;  %s2702_s25 = sshll.u32 %s4003_s16, 8 }
  0x1c   : > { %s5595_s30 = smov (!%p238_p10, %s2705_s30), 63  ;;  %s4057_s26 = scalar_lea.vmem [#allocation4], %s2703_s17 }
  0x1d   : > { %s2706_s6 = sshll.u32 %s5595_s30, 3  ;;  %v445_v36 = vsub.s32 0, %v444_v35  ;;  %v449_v38 = vsub.s32 2, %v444_v35  ;;  %v453_v39 = vsub.s32 4, %v444_v35  ;;  %v457_v40 = vsub.s32 6, %v444_v35  ;;  %s4066_s30 = scalar_lea.vmem [#allocation2], %s2702_s25 }
  0x1e   : > { %v901_v45 = vsub.s32 1, %v444_v35  ;;  %v905_v46 = vsub.s32 3, %v444_v35  ;;  %v909_v47 = vsub.s32 5, %v444_v35  ;;  %v913_v48 = vsub.s32 7, %v444_v35  ;;  %s2916_s8 = sshll.u32 %s3162_s22, 13  ;;  %s2914_s13 = sshll.u32 %s3162_s22, 12 }
  0x1f   : > { %s3195_s9 = scalar_lea.vmem %s5147_s0, %s2706_s6  ;;  %v446_v42 = vrot.slane %v279_v37, %v445_v36  ;;  %v450_v43 = vrot.slane %v279_v37, %v449_v38  ;;  %v454_v44 = vrot.slane %v279_v37, %v453_v39  ;;  %v458_v49 = vrot.slane %v279_v37, %v457_v40  ;;  %s4075_s6 = scalar_lea.vmem [#allocation6], %s2703_s17 }
  0x20   : > { %v3198_v1 = vld [vmem:[%s3195_s9 + $0x10] sm:$0xff]  ;;  %v3201_v2 = vld [vmem:[%s3195_s9] sm:$0xff]  ;;  %v3206_v3 = vld [vmem:[%s3195_s9 + $0x18] sm:$0xff]  ;;  %v462_v50 = vrot.slane %v280_v41, %v445_v36  ;;  %v466_v51 = vrot.slane %v280_v41, %v449_v38  ;;  %v470_v52 = vrot.slane %v280_v41, %v453_v39  ;;  %v474_v53 = vrot.slane %v280_v41, %v457_v40  ;;  %s4979_s12 = scalar_lea.hbm %s5123_s4, %s2916_s8  ;;  %s2541_s14 = sshll.u32 %s4066_s30, 4  ;;  %s5001_s14 = int_to_ptr.vmem [resolvable:$true] %s2541_s14 }
  0x21   : > { %293 = vperm.xlu1 %2975, %v3198_v1   ;;  %283 = vperm.xlu0 %2974, %v3201_v2   ;;  %v248_v4 = vld [vmem:[%s3195_s9 + $0x8] sm:$0xff]  ;;  %v251_v6 = vld [vmem:[%s3195_s9 + $0x20] sm:$0xff]  ;;  %v254_v7 = vld [vmem:[%s3195_s9 + $0x38] sm:$0xff]  ;;  %v3251_v54 = vrot.slane %v446_v42, %v445_v36  ;;  %v3253_v55 = vrot.slane %v450_v43, %v445_v36  ;;  %v3255_v56 = vrot.slane %v454_v44, %v445_v36  ;;  %s2575_s15 = sshll.u32 %s4075_s6, 4  ;;  %s4999_s10 = scalar_lea.hbm %s5122_s3, %s2914_s13  ;;  %s5015_s15 = int_to_ptr.vmem [resolvable:$true] %s2575_s15 }
  0x22   : > { %v3211_v5 = vld [vmem:[%s3195_s9 + $0x28] sm:$0xff]  ;;  %v253_v8 = vld [vmem:[%s3195_s9 + $0x30] sm:$0xff]  ;;  %v255_v10 = vld [vmem:[%s3195_s9 + $0x40] sm:$0xff]  ;;  %v902_v57 = vrot.slane %v279_v37, %v901_v45  ;;  %v906_v59 = vrot.slane %v279_v37, %v905_v46  ;;  %v910_v60 = vrot.slane %v279_v37, %v909_v47  ;;  %v914_v61 = vrot.slane %v279_v37, %v913_v48  ;;  %s5013_s7 = scalar_lea.hbm %s5124_s5, %s2916_s8  ;;  %s5588_s13 = sand.u32 1, %s3162_s22  }
  0x23   : > { %v256_v9 = vld [vmem:[%s3195_s9 + $0x48] sm:$0xff]  ;;  %v258_v11 = vld [vmem:[%s3195_s9 + $0x58] sm:$0xff]  ;;  %v257_v12 = vld [vmem:[%s3195_s9 + $0x50] sm:$0xff]  ;;  %5148 = vst [vmem:[#allocation9_spill] sm:$0xff] %v3251_v54  ;;  %v918_v62 = vrot.slane %v280_v41, %v901_v45  ;;  %v3260_v63 = vrot.slane %v458_v49, %v445_v36  ;;  %s5022_s17 = scalar_lea.sflag [#allocation5], %s5588_s13 }
  0x24   : > { %v260_v13 = vld [vmem:[%s3195_s9 + $0x68] sm:$0xff]  ;;  %v259_v14 = vld [vmem:[%s3195_s9 + $0x60] sm:$0xff]  ;;  %v262_v15 = vld [vmem:[%s3195_s9 + $0x78] sm:$0xff]  ;;  %5149 = vst [vmem:[#allocation10_spill] sm:$0xff] %v3253_v55 }
  0x25   : > { %298 = vperm.xlu1 %2975, %v3206_v3   ;;  %288 = vperm.xlu0 %2974, %v248_v4   ;;  %v261_v16 = vld [vmem:[%s3195_s9 + $0x70] sm:$0xff]  ;;  %v264_v17 = vld [vmem:[%s3195_s9 + $0x88] sm:$0xff]  ;;  %v263_v18 = vld [vmem:[%s3195_s9 + $0x80] sm:$0xff]  ;;  %5150 = vst [vmem:[#allocation11_spill] sm:$0xff] %v3255_v56 }
  0x26   : > { %v266_v19 = vld [vmem:[%s3195_s9 + $0x98] sm:$0xff]  ;;  %v265_v20 = vld [vmem:[%s3195_s9 + $0x90] sm:$0xff]  ;;  %v268_v21 = vld [vmem:[%s3195_s9 + $0xa8] sm:$0xff]  ;;  %5151 = vst [vmem:[#allocation12_spill] sm:$0xff] %v3260_v63 }
  0x27   : > { %v267_v22 = vld [vmem:[%s3195_s9 + $0xa0] sm:$0xff]  ;;  %v270_v23 = vld [vmem:[%s3195_s9 + $0xb8] sm:$0xff]  ;;  %v269_v24 = vld [vmem:[%s3195_s9 + $0xb0] sm:$0xff] }
  0x28   : > { %v272_v25 = vld [vmem:[%s3195_s9 + $0xc8] sm:$0xff]  ;;  %v271_v26 = vld [vmem:[%s3195_s9 + $0xc0] sm:$0xff]  ;;  %v274_v27 = vld [vmem:[%s3195_s9 + $0xd8] sm:$0xff] }
  0x29   : > { %308 = vperm.xlu1 %2975, %v3211_v5   ;;  %303 = vperm.xlu0 %2974, %v251_v6   ;;  %v273_v28 = vld [vmem:[%s3195_s9 + $0xd0] sm:$0xff]  ;;  %v276_v29 = vld [vmem:[%s3195_s9 + $0xe8] sm:$0xff]  ;;  %v275_v30 = vld [vmem:[%s3195_s9 + $0xe0] sm:$0xff] }
  0x2a   : > { %v278_v31 = vld [vmem:[%s3195_s9 + $0xf8] sm:$0xff]  ;;  %v277_v32 = vld [vmem:[%s3195_s9 + $0xf0] sm:$0xff]  ;;  %s2558_s9 = sshll.u32 %s4057_s26, 4  ;;  %s4984_s9 = int_to_ptr.vmem [resolvable:$true] %s2558_s9 }
  0x2b   : > { %s2978_s25 = scalar_lea.vmem %s4984_s9, 8192 }
  0x2c   : > { %p2979_p11 = scmp.ne.s32.totalorder %s4984_s9, %s2978_s25 }
  0x2d   : > { %318 = vperm.xlu1 %2975, %v254_v7   ;;  %313 = vperm.xlu0 %2974, %v253_v8  }
  0x2e   : > { %p2980_p12 = pnand %p2979_p11, %p3181_p5 }
  0x30   : > { %p2981_p13 = pneg %p2980_p12 }
  0x31   : > { %328 = vperm.xlu1 %2975, %v256_v9   ;;  %323 = vperm.xlu0 %2974, %v255_v10  }
  0x35   : > { %338 = vperm.xlu1 %2975, %v258_v11   ;;  %333 = vperm.xlu0 %2974, %v257_v12  }
  0x39   : > { %348 = vperm.xlu1 %2975, %v260_v13   ;;  %343 = vperm.xlu0 %2974, %v259_v14  }
  0x3d   : > { %358 = vperm.xlu1 %2975, %v262_v15   ;;  %353 = vperm.xlu0 %2974, %v261_v16  }
  0x41   : > { %368 = vperm.xlu1 %2975, %v264_v17   ;;  %363 = vperm.xlu0 %2974, %v263_v18  }
  0x45   : > { %378 = vperm.xlu1 %2975, %v266_v19   ;;  %373 = vperm.xlu0 %2974, %v265_v20  }
  0x49   : > { %388 = vperm.xlu1 %2975, %v268_v21   ;;  %383 = vperm.xlu0 %2974, %v267_v22  }
  0x4d   : > { %398 = vperm.xlu1 %2975, %v270_v23   ;;  %393 = vperm.xlu0 %2974, %v269_v24  }
  0x51   : > { %408 = vperm.xlu1 %2975, %v272_v25   ;;  %403 = vperm.xlu0 %2974, %v271_v26  }
  0x55   : > { %418 = vperm.xlu1 %2975, %v274_v27   ;;  %413 = vperm.xlu0 %2974, %v273_v28  }
  0x59   : > { %428 = vperm.xlu1 %2975, %v276_v29   ;;  %423 = vperm.xlu0 %2974, %v275_v30  }
  0x5d   : > { %438 = vperm.xlu1 %2975, %v278_v31   ;;  %433 = vperm.xlu0 %2974, %v277_v32  }
  0x61   : > { %2977 = vset.pattern.permute.xlu1 %v3103_v33  ;;  %2976 = vset.pattern.permute.xlu0 %v3103_v33 }
  0x62   : > { %776 = vperm.xlu1 %2977, %v248_v4   ;;  %772 = vperm.xlu0 %2976, %v3201_v2   ;;  %v922_v2 = vrot.slane %v280_v41, %v905_v46  ;;  %v930_v4 = vrot.slane %v280_v41, %v913_v48 }
  0x66   : > { %780 = vperm.xlu1 %2977, %v3198_v1   ;;  %784 = vperm.xlu0 %2976, %v3206_v3   ;;  %v926_v3 = vrot.slane %v280_v41, %v909_v47 }
  0x6a   : > { %788 = vperm.xlu1 %2977, %v251_v6   ;;  %792 = vperm.xlu0 %2976, %v3211_v5   ;;  %v3262_v5 = vrot.slane %v462_v50, %v445_v36  ;;  %v3264_v6 = vrot.slane %v466_v51, %v445_v36 }
  0x6c   : > { %5152 = vst [vmem:[#allocation13_spill] sm:$0xff] %v3262_v5  ;;  %5153 = vst [vmem:[#allocation14_spill] sm:$0xff] %v3264_v6 }
  0x6e   : > { %796 = vperm.xlu1 %2977, %v253_v8   ;;  %800 = vperm.xlu0 %2976, %v254_v7   ;;  %v3266_v7 = vrot.slane %v470_v52, %v445_v36  ;;  %v3268_v8 = vrot.slane %v474_v53, %v445_v36 }
  0x70   : > { %5154 = vst [vmem:[#allocation15_spill] sm:$0xff] %v3266_v7  ;;  %5155 = vst [vmem:[#allocation16_spill] sm:$0xff] %v3268_v8 }
  0x72   : > { %804 = vperm.xlu1 %2977, %v255_v10   ;;  %808 = vperm.xlu0 %2976, %v256_v9   ;;  %v3270_v9 = vrot.slane %v902_v57, %v901_v45  ;;  %v3272_v10 = vrot.slane %v246_v58, %v445_v36 }
  0x76   : > { %812 = vperm.xlu1 %2977, %v257_v12   ;;  %816 = vperm.xlu0 %2976, %v258_v11   ;;  %v3274_v11 = vrot.slane %v246_v58, %v449_v38  ;;  %v3276_v12 = vrot.slane %v246_v58, %v453_v39 }
  0x7a   : > { %820 = vperm.xlu1 %2977, %v259_v14   ;;  %824 = vperm.xlu0 %2976, %v260_v13   ;;  %v3278_v13 = vrot.slane %v906_v59, %v901_v45  ;;  %v3280_v14 = vrot.slane %v910_v60, %v901_v45 }
  0x7e   : > { %828 = vperm.xlu1 %2977, %v261_v16   ;;  %832 = vperm.xlu0 %2976, %v262_v15   ;;  %v3282_v15 = vrot.slane %v914_v61, %v901_v45  ;;  %v3284_v16 = vrot.slane %v918_v62, %v901_v45 }
  0x82   : > { %836 = vperm.xlu1 %2977, %v263_v18   ;;  %840 = vperm.xlu0 %2976, %v264_v17  }
  0x86   : > { %844 = vperm.xlu1 %2977, %v265_v20   ;;  %848 = vperm.xlu0 %2976, %v266_v19   ;;  %v3286_v19 = vrot.slane %v922_v2, %v901_v45  ;;  %v3288_v20 = vrot.slane %v926_v3, %v901_v45 }
  0x8a   : > { %852 = vperm.xlu1 %2977, %v267_v22   ;;  %856 = vperm.xlu0 %2976, %v268_v21   ;;  %v3290_v21 = vrot.slane %v930_v4, %v901_v45  ;;  %v3292_v22 = vrot.slane %v246_v58, %v901_v45 }
  0x8e   : > { %860 = vperm.xlu1 %2977, %v269_v24   ;;  %864 = vperm.xlu0 %2976, %v270_v23   ;;  %v3294_v23 = vrot.slane %v246_v58, %v905_v46  ;;  %v3296_v24 = vrot.slane %v246_v58, %v909_v47 }
  0x92   : > { %868 = vperm.xlu1 %2977, %v271_v26   ;;  %872 = vperm.xlu0 %2976, %v272_v25   ;;  %v3298_v25 = vrot.slane %v246_v58, %v457_v40  ;;  %v3300_v26 = vrot.slane %v246_v58, %v913_v48 }
  0x96   : > { %876 = vperm.xlu1 %2977, %v273_v28   ;;  %880 = vperm.xlu0 %2976, %v274_v27  }
  0x9a   : > { %884 = vperm.xlu1 %2977, %v275_v30   ;;  %888 = vperm.xlu0 %2976, %v276_v29  }
  0x9e   : > { %892 = vperm.xlu1 %2977, %v277_v32   ;;  %896 = vperm.xlu0 %2976, %v278_v31  }
  0xa0   : > { %v294_v0 = vpop.permute.xlu1 %293  ;;  %v284_v1 = vpop.permute.xlu0 %283 }
  0xa1   : > { %v3303_v27 = vmul.f32 %v3251_v54, %v294_v0  ;;  %v3306_v28 = vmul.f32 %v3253_v55, %v294_v0  ;;  %v3309_v29 = vmul.f32 %v3255_v56, %v294_v0  ;;  %v3312_v30 = vmul.f32 %v3260_v63, %v294_v0 }
  0xa2   : > { %v3315_v31 = vmul.f32 %v3262_v5, %v294_v0  ;;  %v3318_v32 = vmul.f32 %v3264_v6, %v294_v0  ;;  %v3321_v33 = vmul.f32 %v3266_v7, %v294_v0  ;;  %v3324_v34 = vmul.f32 %v3268_v8, %v294_v0 }
  0xa3   : > { %v3327_v35 = vmul.f32 %v3251_v54, %v284_v1  ;;  %v3330_v36 = vmul.f32 %v3253_v55, %v284_v1  ;;  %v3333_v37 = vmul.f32 %v3255_v56, %v284_v1  ;;  %v3336_v38 = vmul.f32 %v3260_v63, %v284_v1 }
  0xa4   : > { %v299_v17 = vpop.permute.xlu1 %298  ;;  %v289_v18 = vpop.permute.xlu0 %288  ;;  %v3339_v41 = vmul.f32 %v3262_v5, %v284_v1  ;;  %v3342_v42 = vmul.f32 %v3264_v6, %v284_v1  ;;  %v3345_v43 = vmul.f32 %v3266_v7, %v284_v1  ;;  %v3348_v44 = vmul.f32 %v3268_v8, %v284_v1 }
  0xa5   : > { %v3351_v45 = vmul.f32 %v3251_v54, %v299_v17  ;;  %v3354_v46 = vmul.f32 %v3253_v55, %v299_v17  ;;  %v3357_v47 = vmul.f32 %v3255_v56, %v299_v17  ;;  %v3360_v48 = vmul.f32 %v3260_v63, %v299_v17 }
  0xa6   : > { %v3363_v49 = vmul.f32 %v3262_v5, %v299_v17  ;;  %v3366_v50 = vmul.f32 %v3264_v6, %v299_v17  ;;  %v3369_v51 = vmul.f32 %v3266_v7, %v299_v17  ;;  %v3372_v52 = vmul.f32 %v3268_v8, %v299_v17 }
  0xa7   : > { %5156 = vst [vmem:[#allocation17_spill] sm:$0xff] %v3360_v48  ;;  %v3375_v53 = vmul.f32 %v3251_v54, %v289_v18  ;;  %v3378_v57 = vmul.f32 %v3253_v55, %v289_v18  ;;  %v3381_v58 = vmul.f32 %v3255_v56, %v289_v18  ;;  %v3384_v59 = vmul.f32 %v3260_v63, %v289_v18 }
  0xa8   : > { %v309_v39 = vpop.permute.xlu1 %308  ;;  %v304_v40 = vpop.permute.xlu0 %303  ;;  %5157 = vst [vmem:[#allocation18_spill] sm:$0xff] %v3363_v49  ;;  %5158 = vst [vmem:[#allocation19_spill] sm:$0xff] %v3366_v50  ;;  %v3387_v62 = vmul.f32 %v3262_v5, %v289_v18  ;;  %v3390_v0 = vmul.f32 %v3264_v6, %v289_v18  ;;  %v3393_v1 = vmul.f32 %v3266_v7, %v289_v18 }
  0xa9   : > { %5159 = vst [vmem:[#allocation20_spill] sm:$0xff] %v3369_v51  ;;  %5160 = vst [vmem:[#allocation21_spill] sm:$0xff] %v3372_v52  ;;  %v3396_v2 = vmul.f32 %v3268_v8, %v289_v18  ;;  %v3399_v3 = vmul.f32 %v3251_v54, %v309_v39  ;;  %v3402_v4 = vmul.f32 %v3253_v55, %v309_v39 }
  0xaa   : > { %v3405_v17 = vmul.f32 %v3255_v56, %v309_v39  ;;  %v3408_v52 = vmul.f32 %v3260_v63, %v309_v39  ;;  %v3411_v51 = vmul.f32 %v3262_v5, %v309_v39  ;;  %v3414_v50 = vmul.f32 %v3264_v6, %v309_v39 }
  0xab   : > { %5161 = vst [vmem:[#allocation22_spill] sm:$0xff] %v3399_v3  ;;  %5162 = vst [vmem:[#allocation23_spill] sm:$0xff] %v3402_v4  ;;  %v3417_v18 = vmul.f32 %v3266_v7, %v309_v39  ;;  %v3420_v3 = vmul.f32 %v3268_v8, %v309_v39  ;;  %v3423_v4 = vmul.f32 %v3251_v54, %v304_v40 }
  0xac   : > { %v319_v60 = vpop.permute.xlu1 %318  ;;  %v314_v61 = vpop.permute.xlu0 %313  ;;  %5163 = vst [vmem:[#allocation24_spill] sm:$0xff] %v3405_v17  ;;  %5164 = vst [vmem:[#allocation25_spill] sm:$0xff] %v3408_v52  ;;  %v3426_v17 = vmul.f32 %v3253_v55, %v304_v40  ;;  %v3429_v52 = vmul.f32 %v3255_v56, %v304_v40  ;;  %v3435_v48 = vmul.f32 %v3262_v5, %v304_v40 }
  0xad   : > { %5165 = vst [vmem:[#allocation26_spill] sm:$0xff] %v3411_v51  ;;  %5166 = vst [vmem:[#allocation27_spill] sm:$0xff] %v3414_v50  ;;  %v3432_v51 = vmul.f32 %v3260_v63, %v304_v40  ;;  %v3438_v39 = vmul.f32 %v3264_v6, %v304_v40 }
  0xae   : > { %5167 = vst [vmem:[#allocation28_spill] sm:$0xff] %v3417_v18  ;;  %5168 = vst [vmem:[#allocation29_spill] sm:$0xff] %v3420_v3  ;;  %v3441_v3 = vmul.f32 %v3266_v7, %v304_v40  ;;  %v3444_v18 = vmul.f32 %v3268_v8, %v304_v40  ;;  %v3465_v40 = vmul.f32 %v3266_v7, %v319_v60 }
  0xaf   : > { %5169 = vst [vmem:[#allocation30_spill] sm:$0xff] %v3423_v4  ;;  %5170 = vst [vmem:[#allocation31_spill] sm:$0xff] %v3426_v17  ;;  %v3447_v17 = vmul.f32 %v3251_v54, %v319_v60  ;;  %v3483_v4 = vmul.f32 %v3262_v5, %v314_v61 }
  0xb0   : > { %5171 = vst [vmem:[#allocation32_spill] sm:$0xff] %v3429_v52  ;;  %5172 = vst [vmem:[#allocation33_spill] sm:$0xff] %v3432_v51  ;;  %v329_v49 = vpop.permute.xlu1 %328  ;;  %v324_v50 = vpop.permute.xlu0 %323  ;;  %v3450_v52 = vmul.f32 %v3253_v55, %v319_v60  ;;  %v3453_v51 = vmul.f32 %v3255_v56, %v319_v60 }
  0xb1   : > { %5173 = vst [vmem:[#allocation34_spill] sm:$0xff] %v3435_v48  ;;  %5174 = vst [vmem:[#allocation35_spill] sm:$0xff] %v3438_v39  ;;  %v3456_v48 = vmul.f32 %v3260_v63, %v319_v60  ;;  %v3459_v39 = vmul.f32 %v3262_v5, %v319_v60 }
  0xb2   : > { %5175 = vst [vmem:[#allocation36_spill] sm:$0xff] %v3441_v3  ;;  %5176 = vst [vmem:[#allocation37_spill] sm:$0xff] %v3444_v18  ;;  %v3462_v3 = vmul.f32 %v3264_v6, %v319_v60 }
  0xb3   : > { %5177 = vst [vmem:[#allocation38_spill] sm:$0xff] %v3447_v17  ;;  %5178 = vst [vmem:[#allocation39_spill] sm:$0xff] %v3450_v52  ;;  %v3468_v17 = vmul.f32 %v3268_v8, %v319_v60  ;;  %v3471_v52 = vmul.f32 %v3251_v54, %v314_v61  ;;  %v3486_v60 = vmul.f32 %v3264_v6, %v314_v61 }
  0xb4   : > { %5179 = vst [vmem:[#allocation40_spill] sm:$0xff] %v3453_v51  ;;  %5180 = vst [vmem:[#allocation41_spill] sm:$0xff] %v3456_v48  ;;  %v3474_v51 = vmul.f32 %v3253_v55, %v314_v61  ;;  %v3477_v48 = vmul.f32 %v3255_v56, %v314_v61  ;;  %v339_v18 = vpop.permute.xlu1 %338 }
  0xb5   : > { %5181 = vst [vmem:[#allocation42_spill] sm:$0xff] %v3459_v39  ;;  %5182 = vst [vmem:[#allocation43_spill] sm:$0xff] %v3462_v3  ;;  %v3480_v39 = vmul.f32 %v3260_v63, %v314_v61  ;;  %v334_v3 = vpop.permute.xlu0 %333 }
  0xb6   : > { %5183 = vst [vmem:[#allocation44_spill] sm:$0xff] %v3465_v40  ;;  %5184 = vst [vmem:[#allocation45_spill] sm:$0xff] %v3468_v17  ;;  %v3489_v17 = vmul.f32 %v3266_v7, %v314_v61  ;;  %v3492_v40 = vmul.f32 %v3268_v8, %v314_v61  ;;  %v3513_v61 = vmul.f32 %v3266_v7, %v329_v49 }
  0xb7   : > { %5185 = vst [vmem:[#allocation46_spill] sm:$0xff] %v3471_v52  ;;  %5186 = vst [vmem:[#allocation47_spill] sm:$0xff] %v3474_v51  ;;  %v3495_v51 = vmul.f32 %v3251_v54, %v329_v49  ;;  %v3531_v52 = vmul.f32 %v3262_v5, %v324_v50 }
  0xb8   : > { %5187 = vst [vmem:[#allocation48_spill] sm:$0xff] %v3477_v48  ;;  %5188 = vst [vmem:[#allocation49_spill] sm:$0xff] %v3480_v39  ;;  %v3498_v48 = vmul.f32 %v3253_v55, %v329_v49  ;;  %v3501_v39 = vmul.f32 %v3255_v56, %v329_v49 }
  0xb9   : > { %5189 = vst [vmem:[#allocation50_spill] sm:$0xff] %v3483_v4  ;;  %5190 = vst [vmem:[#allocation51_spill] sm:$0xff] %v3486_v60  ;;  %v3504_v4 = vmul.f32 %v3260_v63, %v329_v49  ;;  %v3507_v60 = vmul.f32 %v3262_v5, %v329_v49 }
  0xba   : > { %5191 = vst [vmem:[#allocation52_spill] sm:$0xff] %v3489_v17  ;;  %5192 = vst [vmem:[#allocation53_spill] sm:$0xff] %v3492_v40  ;;  %v3510_v17 = vmul.f32 %v3264_v6, %v329_v49  ;;  %v349_v40 = vpop.permute.xlu1 %348 }
  0xbb   : > { %5193 = vst [vmem:[#allocation54_spill] sm:$0xff] %v3495_v51  ;;  %5194 = vst [vmem:[#allocation55_spill] sm:$0xff] %v3498_v48  ;;  %v3516_v51 = vmul.f32 %v3268_v8, %v329_v49  ;;  %v3519_v48 = vmul.f32 %v3251_v54, %v324_v50  ;;  %v3534_v49 = vmul.f32 %v3264_v6, %v324_v50 }
  0xbc   : > { %5195 = vst [vmem:[#allocation56_spill] sm:$0xff] %v3501_v39  ;;  %5196 = vst [vmem:[#allocation57_spill] sm:$0xff] %v3504_v4  ;;  %v3522_v39 = vmul.f32 %v3253_v55, %v324_v50  ;;  %v3525_v4 = vmul.f32 %v3255_v56, %v324_v50 }
  0xbd   : > { %5197 = vst [vmem:[#allocation58_spill] sm:$0xff] %v3507_v60  ;;  %5198 = vst [vmem:[#allocation59_spill] sm:$0xff] %v3510_v17  ;;  %v3528_v60 = vmul.f32 %v3260_v63, %v324_v50  ;;  %v344_v17 = vpop.permute.xlu0 %343 }
  0xbe   : > { %5199 = vst [vmem:[#allocation60_spill] sm:$0xff] %v3513_v61  ;;  %5200 = vst [vmem:[#allocation61_spill] sm:$0xff] %v3516_v51  ;;  %v3537_v51 = vmul.f32 %v3266_v7, %v324_v50  ;;  %v3540_v61 = vmul.f32 %v3268_v8, %v324_v50  ;;  %v3561_v50 = vmul.f32 %v3266_v7, %v339_v18 }
  0xbf   : > { %5201 = vst [vmem:[#allocation62_spill] sm:$0xff] %v3519_v48  ;;  %5202 = vst [vmem:[#allocation63_spill] sm:$0xff] %v3522_v39  ;;  %v3543_v39 = vmul.f32 %v3251_v54, %v339_v18  ;;  %v3579_v48 = vmul.f32 %v3262_v5, %v334_v3 }
  0xc0   : > { %5203 = vst [vmem:[#allocation64_spill] sm:$0xff] %v3525_v4  ;;  %5204 = vst [vmem:[#allocation65_spill] sm:$0xff] %v3528_v60  ;;  %v3546_v4 = vmul.f32 %v3253_v55, %v339_v18  ;;  %v3549_v60 = vmul.f32 %v3255_v56, %v339_v18 }
  0xc1   : > { %5205 = vst [vmem:[#allocation66_spill] sm:$0xff] %v3531_v52  ;;  %5206 = vst [vmem:[#allocation67_spill] sm:$0xff] %v3534_v49  ;;  %v3552_v52 = vmul.f32 %v3260_v63, %v339_v18  ;;  %v3555_v49 = vmul.f32 %v3262_v5, %v339_v18 }
  0xc2   : > { %5207 = vst [vmem:[#allocation68_spill] sm:$0xff] %v3537_v51  ;;  %5208 = vst [vmem:[#allocation69_spill] sm:$0xff] %v3540_v61  ;;  %v3558_v51 = vmul.f32 %v3264_v6, %v339_v18  ;;  %v359_v61 = vpop.permute.xlu1 %358 }
  0xc3   : > { %5209 = vst [vmem:[#allocation70_spill] sm:$0xff] %v3543_v39  ;;  %5210 = vst [vmem:[#allocation71_spill] sm:$0xff] %v3546_v4  ;;  %v3564_v39 = vmul.f32 %v3268_v8, %v339_v18  ;;  %v3567_v4 = vmul.f32 %v3251_v54, %v334_v3  ;;  %v3582_v18 = vmul.f32 %v3264_v6, %v334_v3 }
  0xc4   : > { %5211 = vst [vmem:[#allocation72_spill] sm:$0xff] %v3549_v60  ;;  %5212 = vst [vmem:[#allocation73_spill] sm:$0xff] %v3552_v52  ;;  %v3570_v60 = vmul.f32 %v3253_v55, %v334_v3  ;;  %v3573_v52 = vmul.f32 %v3255_v56, %v334_v3 }
  0xc5   : > { %5213 = vst [vmem:[#allocation74_spill] sm:$0xff] %v3555_v49  ;;  %5214 = vst [vmem:[#allocation75_spill] sm:$0xff] %v3558_v51  ;;  %v3576_v49 = vmul.f32 %v3260_v63, %v334_v3  ;;  %v354_v51 = vpop.permute.xlu0 %353 }
  0xc6   : > { %5215 = vst [vmem:[#allocation76_spill] sm:$0xff] %v3561_v50  ;;  %5216 = vst [vmem:[#allocation77_spill] sm:$0xff] %v3564_v39  ;;  %v3585_v39 = vmul.f32 %v3266_v7, %v334_v3  ;;  %v3588_v50 = vmul.f32 %v3268_v8, %v334_v3  ;;  %v3609_v3 = vmul.f32 %v3266_v7, %v349_v40 }
  0xc7   : > { %5217 = vst [vmem:[#allocation78_spill] sm:$0xff] %v3567_v4  ;;  %5218 = vst [vmem:[#allocation79_spill] sm:$0xff] %v3570_v60  ;;  %v3591_v60 = vmul.f32 %v3251_v54, %v349_v40  ;;  %v3627_v4 = vmul.f32 %v3262_v5, %v344_v17 }
  0xc8   : > { %5219 = vst [vmem:[#allocation80_spill] sm:$0xff] %v3573_v52  ;;  %5220 = vst [vmem:[#allocation81_spill] sm:$0xff] %v3576_v49  ;;  %v3594_v52 = vmul.f32 %v3253_v55, %v349_v40  ;;  %v3597_v49 = vmul.f32 %v3255_v56, %v349_v40 }
  0xc9   : > { %5221 = vst [vmem:[#allocation82_spill] sm:$0xff] %v3579_v48  ;;  %5222 = vst [vmem:[#allocation83_spill] sm:$0xff] %v3582_v18  ;;  %v3600_v48 = vmul.f32 %v3260_v63, %v349_v40  ;;  %v3603_v18 = vmul.f32 %v3262_v5, %v349_v40 }
  0xca   : > { %5223 = vst [vmem:[#allocation84_spill] sm:$0xff] %v3585_v39  ;;  %5224 = vst [vmem:[#allocation85_spill] sm:$0xff] %v3588_v50  ;;  %v3606_v39 = vmul.f32 %v3264_v6, %v349_v40  ;;  %v369_v50 = vpop.permute.xlu1 %368 }
  0xcb   : > { %5225 = vst [vmem:[#allocation86_spill] sm:$0xff] %v3591_v60  ;;  %5226 = vst [vmem:[#allocation87_spill] sm:$0xff] %v3594_v52  ;;  %v3612_v60 = vmul.f32 %v3268_v8, %v349_v40  ;;  %v3615_v52 = vmul.f32 %v3251_v54, %v344_v17  ;;  %v3630_v40 = vmul.f32 %v3264_v6, %v344_v17 }
  0xcc   : > { %5227 = vst [vmem:[#allocation88_spill] sm:$0xff] %v3597_v49  ;;  %5228 = vst [vmem:[#allocation89_spill] sm:$0xff] %v3600_v48  ;;  %v3618_v49 = vmul.f32 %v3253_v55, %v344_v17  ;;  %v3621_v48 = vmul.f32 %v3255_v56, %v344_v17 }
  0xcd   : > { %5229 = vst [vmem:[#allocation90_spill] sm:$0xff] %v3603_v18  ;;  %5230 = vst [vmem:[#allocation91_spill] sm:$0xff] %v3606_v39  ;;  %v3624_v18 = vmul.f32 %v3260_v63, %v344_v17  ;;  %v364_v39 = vpop.permute.xlu0 %363 }
  0xce   : > { %5231 = vst [vmem:[#allocation92_spill] sm:$0xff] %v3609_v3  ;;  %5232 = vst [vmem:[#allocation93_spill] sm:$0xff] %v3612_v60  ;;  %v3633_v60 = vmul.f32 %v3266_v7, %v344_v17  ;;  %v3636_v3 = vmul.f32 %v3268_v8, %v344_v17  ;;  %v3657_v17 = vmul.f32 %v3266_v7, %v359_v61 }
  0xcf   : > { %5233 = vst [vmem:[#allocation94_spill] sm:$0xff] %v3615_v52  ;;  %5234 = vst [vmem:[#allocation95_spill] sm:$0xff] %v3618_v49  ;;  %v3639_v49 = vmul.f32 %v3251_v54, %v359_v61  ;;  %v3675_v52 = vmul.f32 %v3262_v5, %v354_v51 }
  0xd0   : > { %5235 = vst [vmem:[#allocation96_spill] sm:$0xff] %v3621_v48  ;;  %5236 = vst [vmem:[#allocation97_spill] sm:$0xff] %v3624_v18  ;;  %v3642_v48 = vmul.f32 %v3253_v55, %v359_v61  ;;  %v3645_v18 = vmul.f32 %v3255_v56, %v359_v61 }
  0xd1   : > { %5237 = vst [vmem:[#allocation98_spill] sm:$0xff] %v3627_v4  ;;  %5238 = vst [vmem:[#allocation99_spill] sm:$0xff] %v3630_v40  ;;  %v3648_v4 = vmul.f32 %v3260_v63, %v359_v61  ;;  %v3651_v40 = vmul.f32 %v3262_v5, %v359_v61 }
  0xd2   : > { %5239 = vst [vmem:[#allocation100_spill] sm:$0xff] %v3633_v60  ;;  %5240 = vst [vmem:[#allocation101_spill] sm:$0xff] %v3636_v3  ;;  %v3654_v60 = vmul.f32 %v3264_v6, %v359_v61  ;;  %v379_v3 = vpop.permute.xlu1 %378 }
  0xd3   : > { %5241 = vst [vmem:[#allocation102_spill] sm:$0xff] %v3639_v49  ;;  %5242 = vst [vmem:[#allocation103_spill] sm:$0xff] %v3642_v48  ;;  %v3660_v49 = vmul.f32 %v3268_v8, %v359_v61  ;;  %v3663_v48 = vmul.f32 %v3251_v54, %v354_v51  ;;  %v3678_v61 = vmul.f32 %v3264_v6, %v354_v51 }
  0xd4   : > { %5243 = vst [vmem:[#allocation104_spill] sm:$0xff] %v3645_v18  ;;  %5244 = vst [vmem:[#allocation105_spill] sm:$0xff] %v3648_v4  ;;  %v3666_v18 = vmul.f32 %v3253_v55, %v354_v51  ;;  %v3669_v4 = vmul.f32 %v3255_v56, %v354_v51 }
  0xd5   : > { %5245 = vst [vmem:[#allocation106_spill] sm:$0xff] %v3651_v40  ;;  %5246 = vst [vmem:[#allocation107_spill] sm:$0xff] %v3654_v60  ;;  %v3672_v40 = vmul.f32 %v3260_v63, %v354_v51  ;;  %v374_v60 = vpop.permute.xlu0 %373 }
  0xd6   : > { %5247 = vst [vmem:[#allocation108_spill] sm:$0xff] %v3657_v17  ;;  %5248 = vst [vmem:[#allocation109_spill] sm:$0xff] %v3660_v49  ;;  %v3681_v49 = vmul.f32 %v3266_v7, %v354_v51  ;;  %v3684_v17 = vmul.f32 %v3268_v8, %v354_v51  ;;  %v3705_v51 = vmul.f32 %v3266_v7, %v369_v50 }
  0xd7   : > { %5249 = vst [vmem:[#allocation110_spill] sm:$0xff] %v3663_v48  ;;  %5250 = vst [vmem:[#allocation111_spill] sm:$0xff] %v3666_v18  ;;  %v3687_v18 = vmul.f32 %v3251_v54, %v369_v50  ;;  %v3723_v48 = vmul.f32 %v3262_v5, %v364_v39 }
  0xd8   : > { %5251 = vst [vmem:[#allocation112_spill] sm:$0xff] %v3669_v4  ;;  %5252 = vst [vmem:[#allocation113_spill] sm:$0xff] %v3672_v40  ;;  %v3690_v4 = vmul.f32 %v3253_v55, %v369_v50  ;;  %v3693_v40 = vmul.f32 %v3255_v56, %v369_v50 }
  0xd9   : > { %5253 = vst [vmem:[#allocation114_spill] sm:$0xff] %v3675_v52  ;;  %5254 = vst [vmem:[#allocation115_spill] sm:$0xff] %v3678_v61  ;;  %v3696_v52 = vmul.f32 %v3260_v63, %v369_v50  ;;  %v3699_v61 = vmul.f32 %v3262_v5, %v369_v50 }
  0xda   : > { %5255 = vst [vmem:[#allocation116_spill] sm:$0xff] %v3681_v49  ;;  %5256 = vst [vmem:[#allocation117_spill] sm:$0xff] %v3684_v17  ;;  %v3702_v49 = vmul.f32 %v3264_v6, %v369_v50  ;;  %v389_v17 = vpop.permute.xlu1 %388 }
  0xdb   : > { %5257 = vst [vmem:[#allocation118_spill] sm:$0xff] %v3687_v18  ;;  %5258 = vst [vmem:[#allocation119_spill] sm:$0xff] %v3690_v4  ;;  %v3708_v18 = vmul.f32 %v3268_v8, %v369_v50  ;;  %v3711_v4 = vmul.f32 %v3251_v54, %v364_v39  ;;  %v3726_v50 = vmul.f32 %v3264_v6, %v364_v39 }
  0xdc   : > { %5259 = vst [vmem:[#allocation120_spill] sm:$0xff] %v3693_v40  ;;  %5260 = vst [vmem:[#allocation121_spill] sm:$0xff] %v3696_v52  ;;  %v3714_v40 = vmul.f32 %v3253_v55, %v364_v39  ;;  %v3717_v52 = vmul.f32 %v3255_v56, %v364_v39 }
  0xdd   : > { %5261 = vst [vmem:[#allocation122_spill] sm:$0xff] %v3699_v61  ;;  %5262 = vst [vmem:[#allocation123_spill] sm:$0xff] %v3702_v49  ;;  %v3720_v61 = vmul.f32 %v3260_v63, %v364_v39  ;;  %v384_v49 = vpop.permute.xlu0 %383 }
  0xde   : > { %5263 = vst [vmem:[#allocation124_spill] sm:$0xff] %v3705_v51  ;;  %5264 = vst [vmem:[#allocation125_spill] sm:$0xff] %v3708_v18  ;;  %v3729_v18 = vmul.f32 %v3266_v7, %v364_v39  ;;  %v3732_v51 = vmul.f32 %v3268_v8, %v364_v39  ;;  %v3753_v39 = vmul.f32 %v3266_v7, %v379_v3 }
  0xdf   : > { %5265 = vst [vmem:[#allocation126_spill] sm:$0xff] %v3711_v4  ;;  %5266 = vst [vmem:[#allocation127_spill] sm:$0xff] %v3714_v40  ;;  %v3735_v40 = vmul.f32 %v3251_v54, %v379_v3  ;;  %v3771_v4 = vmul.f32 %v3262_v5, %v374_v60 }
  0xe0   : > { %5267 = vst [vmem:[#allocation128_spill] sm:$0xff] %v3717_v52  ;;  %5268 = vst [vmem:[#allocation129_spill] sm:$0xff] %v3720_v61  ;;  %v3738_v52 = vmul.f32 %v3253_v55, %v379_v3  ;;  %v3741_v61 = vmul.f32 %v3255_v56, %v379_v3 }
  0xe1   : > { %5269 = vst [vmem:[#allocation130_spill] sm:$0xff] %v3723_v48  ;;  %5270 = vst [vmem:[#allocation131_spill] sm:$0xff] %v3726_v50  ;;  %v3744_v48 = vmul.f32 %v3260_v63, %v379_v3  ;;  %v3747_v50 = vmul.f32 %v3262_v5, %v379_v3 }
  0xe2   : > { %5271 = vst [vmem:[#allocation132_spill] sm:$0xff] %v3729_v18  ;;  %5272 = vst [vmem:[#allocation133_spill] sm:$0xff] %v3732_v51  ;;  %v3750_v18 = vmul.f32 %v3264_v6, %v379_v3  ;;  %v399_v51 = vpop.permute.xlu1 %398 }
  0xe3   : > { %5273 = vst [vmem:[#allocation134_spill] sm:$0xff] %v3735_v40  ;;  %5274 = vst [vmem:[#allocation135_spill] sm:$0xff] %v3738_v52  ;;  %v3756_v40 = vmul.f32 %v3268_v8, %v379_v3  ;;  %v3759_v52 = vmul.f32 %v3251_v54, %v374_v60  ;;  %v3774_v3 = vmul.f32 %v3264_v6, %v374_v60 }
  0xe4   : > { %5275 = vst [vmem:[#allocation136_spill] sm:$0xff] %v3741_v61  ;;  %5276 = vst [vmem:[#allocation137_spill] sm:$0xff] %v3744_v48  ;;  %v3762_v61 = vmul.f32 %v3253_v55, %v374_v60  ;;  %v3765_v48 = vmul.f32 %v3255_v56, %v374_v60 }
  0xe5   : > { %5277 = vst [vmem:[#allocation138_spill] sm:$0xff] %v3747_v50  ;;  %5278 = vst [vmem:[#allocation139_spill] sm:$0xff] %v3750_v18  ;;  %v3768_v50 = vmul.f32 %v3260_v63, %v374_v60  ;;  %v394_v18 = vpop.permute.xlu0 %393 }
  0xe6   : > { %5279 = vst [vmem:[#allocation140_spill] sm:$0xff] %v3753_v39  ;;  %5280 = vst [vmem:[#allocation141_spill] sm:$0xff] %v3756_v40  ;;  %v3777_v40 = vmul.f32 %v3266_v7, %v374_v60  ;;  %v3780_v39 = vmul.f32 %v3268_v8, %v374_v60  ;;  %v3801_v60 = vmul.f32 %v3266_v7, %v389_v17 }
  0xe7   : > { %5281 = vst [vmem:[#allocation142_spill] sm:$0xff] %v3759_v52  ;;  %5282 = vst [vmem:[#allocation143_spill] sm:$0xff] %v3762_v61  ;;  %v3783_v61 = vmul.f32 %v3251_v54, %v389_v17  ;;  %v3819_v52 = vmul.f32 %v3262_v5, %v384_v49 }
  0xe8   : > { %5283 = vst [vmem:[#allocation144_spill] sm:$0xff] %v3765_v48  ;;  %5284 = vst [vmem:[#allocation145_spill] sm:$0xff] %v3768_v50  ;;  %v3786_v48 = vmul.f32 %v3253_v55, %v389_v17  ;;  %v3789_v50 = vmul.f32 %v3255_v56, %v389_v17 }
  0xe9   : > { %5285 = vst [vmem:[#allocation146_spill] sm:$0xff] %v3771_v4  ;;  %5286 = vst [vmem:[#allocation147_spill] sm:$0xff] %v3774_v3  ;;  %v3792_v4 = vmul.f32 %v3260_v63, %v389_v17  ;;  %v3795_v3 = vmul.f32 %v3262_v5, %v389_v17 }
  0xea   : > { %5287 = vst [vmem:[#allocation148_spill] sm:$0xff] %v3777_v40  ;;  %5288 = vst [vmem:[#allocation149_spill] sm:$0xff] %v3780_v39  ;;  %v3798_v40 = vmul.f32 %v3264_v6, %v389_v17  ;;  %v409_v39 = vpop.permute.xlu1 %408 }
  0xeb   : > { %5289 = vst [vmem:[#allocation150_spill] sm:$0xff] %v3783_v61  ;;  %5290 = vst [vmem:[#allocation151_spill] sm:$0xff] %v3786_v48  ;;  %v3804_v61 = vmul.f32 %v3268_v8, %v389_v17  ;;  %v3807_v48 = vmul.f32 %v3251_v54, %v384_v49  ;;  %v3822_v17 = vmul.f32 %v3264_v6, %v384_v49 }
  0xec   : > { %5291 = vst [vmem:[#allocation152_spill] sm:$0xff] %v3789_v50  ;;  %5292 = vst [vmem:[#allocation153_spill] sm:$0xff] %v3792_v4  ;;  %v3810_v50 = vmul.f32 %v3253_v55, %v384_v49  ;;  %v3813_v4 = vmul.f32 %v3255_v56, %v384_v49 }
  0xed   : > { %5293 = vst [vmem:[#allocation154_spill] sm:$0xff] %v3795_v3  ;;  %5294 = vst [vmem:[#allocation155_spill] sm:$0xff] %v3798_v40  ;;  %v3816_v3 = vmul.f32 %v3260_v63, %v384_v49  ;;  %v404_v40 = vpop.permute.xlu0 %403 }
  0xee   : > { %5295 = vst [vmem:[#allocation156_spill] sm:$0xff] %v3801_v60  ;;  %5296 = vst [vmem:[#allocation157_spill] sm:$0xff] %v3804_v61  ;;  %v3825_v61 = vmul.f32 %v3266_v7, %v384_v49  ;;  %v3828_v60 = vmul.f32 %v3268_v8, %v384_v49  ;;  %v3849_v49 = vmul.f32 %v3266_v7, %v399_v51 }
  0xef   : > { %5297 = vst [vmem:[#allocation158_spill] sm:$0xff] %v3807_v48  ;;  %5298 = vst [vmem:[#allocation159_spill] sm:$0xff] %v3810_v50  ;;  %v3831_v50 = vmul.f32 %v3251_v54, %v399_v51  ;;  %v3867_v48 = vmul.f32 %v3262_v5, %v394_v18 }
  0xf0   : > { %5299 = vst [vmem:[#allocation160_spill] sm:$0xff] %v3813_v4  ;;  %5300 = vst [vmem:[#allocation161_spill] sm:$0xff] %v3816_v3  ;;  %v3834_v4 = vmul.f32 %v3253_v55, %v399_v51  ;;  %v3837_v3 = vmul.f32 %v3255_v56, %v399_v51 }
  0xf1   : > { %5301 = vst [vmem:[#allocation162_spill] sm:$0xff] %v3819_v52  ;;  %5302 = vst [vmem:[#allocation163_spill] sm:$0xff] %v3822_v17  ;;  %v3840_v52 = vmul.f32 %v3260_v63, %v399_v51  ;;  %v3843_v17 = vmul.f32 %v3262_v5, %v399_v51 }
  0xf2   : > { %5303 = vst [vmem:[#allocation164_spill] sm:$0xff] %v3825_v61  ;;  %5304 = vst [vmem:[#allocation165_spill] sm:$0xff] %v3828_v60  ;;  %v3846_v61 = vmul.f32 %v3264_v6, %v399_v51  ;;  %v419_v60 = vpop.permute.xlu1 %418 }
  0xf3   : > { %5305 = vst [vmem:[#allocation166_spill] sm:$0xff] %v3831_v50  ;;  %5306 = vst [vmem:[#allocation167_spill] sm:$0xff] %v3834_v4  ;;  %v3852_v50 = vmul.f32 %v3268_v8, %v399_v51  ;;  %v3855_v4 = vmul.f32 %v3251_v54, %v394_v18  ;;  %v3870_v51 = vmul.f32 %v3264_v6, %v394_v18 }
  0xf4   : > { %5307 = vst [vmem:[#allocation168_spill] sm:$0xff] %v3837_v3  ;;  %5308 = vst [vmem:[#allocation169_spill] sm:$0xff] %v3840_v52  ;;  %v3858_v3 = vmul.f32 %v3253_v55, %v394_v18  ;;  %v3861_v52 = vmul.f32 %v3255_v56, %v394_v18 }
  0xf5   : > { %5309 = vst [vmem:[#allocation170_spill] sm:$0xff] %v3843_v17  ;;  %5310 = vst [vmem:[#allocation171_spill] sm:$0xff] %v3846_v61  ;;  %v3864_v17 = vmul.f32 %v3260_v63, %v394_v18  ;;  %v414_v61 = vpop.permute.xlu0 %413 }
  0xf6   : > { %5311 = vst [vmem:[#allocation172_spill] sm:$0xff] %v3849_v49  ;;  %5312 = vst [vmem:[#allocation173_spill] sm:$0xff] %v3852_v50  ;;  %v3873_v50 = vmul.f32 %v3266_v7, %v394_v18  ;;  %v3876_v49 = vmul.f32 %v3268_v8, %v394_v18  ;;  %v3897_v18 = vmul.f32 %v3266_v7, %v409_v39 }
  0xf7   : > { %5313 = vst [vmem:[#allocation174_spill] sm:$0xff] %v3858_v3  ;;  %5314 = vst [vmem:[#allocation175_spill] sm:$0xff] %v3861_v52  ;;  %v3879_v3 = vmul.f32 %v3251_v54, %v409_v39  ;;  %v3882_v52 = vmul.f32 %v3253_v55, %v409_v39 }
  0xf8   : > { %5315 = vst [vmem:[#allocation176_spill] sm:$0xff] %v3864_v17  ;;  %5316 = vst [vmem:[#allocation177_spill] sm:$0xff] %v3867_v48  ;;  %v3885_v17 = vmul.f32 %v3255_v56, %v409_v39  ;;  %v3888_v48 = vmul.f32 %v3260_v63, %v409_v39 }
  0xf9   : > { %5317 = vst [vmem:[#allocation178_spill] sm:$0xff] %v3870_v51  ;;  %5318 = vst [vmem:[#allocation179_spill] sm:$0xff] %v3873_v50  ;;  %v3891_v51 = vmul.f32 %v3262_v5, %v409_v39  ;;  %v3894_v50 = vmul.f32 %v3264_v6, %v409_v39 }
  0xfa   : > { %5319 = vst [vmem:[#allocation180_spill] sm:$0xff] %v3876_v49  ;;  %5320 = vst [vmem:[#allocation181_spill] sm:$0xff] %v3879_v3  ;;  %v3900_v3 = vmul.f32 %v3268_v8, %v409_v39  ;;  %v429_v49 = vpop.permute.xlu1 %428  ;;  %v3921_v39 = vmul.f32 %v3266_v7, %v404_v40 }
  0xfb   : > { %5321 = vst [vmem:[#allocation182_spill] sm:$0xff] %v3882_v52  ;;  %5322 = vst [vmem:[#allocation183_spill] sm:$0xff] %v3885_v17  ;;  %v3903_v52 = vmul.f32 %v3251_v54, %v404_v40  ;;  %v3906_v17 = vmul.f32 %v3253_v55, %v404_v40 }
  0xfc   : > { %5323 = vst [vmem:[#allocation184_spill] sm:$0xff] %v3888_v48  ;;  %5324 = vst [vmem:[#allocation185_spill] sm:$0xff] %v3891_v51  ;;  %v3909_v48 = vmul.f32 %v3255_v56, %v404_v40  ;;  %v3912_v51 = vmul.f32 %v3260_v63, %v404_v40 }
  0xfd   : > { %5325 = vst [vmem:[#allocation186_spill] sm:$0xff] %v3894_v50  ;;  %5326 = vst [vmem:[#allocation187_spill] sm:$0xff] %v3897_v18  ;;  %v3915_v50 = vmul.f32 %v3262_v5, %v404_v40  ;;  %v3918_v18 = vmul.f32 %v3264_v6, %v404_v40 }
  0xfe   : > { %5327 = vst [vmem:[#allocation188_spill] sm:$0xff] %v3900_v3  ;;  %5328 = vst [vmem:[#allocation189_spill] sm:$0xff] %v3903_v52  ;;  %v3924_v3 = vmul.f32 %v3268_v8, %v404_v40  ;;  %v3927_v52 = vmul.f32 %v3251_v54, %v419_v60  ;;  %v3945_v40 = vmul.f32 %v3266_v7, %v419_v60 }
  0xff   : > { %5329 = vst [vmem:[#allocation190_spill] sm:$0xff] %v3906_v17  ;;  %5330 = vst [vmem:[#allocation191_spill] sm:$0xff] %v3909_v48  ;;  %v424_v17 = vpop.permute.xlu0 %423  ;;  %v3930_v48 = vmul.f32 %v3253_v55, %v419_v60 }
 0x100   : > { %5331 = vst [vmem:[#allocation192_spill] sm:$0xff] %v3912_v51  ;;  %5332 = vst [vmem:[#allocation193_spill] sm:$0xff] %v3915_v50  ;;  %v3933_v51 = vmul.f32 %v3255_v56, %v419_v60  ;;  %v3936_v50 = vmul.f32 %v3260_v63, %v419_v60 }
 0x101   : > { %5333 = vst [vmem:[#allocation194_spill] sm:$0xff] %v3918_v18  ;;  %5334 = vst [vmem:[#allocation195_spill] sm:$0xff] %v3921_v39  ;;  %v3939_v18 = vmul.f32 %v3262_v5, %v419_v60  ;;  %v3942_v39 = vmul.f32 %v3264_v6, %v419_v60 }
 0x102   : > { %5335 = vst [vmem:[#allocation196_spill] sm:$0xff] %v3927_v52  ;;  %5336 = vst [vmem:[#allocation197_spill] sm:$0xff] %v3930_v48  ;;  %v3948_v52 = vmul.f32 %v3268_v8, %v419_v60  ;;  %v3951_v48 = vmul.f32 %v3251_v54, %v414_v61  ;;  %v3968_v60 = vmul.f32 %v3264_v6, %v414_v61 }
 0x103   : > { %5337 = vst [vmem:[#allocation198_spill] sm:$0xff] %v3933_v51  ;;  %5338 = vst [vmem:[#allocation199_spill] sm:$0xff] %v3936_v50  ;;  %v3954_v51 = vmul.f32 %v3253_v55, %v414_v61  ;;  %v3957_v50 = vmul.f32 %v3255_v56, %v414_v61 }
 0x104   : > { %5339 = vst [vmem:[#allocation200_spill] sm:$0xff] %v3939_v18  ;;  %5340 = vst [vmem:[#allocation201_spill] sm:$0xff] %v3942_v39  ;;  %v3960_v18 = vmul.f32 %v3260_v63, %v414_v61  ;;  %v3962_v39 = vpop.permute.xlu1 %438 }
 0x105   : > { %5341 = vst [vmem:[#allocation202_spill] sm:$0xff] %v3945_v40  ;;  %5342 = vst [vmem:[#allocation203_spill] sm:$0xff] %v3948_v52  ;;  %v3965_v40 = vmul.f32 %v3262_v5, %v414_v61  ;;  %v3971_v52 = vmul.f32 %v3266_v7, %v414_v61 }
 0x106   : > { %5343 = vst [vmem:[#allocation204_spill] sm:$0xff] %v3951_v48  ;;  %5344 = vst [vmem:[#allocation205_spill] sm:$0xff] %v3954_v51  ;;  %v3974_v51 = vmul.f32 %v3268_v8, %v414_v61  ;;  %v3980_v48 = vmul.f32 %v3253_v55, %v429_v49  ;;  %v3995_v61 = vmul.f32 %v3266_v7, %v429_v49 }
 0x107   : > { %5345 = vst [vmem:[#allocation206_spill] sm:$0xff] %v3957_v50  ;;  %5346 = vst [vmem:[#allocation207_spill] sm:$0xff] %v3962_v39  ;;  %v3977_v50 = vmul.f32 %v3251_v54, %v429_v49  ;;  %v3983_v39 = vmul.f32 %v3255_v56, %v429_v49 }
 0x108   : > { %5347 = vst [vmem:[#allocation208_spill] sm:$0xff] %v3965_v40  ;;  %5348 = vst [vmem:[#allocation209_spill] sm:$0xff] %v3968_v60  ;;  %v3986_v40 = vmul.f32 %v3260_v63, %v429_v49  ;;  %v3989_v60 = vmul.f32 %v3262_v5, %v429_v49 }
 0x109   : > { %5349 = vst [vmem:[#allocation210_spill] sm:$0xff] %v3971_v52  ;;  %5350 = vst [vmem:[#allocation211_spill] sm:$0xff] %v3974_v51  ;;  %v3992_v52 = vmul.f32 %v3264_v6, %v429_v49  ;;  %v4000_v51 = vpop.permute.xlu0 %433 }
 0x10a   : > { %5351 = vst [vmem:[#allocation212_spill] sm:$0xff] %v3977_v50  ;;  %5352 = vst [vmem:[#allocation213_spill] sm:$0xff] %v3980_v48  ;;  %v3998_v50 = vmul.f32 %v3268_v8, %v429_v49  ;;  %v4018_v49 = vmul.f32 %v3262_v5, %v424_v17 }
 0x10b   : > { %5353 = vst [vmem:[#allocation214_spill] sm:$0xff] %v3983_v39  ;;  %5354 = vst [vmem:[#allocation215_spill] sm:$0xff] %v3986_v40  ;;  %v4006_v39 = vmul.f32 %v3251_v54, %v424_v17  ;;  %v4009_v40 = vmul.f32 %v3253_v55, %v424_v17  ;;  %v4027_v54 = vmul.f32 %v3268_v8, %v424_v17  ;;  %v777_v55 = vpop.permute.xlu1 %776 }
 0x10c   : > { %5355 = vst [vmem:[#allocation216_spill] sm:$0xff] %v3989_v60  ;;  %5356 = vst [vmem:[#allocation217_spill] sm:$0xff] %v3992_v52  ;;  %v4012_v60 = vmul.f32 %v3255_v56, %v424_v17  ;;  %v979_v56 = vmul.f32 %v3270_v9, %v777_v55  ;;  %v980_v52 = vmul.f32 %v3278_v13, %v777_v55 }
 0x10d   : > { %5357 = vst [vmem:[#allocation218_spill] sm:$0xff] %v3995_v61  ;;  %5358 = vst [vmem:[#allocation219_spill] sm:$0xff] %v3998_v50  ;;  %v4015_v61 = vmul.f32 %v3260_v63, %v424_v17  ;;  %v4024_v50 = vmul.f32 %v3266_v7, %v424_v17  ;;  %v981_v63 = vmul.f32 %v3280_v14, %v777_v55 }
 0x10e   : > { %5359 = vst [vmem:[#allocation220_spill] sm:$0xff] %v4000_v51  ;;  %5360 = vst [vmem:[#allocation221_spill] sm:$0xff] %v4006_v39  ;;  %v4021_v51 = vmul.f32 %v3264_v6, %v424_v17  ;;  %v982_v5 = vmul.f32 %v3282_v15, %v777_v55  ;;  %v983_v48 = vmul.f32 %v3284_v16, %v777_v55  ;;  %v773_v39 = vpop.permute.xlu0 %772 }
 0x10f   : > { %5361 = vst [vmem:[#allocation222_spill] sm:$0xff] %v4009_v40  ;;  %5362 = vst [vmem:[#allocation223_spill] sm:$0xff] %v4012_v60  ;;  %v984_v6 = vmul.f32 %v3286_v19, %v777_v55  ;;  %v985_v7 = vmul.f32 %v3288_v20, %v777_v55  ;;  %v1235_v17 = vadd.f32 %v979_v56, %v3375_v53 }
 0x110   : > { %5363 = vst [vmem:[#allocation224_spill] sm:$0xff] %v4015_v61  ;;  %5364 = vst [vmem:[#allocation225_spill] sm:$0xff] %v4018_v49  ;;  %v1236_v8 = vadd.f32 %v980_v52, %v3378_v57  ;;  %v1239_v49 = vadd.f32 %v983_v48, %v3387_v62  ;;  %v973_v57 = vmul.f32 %v3280_v14, %v773_v39 }
 0x111   : > { %5365 = vst [vmem:[#allocation226_spill] sm:$0xff] %v4021_v51  ;;  %5366 = vst [vmem:[#allocation227_spill] sm:$0xff] %v4024_v50  ;;  %v986_v50 = vmul.f32 %v3290_v21, %v777_v55  ;;  %v1238_v51 = vadd.f32 %v982_v5, %v3384_v59  ;;  %v1240_v61 = vadd.f32 %v984_v6, %v3390_v0 }
 0x112   : > { %5367 = vst [vmem:[#allocation228_spill] sm:$0xff] %v4027_v54  ;;  %v1237_v54 = vadd.f32 %v981_v63, %v3381_v58  ;;  %v1241_v60 = vadd.f32 %v985_v7, %v3393_v1  ;;  %v1532_v55 = vadd.f32 %v3272_v10, %v1235_v17  ;;  %v1533_v56 = vadd.f32 %v3292_v22, %v1236_v8 }
 0x113   : > { %v1242_v40 = vadd.f32 %v986_v50, %v3396_v2  ;;  %v1535_v63 = vadd.f32 %v3294_v23, %v1238_v51  ;;  %v1536_v53 = vadd.f32 %v3276_v12, %v1239_v49  ;;  %v1537_v5 = vadd.f32 %v3296_v24, %v1240_v61 }
 0x114   : > { %v1534_v52 = vadd.f32 %v3274_v11, %v1237_v54  ;;  %v1538_v48 = vadd.f32 %v3298_v25, %v1241_v60  ;;  %v2818_v7 = vpack.c.bf16 %v1533_v56, %v1532_v55  ;;  %v971_v54 = vmul.f32 %v3270_v9, %v773_v39 }
 0x115   : > { %v1539_v6 = vadd.f32 %v3300_v26, %v1242_v40  ;;  %2007 = vst [vmem:[%s4057_s26 + $0x18] sm:$0xff] %v1535_v63  ;;  %v972_v8 = vmul.f32 %v3278_v13, %v773_v39  ;;  %v2851_v58 = vpack.c.bf16 %v1537_v5, %v1536_v53  ;;  %v974_v62 = vmul.f32 %v3282_v15, %v773_v39 }
 0x116   : > { %2006 = vst [vmem:[%s4057_s26 + $0x10] sm:$0xff] %v1534_v52  ;;  %v975_v0 = vmul.f32 %v3284_v16, %v773_v39  ;;  %1973 = vst [vmem:[%s4066_s30 + $0x8] sm:$0xff] %v2818_v7  ;;  %v976_v1 = vmul.f32 %v3286_v19, %v773_v39  ;;  %v977_v2 = vmul.f32 %v3288_v20, %v773_v39 }
 0x117   : > { %v2852_v59 = vpack.c.bf16 %v1539_v6, %v1538_v48  ;;  %v978_v50 = vmul.f32 %v3290_v21, %v773_v39  ;;  %v1227_v51 = vadd.f32 %v971_v54, %v3327_v35  ;;  %2454 = vst [vmem:[%s4075_s6 + $0x10] sm:$0xff] %v2851_v58  ;;  %v1228_v40 = vadd.f32 %v972_v8, %v3330_v36  ;;  %v781_v39 = vpop.permute.xlu1 %780 }
 0x118   : > { %v1229_v60 = vadd.f32 %v973_v57, %v3333_v37  ;;  %v1230_v61 = vadd.f32 %v974_v62, %v3336_v38  ;;  %v1231_v49 = vadd.f32 %v975_v0, %v3339_v41  ;;  %v1232_v35 = vadd.f32 %v976_v1, %v3342_v42 }
 0x119   : > { %2455 = vst [vmem:[%s4075_s6 + $0x18] sm:$0xff] %v2852_v59  ;;  %v1233_v17 = vadd.f32 %v977_v2, %v3345_v43  ;;  %v1234_v55 = vadd.f32 %v978_v50, %v3348_v44  ;;  %v1524_v56 = vadd.f32 %v3272_v10, %v1227_v51  ;;  %v1525_v52 = vadd.f32 %v3292_v22, %v1228_v40  ;;  %v785_v51 = vpop.permute.xlu0 %784 }
 0x11a   : > { %v1526_v36 = vadd.f32 %v3274_v11, %v1229_v60  ;;  %v1527_v37 = vadd.f32 %v3294_v23, %v1230_v61  ;;  %v1528_v38 = vadd.f32 %v3276_v12, %v1231_v49  ;;  %v1529_v41 = vadd.f32 %v3296_v24, %v1232_v35 }
 0x11b   : > { %v1530_v63 = vadd.f32 %v3298_v25, %v1233_v17  ;;  %v1531_v42 = vadd.f32 %v3300_v26, %v1234_v55  ;;  %v987_v43 = vmul.f32 %v3270_v9, %v781_v39  ;;  %v2817_v44 = vpack.c.bf16 %v1525_v52, %v1524_v56 }
 0x11c   : > { %2004 = vst [vmem:[%s4057_s26] sm:$0xff] %v1526_v36  ;;  %2005 = vst [vmem:[%s4057_s26 + $0x8] sm:$0xff] %v1527_v37  ;;  %v988_v53 = vmul.f32 %v3278_v13, %v781_v39  ;;  %v989_v5 = vmul.f32 %v3280_v14, %v781_v39  ;;  %v990_v48 = vmul.f32 %v3282_v15, %v781_v39 }
 0x11d   : > { %v2849_v6 = vpack.c.bf16 %v1529_v41, %v1528_v38  ;;  %v2850_v7 = vpack.c.bf16 %v1531_v42, %v1530_v63  ;;  %v991_v54 = vmul.f32 %v3284_v16, %v781_v39  ;;  %v992_v8 = vmul.f32 %v3286_v19, %v781_v39  ;;  %1972 = vst [vmem:[%s4066_s30] sm:$0xff] %v2817_v44 }
 0x11e   : > { %v993_v57 = vmul.f32 %v3288_v20, %v781_v39  ;;  %v994_v58 = vmul.f32 %v3290_v21, %v781_v39  ;;  %v1243_v59 = vadd.f32 %v987_v43, %v3303_v27  ;;  %v1244_v62 = vadd.f32 %v988_v53, %v3306_v28  ;;  %v5368_v43 = vld [vmem:[#allocation17_spill] sm:$0xff]  ;;  %v5369_v53 = vld [vmem:[#allocation18_spill] sm:$0xff] }
 0x11f   : > { %2452 = vst [vmem:[%s4075_s6] sm:$0xff] %v2849_v6  ;;  %2453 = vst [vmem:[%s4075_s6 + $0x8] sm:$0xff] %v2850_v7  ;;  %v1245_v0 = vadd.f32 %v989_v5, %v3309_v29  ;;  %v1246_v1 = vadd.f32 %v990_v48, %v3312_v30  ;;  %v1247_v2 = vadd.f32 %v991_v54, %v3315_v31  ;;  %v5370_v48 = vld [vmem:[#allocation19_spill] sm:$0xff]  ;;  %v5371_v7 = vld [vmem:[#allocation20_spill] sm:$0xff] }
 0x120   : > { %v1248_v50 = vadd.f32 %v992_v8, %v3318_v32  ;;  %v1249_v40 = vadd.f32 %v993_v57, %v3321_v33  ;;  %v1250_v60 = vadd.f32 %v994_v58, %v3324_v34  ;;  %v1540_v27 = vadd.f32 %v3272_v10, %v1243_v59  ;;  %v789_v8 = vpop.permute.xlu1 %788  ;;  %v5372_v57 = vld [vmem:[#allocation21_spill] sm:$0xff] }
 0x121   : > { %v1541_v28 = vadd.f32 %v3292_v22, %v1244_v62  ;;  %v1542_v29 = vadd.f32 %v3274_v11, %v1245_v0  ;;  %v1543_v30 = vadd.f32 %v3294_v23, %v1246_v1  ;;  %v1544_v61 = vadd.f32 %v3276_v12, %v1247_v2 }
 0x122   : > { %v1545_v31 = vadd.f32 %v3296_v24, %v1248_v50  ;;  %v1546_v32 = vadd.f32 %v3298_v25, %v1249_v40  ;;  %v1547_v33 = vadd.f32 %v3300_v26, %v1250_v60  ;;  %v995_v34 = vmul.f32 %v3270_v9, %v785_v51 }
 0x123   : > { %v2819_v49 = vpack.c.bf16 %v1541_v28, %v1540_v27  ;;  %2008 = vst [vmem:[%s4057_s26 + $0x20] sm:$0xff] %v1542_v29  ;;  %2009 = vst [vmem:[%s4057_s26 + $0x28] sm:$0xff] %v1543_v30  ;;  %v996_v35 = vmul.f32 %v3278_v13, %v785_v51  ;;  %v997_v17 = vmul.f32 %v3280_v14, %v785_v51 }
 0x124   : > { %v2853_v39 = vpack.c.bf16 %v1545_v31, %v1544_v61  ;;  %v998_v55 = vmul.f32 %v3282_v15, %v785_v51  ;;  %v2854_v56 = vpack.c.bf16 %v1547_v33, %v1546_v32  ;;  %v999_v52 = vmul.f32 %v3284_v16, %v785_v51  ;;  %v5373_v33 = vld [vmem:[#allocation30_spill] sm:$0xff] }
 0x125   : > { %1974 = vst [vmem:[%s4066_s30 + $0x10] sm:$0xff] %v2819_v49  ;;  %v1000_v36 = vmul.f32 %v3286_v19, %v785_v51  ;;  %v1001_v37 = vmul.f32 %v3288_v20, %v785_v51  ;;  %v1002_v38 = vmul.f32 %v3290_v21, %v785_v51  ;;  %v1251_v41 = vadd.f32 %v995_v34, %v3351_v45  ;;  %v5374_v34 = vld [vmem:[#allocation31_spill] sm:$0xff] }
 0x126   : > { %2456 = vst [vmem:[%s4075_s6 + $0x20] sm:$0xff] %v2853_v39  ;;  %v1252_v63 = vadd.f32 %v996_v35, %v3354_v46  ;;  %v1253_v42 = vadd.f32 %v997_v17, %v3357_v47  ;;  %2457 = vst [vmem:[%s4075_s6 + $0x28] sm:$0xff] %v2854_v56  ;;  %v1254_v44 = vadd.f32 %v998_v55, %v5368_v43  ;;  %v5375_v35 = vld [vmem:[#allocation32_spill] sm:$0xff]  ;;  %v5376_v55 = vld [vmem:[#allocation33_spill] sm:$0xff] }
 0x127   : > { %v1255_v5 = vadd.f32 %v999_v52, %v5369_v53  ;;  %v1256_v6 = vadd.f32 %v1000_v36, %v5370_v48  ;;  %v1257_v54 = vadd.f32 %v1001_v37, %v5371_v7  ;;  %v1258_v58 = vadd.f32 %v1002_v38, %v5372_v57  ;;  %v5377_v52 = vld [vmem:[#allocation34_spill] sm:$0xff]  ;;  %v5378_v37 = vld [vmem:[#allocation35_spill] sm:$0xff] }
 0x128   : > { %v1548_v45 = vadd.f32 %v3272_v10, %v1251_v41  ;;  %v1549_v46 = vadd.f32 %v3292_v22, %v1252_v63  ;;  %v1550_v47 = vadd.f32 %v3274_v11, %v1253_v42  ;;  %v1551_v59 = vadd.f32 %v3294_v23, %v1254_v44  ;;  %v5379_v41 = vld [vmem:[#allocation36_spill] sm:$0xff]  ;;  %v5380_v42 = vld [vmem:[#allocation37_spill] sm:$0xff]  ;;  %v793_v44 = vpop.permute.xlu0 %792 }
 0x129   : > { %v1552_v62 = vadd.f32 %v3276_v12, %v1255_v5  ;;  %v1553_v0 = vadd.f32 %v3296_v24, %v1256_v6  ;;  %v1554_v1 = vadd.f32 %v3298_v25, %v1257_v54  ;;  %v1555_v2 = vadd.f32 %v3300_v26, %v1258_v58 }
 0x12a   : > { %v2820_v50 = vpack.c.bf16 %v1549_v46, %v1548_v45  ;;  %2010 = vst [vmem:[%s4057_s26 + $0x30] sm:$0xff] %v1550_v47  ;;  %v1003_v51 = vmul.f32 %v3270_v9, %v789_v8  ;;  %v1004_v40 = vmul.f32 %v3278_v13, %v789_v8  ;;  %2011 = vst [vmem:[%s4057_s26 + $0x38] sm:$0xff] %v1551_v59 }
 0x12b   : > { %v2855_v60 = vpack.c.bf16 %v1553_v0, %v1552_v62  ;;  %v1005_v27 = vmul.f32 %v3280_v14, %v789_v8  ;;  %v1006_v28 = vmul.f32 %v3282_v15, %v789_v8  ;;  %v1007_v29 = vmul.f32 %v3284_v16, %v789_v8 }
 0x12c   : > { %1975 = vst [vmem:[%s4066_s30 + $0x18] sm:$0xff] %v2820_v50  ;;  %v2856_v30 = vpack.c.bf16 %v1555_v2, %v1554_v1  ;;  %v1008_v61 = vmul.f32 %v3286_v19, %v789_v8  ;;  %v1009_v31 = vmul.f32 %v3288_v20, %v789_v8  ;;  %v1010_v32 = vmul.f32 %v3290_v21, %v789_v8 }
 0x12d   : > { %2458 = vst [vmem:[%s4075_s6 + $0x30] sm:$0xff] %v2855_v60  ;;  %v1259_v49 = vadd.f32 %v1003_v51, %v5373_v33  ;;  %v1260_v39 = vadd.f32 %v1004_v40, %v5374_v34  ;;  %v1261_v17 = vadd.f32 %v1005_v27, %v5375_v35  ;;  %v1262_v56 = vadd.f32 %v1006_v28, %v5376_v55  ;;  %v5381_v40 = vld [vmem:[#allocation22_spill] sm:$0xff]  ;;  %v5382_v27 = vld [vmem:[#allocation23_spill] sm:$0xff]  ;;  %v5387_v35 = vld [vmem:[#allocation28_spill] sm:$0xff] }
 0x12e   : > { %2459 = vst [vmem:[%s4075_s6 + $0x38] sm:$0xff] %v2856_v30  ;;  %v1263_v36 = vadd.f32 %v1007_v29, %v5377_v52  ;;  %v1264_v38 = vadd.f32 %v1008_v61, %v5378_v37  ;;  %v1265_v63 = vadd.f32 %v1009_v31, %v5379_v41  ;;  %v1266_v43 = vadd.f32 %v1010_v32, %v5380_v42  ;;  %v5383_v29 = vld [vmem:[#allocation24_spill] sm:$0xff]  ;;  %v5384_v61 = vld [vmem:[#allocation25_spill] sm:$0xff]  ;;  %v5385_v32 = vld [vmem:[#allocation26_spill] sm:$0xff] }
 0x12f   : > { %v1556_v53 = vadd.f32 %v3272_v10, %v1259_v49  ;;  %v1557_v5 = vadd.f32 %v3292_v22, %v1260_v39  ;;  %v1558_v48 = vadd.f32 %v3274_v11, %v1261_v17  ;;  %v1559_v6 = vadd.f32 %v3294_v23, %v1262_v56  ;;  %v797_v49 = vpop.permute.xlu1 %796  ;;  %v5386_v34 = vld [vmem:[#allocation27_spill] sm:$0xff]  ;;  %v5388_v55 = vld [vmem:[#allocation29_spill] sm:$0xff] }
 0x130   : > { %v1560_v7 = vadd.f32 %v3276_v12, %v1263_v36  ;;  %v1561_v54 = vadd.f32 %v3296_v24, %v1264_v38  ;;  %v1562_v8 = vadd.f32 %v3298_v25, %v1265_v63  ;;  %v1563_v57 = vadd.f32 %v3300_v26, %v1266_v43 }
 0x131   : > { %v2821_v58 = vpack.c.bf16 %v1557_v5, %v1556_v53  ;;  %2012 = vst [vmem:[%s4057_s26 + $0x40] sm:$0xff] %v1558_v48  ;;  %2013 = vst [vmem:[%s4057_s26 + $0x48] sm:$0xff] %v1559_v6  ;;  %v1011_v45 = vmul.f32 %v3270_v9, %v793_v44  ;;  %v1012_v46 = vmul.f32 %v3278_v13, %v793_v44 }
 0x132   : > { %v1013_v47 = vmul.f32 %v3280_v14, %v793_v44  ;;  %v2857_v59 = vpack.c.bf16 %v1561_v54, %v1560_v7  ;;  %v2858_v62 = vpack.c.bf16 %v1563_v57, %v1562_v8  ;;  %v1014_v0 = vmul.f32 %v3282_v15, %v793_v44 }
 0x133   : > { %v1015_v1 = vmul.f32 %v3284_v16, %v793_v44  ;;  %1976 = vst [vmem:[%s4066_s30 + $0x20] sm:$0xff] %v2821_v58  ;;  %v1016_v2 = vmul.f32 %v3286_v19, %v793_v44  ;;  %v1017_v50 = vmul.f32 %v3288_v20, %v793_v44  ;;  %v1018_v51 = vmul.f32 %v3290_v21, %v793_v44 }
 0x134   : > { %v1267_v60 = vadd.f32 %v1011_v45, %v5381_v40  ;;  %2460 = vst [vmem:[%s4075_s6 + $0x40] sm:$0xff] %v2857_v59  ;;  %2461 = vst [vmem:[%s4075_s6 + $0x48] sm:$0xff] %v2858_v62  ;;  %v1268_v28 = vadd.f32 %v1012_v46, %v5382_v27  ;;  %v1269_v30 = vadd.f32 %v1013_v47, %v5383_v29  ;;  %v5389_v46 = vld [vmem:[#allocation46_spill] sm:$0xff]  ;;  %v5390_v59 = vld [vmem:[#allocation47_spill] sm:$0xff] }
 0x135   : > { %v1270_v31 = vadd.f32 %v1014_v0, %v5384_v61  ;;  %v1271_v33 = vadd.f32 %v1015_v1, %v5385_v32  ;;  %v1272_v39 = vadd.f32 %v1016_v2, %v5386_v34  ;;  %v1273_v17 = vadd.f32 %v1017_v50, %v5387_v35  ;;  %v5391_v0 = vld [vmem:[#allocation48_spill] sm:$0xff]  ;;  %v5392_v2 = vld [vmem:[#allocation49_spill] sm:$0xff] }
 0x136   : > { %v1274_v56 = vadd.f32 %v1018_v51, %v5388_v55  ;;  %v1564_v52 = vadd.f32 %v3272_v10, %v1267_v60  ;;  %v1565_v36 = vadd.f32 %v3292_v22, %v1268_v28  ;;  %v1566_v37 = vadd.f32 %v3274_v11, %v1269_v30  ;;  %v5393_v51 = vld [vmem:[#allocation50_spill] sm:$0xff]  ;;  %v5394_v60 = vld [vmem:[#allocation51_spill] sm:$0xff]  ;;  %v801_v28 = vpop.permute.xlu0 %800  ;;  %v5395_v29 = vld [vmem:[#allocation52_spill] sm:$0xff] }
 0x137   : > { %v1567_v38 = vadd.f32 %v3294_v23, %v1270_v31  ;;  %v1568_v41 = vadd.f32 %v3276_v12, %v1271_v33  ;;  %v1569_v63 = vadd.f32 %v3296_v24, %v1272_v39  ;;  %v1570_v42 = vadd.f32 %v3298_v25, %v1273_v17  ;;  %v5396_v61 = vld [vmem:[#allocation53_spill] sm:$0xff] }
 0x138   : > { %v1571_v43 = vadd.f32 %v3300_v26, %v1274_v56  ;;  %v1019_v44 = vmul.f32 %v3270_v9, %v797_v49  ;;  %v2822_v53 = vpack.c.bf16 %v1565_v36, %v1564_v52  ;;  %2014 = vst [vmem:[%s4057_s26 + $0x50] sm:$0xff] %v1566_v37  ;;  %v1020_v5 = vmul.f32 %v3278_v13, %v797_v49 }
 0x139   : > { %2015 = vst [vmem:[%s4057_s26 + $0x58] sm:$0xff] %v1567_v38  ;;  %v1021_v48 = vmul.f32 %v3280_v14, %v797_v49  ;;  %v1022_v6 = vmul.f32 %v3282_v15, %v797_v49  ;;  %v2859_v7 = vpack.c.bf16 %v1569_v63, %v1568_v41  ;;  %v1023_v8 = vmul.f32 %v3284_v16, %v797_v49 }
 0x13a   : > { %v2860_v54 = vpack.c.bf16 %v1571_v43, %v1570_v42  ;;  %v1024_v57 = vmul.f32 %v3286_v19, %v797_v49  ;;  %1977 = vst [vmem:[%s4066_s30 + $0x28] sm:$0xff] %v2822_v53  ;;  %v1025_v58 = vmul.f32 %v3288_v20, %v797_v49  ;;  %v1026_v45 = vmul.f32 %v3290_v21, %v797_v49 }
 0x13b   : > { %v1275_v47 = vadd.f32 %v1019_v44, %v5389_v46  ;;  %v1276_v62 = vadd.f32 %v1020_v5, %v5390_v59  ;;  %2462 = vst [vmem:[%s4075_s6 + $0x50] sm:$0xff] %v2859_v7  ;;  %v1277_v1 = vadd.f32 %v1021_v48, %v5391_v0  ;;  %v1278_v50 = vadd.f32 %v1022_v6, %v5392_v2  ;;  %v5397_v5 = vld [vmem:[#allocation38_spill] sm:$0xff]  ;;  %v5398_v6 = vld [vmem:[#allocation39_spill] sm:$0xff]  ;;  %v5404_v2 = vld [vmem:[#allocation45_spill] sm:$0xff] }
 0x13c   : > { %2463 = vst [vmem:[%s4075_s6 + $0x58] sm:$0xff] %v2860_v54  ;;  %v1279_v40 = vadd.f32 %v1023_v8, %v5393_v51  ;;  %v1280_v27 = vadd.f32 %v1024_v57, %v5394_v60  ;;  %v1281_v30 = vadd.f32 %v1025_v58, %v5395_v29  ;;  %v1282_v31 = vadd.f32 %v1026_v45, %v5396_v61  ;;  %v5399_v54 = vld [vmem:[#allocation40_spill] sm:$0xff]  ;;  %v5400_v57 = vld [vmem:[#allocation41_spill] sm:$0xff]  ;;  %v5401_v45 = vld [vmem:[#allocation42_spill] sm:$0xff] }
 0x13d   : > { %v1572_v32 = vadd.f32 %v3272_v10, %v1275_v47  ;;  %v1573_v33 = vadd.f32 %v3292_v22, %v1276_v62  ;;  %v1574_v49 = vadd.f32 %v3274_v11, %v1277_v1  ;;  %v1575_v34 = vadd.f32 %v3294_v23, %v1278_v50  ;;  %v5402_v47 = vld [vmem:[#allocation43_spill] sm:$0xff]  ;;  %v5403_v62 = vld [vmem:[#allocation44_spill] sm:$0xff]  ;;  %v805_v1 = vpop.permute.xlu1 %804 }
 0x13e   : > { %v1576_v39 = vadd.f32 %v3276_v12, %v1279_v40  ;;  %v1577_v35 = vadd.f32 %v3296_v24, %v1280_v27  ;;  %v1578_v17 = vadd.f32 %v3298_v25, %v1281_v30  ;;  %v1579_v55 = vadd.f32 %v3300_v26, %v1282_v31 }
 0x13f   : > { %v2823_v56 = vpack.c.bf16 %v1573_v33, %v1572_v32  ;;  %v1027_v52 = vmul.f32 %v3270_v9, %v801_v28  ;;  %2016 = vst [vmem:[%s4057_s26 + $0x60] sm:$0xff] %v1574_v49  ;;  %2017 = vst [vmem:[%s4057_s26 + $0x68] sm:$0xff] %v1575_v34  ;;  %v1028_v37 = vmul.f32 %v3278_v13, %v801_v28 }
 0x140   : > { %v2861_v36 = vpack.c.bf16 %v1577_v35, %v1576_v39  ;;  %v1029_v38 = vmul.f32 %v3280_v14, %v801_v28  ;;  %v1030_v41 = vmul.f32 %v3282_v15, %v801_v28  ;;  %v2862_v63 = vpack.c.bf16 %v1579_v55, %v1578_v17 }
 0x141   : > { %1978 = vst [vmem:[%s4066_s30 + $0x30] sm:$0xff] %v2823_v56  ;;  %v1031_v42 = vmul.f32 %v3284_v16, %v801_v28  ;;  %v1032_v43 = vmul.f32 %v3286_v19, %v801_v28  ;;  %v1033_v44 = vmul.f32 %v3288_v20, %v801_v28  ;;  %v1034_v53 = vmul.f32 %v3290_v21, %v801_v28 }
 0x142   : > { %2464 = vst [vmem:[%s4075_s6 + $0x60] sm:$0xff] %v2861_v36  ;;  %v1283_v48 = vadd.f32 %v1027_v52, %v5397_v5  ;;  %v1284_v7 = vadd.f32 %v1028_v37, %v5398_v6  ;;  %v1285_v8 = vadd.f32 %v1029_v38, %v5399_v54  ;;  %2465 = vst [vmem:[%s4075_s6 + $0x68] sm:$0xff] %v2862_v63  ;;  %v5405_v36 = vld [vmem:[#allocation62_spill] sm:$0xff]  ;;  %v5406_v38 = vld [vmem:[#allocation63_spill] sm:$0xff] }
 0x143   : > { %v1286_v58 = vadd.f32 %v1030_v41, %v5400_v57  ;;  %v1287_v46 = vadd.f32 %v1031_v42, %v5401_v45  ;;  %v1288_v59 = vadd.f32 %v1032_v43, %v5402_v47  ;;  %v1289_v0 = vadd.f32 %v1033_v44, %v5403_v62  ;;  %v5407_v63 = vld [vmem:[#allocation64_spill] sm:$0xff]  ;;  %v5408_v43 = vld [vmem:[#allocation65_spill] sm:$0xff] }
 0x144   : > { %v1290_v50 = vadd.f32 %v1034_v53, %v5404_v2  ;;  %v1580_v51 = vadd.f32 %v3272_v10, %v1283_v48  ;;  %v1581_v40 = vadd.f32 %v3292_v22, %v1284_v7  ;;  %v1582_v60 = vadd.f32 %v3274_v11, %v1285_v8  ;;  %v5409_v53 = vld [vmem:[#allocation66_spill] sm:$0xff]  ;;  %v5410_v48 = vld [vmem:[#allocation67_spill] sm:$0xff]  ;;  %v5411_v7 = vld [vmem:[#allocation68_spill] sm:$0xff] }
 0x145   : > { %v1583_v27 = vadd.f32 %v3294_v23, %v1286_v58  ;;  %v1584_v28 = vadd.f32 %v3276_v12, %v1287_v46  ;;  %v1585_v29 = vadd.f32 %v3296_v24, %v1288_v59  ;;  %v1586_v30 = vadd.f32 %v3298_v25, %v1289_v0  ;;  %v5412_v8 = vld [vmem:[#allocation69_spill] sm:$0xff]  ;;  %v809_v58 = vpop.permute.xlu0 %808 }
 0x146   : > { %v1587_v61 = vadd.f32 %v3300_v26, %v1290_v50  ;;  %v2824_v31 = vpack.c.bf16 %v1581_v40, %v1580_v51  ;;  %2018 = vst [vmem:[%s4057_s26 + $0x70] sm:$0xff] %v1582_v60  ;;  %v1035_v32 = vmul.f32 %v3270_v9, %v805_v1  ;;  %v1036_v33 = vmul.f32 %v3278_v13, %v805_v1 }
 0x147   : > { %2019 = vst [vmem:[%s4057_s26 + $0x78] sm:$0xff] %v1583_v27  ;;  %v2863_v49 = vpack.c.bf16 %v1585_v29, %v1584_v28  ;;  %v1037_v34 = vmul.f32 %v3280_v14, %v805_v1  ;;  %v1038_v39 = vmul.f32 %v3282_v15, %v805_v1  ;;  %v1039_v35 = vmul.f32 %v3284_v16, %v805_v1 }
 0x148   : > { %1979 = vst [vmem:[%s4066_s30 + $0x38] sm:$0xff] %v2824_v31  ;;  %v2864_v17 = vpack.c.bf16 %v1587_v61, %v1586_v30  ;;  %v1040_v55 = vmul.f32 %v3286_v19, %v805_v1  ;;  %v1041_v56 = vmul.f32 %v3288_v20, %v805_v1  ;;  %v1042_v52 = vmul.f32 %v3290_v21, %v805_v1 }
 0x149   : > { %2466 = vst [vmem:[%s4075_s6 + $0x70] sm:$0xff] %v2863_v49  ;;  %v1291_v37 = vadd.f32 %v1035_v32, %v5405_v36  ;;  %v1292_v41 = vadd.f32 %v1036_v33, %v5406_v38  ;;  %v1293_v42 = vadd.f32 %v1037_v34, %v5407_v63  ;;  %v1294_v44 = vadd.f32 %v1038_v39, %v5408_v43  ;;  %v5413_v33 = vld [vmem:[#allocation54_spill] sm:$0xff]  ;;  %v5414_v34 = vld [vmem:[#allocation55_spill] sm:$0xff]  ;;  %v5419_v63 = vld [vmem:[#allocation60_spill] sm:$0xff] }
 0x14a   : > { %2467 = vst [vmem:[%s4075_s6 + $0x78] sm:$0xff] %v2864_v17  ;;  %v1295_v5 = vadd.f32 %v1039_v35, %v5409_v53  ;;  %v1296_v6 = vadd.f32 %v1040_v55, %v5410_v48  ;;  %v1297_v54 = vadd.f32 %v1041_v56, %v5411_v7  ;;  %v1298_v57 = vadd.f32 %v1042_v52, %v5412_v8  ;;  %v5415_v35 = vld [vmem:[#allocation56_spill] sm:$0xff]  ;;  %v5416_v55 = vld [vmem:[#allocation57_spill] sm:$0xff]  ;;  %v5417_v52 = vld [vmem:[#allocation58_spill] sm:$0xff] }
 0x14b   : > { %v1588_v45 = vadd.f32 %v3272_v10, %v1291_v37  ;;  %v1589_v46 = vadd.f32 %v3292_v22, %v1292_v41  ;;  %v1590_v47 = vadd.f32 %v3274_v11, %v1293_v42  ;;  %v1591_v59 = vadd.f32 %v3294_v23, %v1294_v44  ;;  %v813_v37 = vpop.permute.xlu1 %812  ;;  %v5418_v38 = vld [vmem:[#allocation59_spill] sm:$0xff]  ;;  %v5420_v43 = vld [vmem:[#allocation61_spill] sm:$0xff] }
 0x14c   : > { %v1592_v62 = vadd.f32 %v3276_v12, %v1295_v5  ;;  %v1593_v0 = vadd.f32 %v3296_v24, %v1296_v6  ;;  %v1594_v1 = vadd.f32 %v3298_v25, %v1297_v54  ;;  %v1595_v2 = vadd.f32 %v3300_v26, %v1298_v57 }
 0x14d   : > { %v2825_v50 = vpack.c.bf16 %v1589_v46, %v1588_v45  ;;  %2020 = vst [vmem:[%s4057_s26 + $0x80] sm:$0xff] %v1590_v47  ;;  %2021 = vst [vmem:[%s4057_s26 + $0x88] sm:$0xff] %v1591_v59  ;;  %v1043_v51 = vmul.f32 %v3270_v9, %v809_v58  ;;  %v1044_v40 = vmul.f32 %v3278_v13, %v809_v58 }
 0x14e   : > { %v1045_v60 = vmul.f32 %v3280_v14, %v809_v58  ;;  %v2865_v27 = vpack.c.bf16 %v1593_v0, %v1592_v62  ;;  %v2866_v28 = vpack.c.bf16 %v1595_v2, %v1594_v1  ;;  %v1046_v29 = vmul.f32 %v3282_v15, %v809_v58 }
 0x14f   : > { %v1047_v30 = vmul.f32 %v3284_v16, %v809_v58  ;;  %1980 = vst [vmem:[%s4066_s30 + $0x40] sm:$0xff] %v2825_v50  ;;  %v1048_v61 = vmul.f32 %v3286_v19, %v809_v58  ;;  %v1049_v31 = vmul.f32 %v3288_v20, %v809_v58  ;;  %v1050_v32 = vmul.f32 %v3290_v21, %v809_v58 }
 0x150   : > { %v1299_v49 = vadd.f32 %v1043_v51, %v5413_v33  ;;  %2468 = vst [vmem:[%s4075_s6 + $0x80] sm:$0xff] %v2865_v27  ;;  %2469 = vst [vmem:[%s4075_s6 + $0x88] sm:$0xff] %v2866_v28  ;;  %v1300_v39 = vadd.f32 %v1044_v40, %v5414_v34  ;;  %v1301_v17 = vadd.f32 %v1045_v60, %v5415_v35  ;;  %v5421_v40 = vld [vmem:[#allocation78_spill] sm:$0xff]  ;;  %v5422_v27 = vld [vmem:[#allocation79_spill] sm:$0xff] }
 0x151   : > { %v1302_v56 = vadd.f32 %v1046_v29, %v5416_v55  ;;  %v1303_v36 = vadd.f32 %v1047_v30, %v5417_v52  ;;  %v1304_v41 = vadd.f32 %v1048_v61, %v5418_v38  ;;  %v1305_v42 = vadd.f32 %v1049_v31, %v5419_v63  ;;  %v5423_v29 = vld [vmem:[#allocation80_spill] sm:$0xff]  ;;  %v5424_v61 = vld [vmem:[#allocation81_spill] sm:$0xff] }
 0x152   : > { %v1306_v44 = vadd.f32 %v1050_v32, %v5420_v43  ;;  %v1596_v53 = vadd.f32 %v3272_v10, %v1299_v49  ;;  %v1597_v5 = vadd.f32 %v3292_v22, %v1300_v39  ;;  %v1598_v48 = vadd.f32 %v3274_v11, %v1301_v17  ;;  %v5425_v32 = vld [vmem:[#allocation82_spill] sm:$0xff]  ;;  %v5426_v49 = vld [vmem:[#allocation83_spill] sm:$0xff]  ;;  %v817_v39 = vpop.permute.xlu0 %816  ;;  %v5427_v35 = vld [vmem:[#allocation84_spill] sm:$0xff] }
 0x153   : > { %v1599_v6 = vadd.f32 %v3294_v23, %v1302_v56  ;;  %v1600_v7 = vadd.f32 %v3276_v12, %v1303_v36  ;;  %v1601_v54 = vadd.f32 %v3296_v24, %v1304_v41  ;;  %v1602_v8 = vadd.f32 %v3298_v25, %v1305_v42  ;;  %v5428_v55 = vld [vmem:[#allocation85_spill] sm:$0xff] }
 0x154   : > { %v1603_v57 = vadd.f32 %v3300_v26, %v1306_v44  ;;  %v1051_v58 = vmul.f32 %v3270_v9, %v813_v37  ;;  %v2826_v45 = vpack.c.bf16 %v1597_v5, %v1596_v53  ;;  %2022 = vst [vmem:[%s4057_s26 + $0x90] sm:$0xff] %v1598_v48  ;;  %v1052_v46 = vmul.f32 %v3278_v13, %v813_v37 }
 0x155   : > { %2023 = vst [vmem:[%s4057_s26 + $0x98] sm:$0xff] %v1599_v6  ;;  %v1053_v47 = vmul.f32 %v3280_v14, %v813_v37  ;;  %v1054_v59 = vmul.f32 %v3282_v15, %v813_v37  ;;  %v2867_v62 = vpack.c.bf16 %v1601_v54, %v1600_v7  ;;  %v1055_v1 = vmul.f32 %v3284_v16, %v813_v37 }
 0x156   : > { %v2868_v0 = vpack.c.bf16 %v1603_v57, %v1602_v8  ;;  %v1056_v2 = vmul.f32 %v3286_v19, %v813_v37  ;;  %1981 = vst [vmem:[%s4066_s30 + $0x48] sm:$0xff] %v2826_v45  ;;  %v1057_v50 = vmul.f32 %v3288_v20, %v813_v37  ;;  %v1058_v51 = vmul.f32 %v3290_v21, %v813_v37 }
 0x157   : > { %v1307_v60 = vadd.f32 %v1051_v58, %v5421_v40  ;;  %v1308_v28 = vadd.f32 %v1052_v46, %v5422_v27  ;;  %2470 = vst [vmem:[%s4075_s6 + $0x90] sm:$0xff] %v2867_v62  ;;  %v1309_v30 = vadd.f32 %v1053_v47, %v5423_v29  ;;  %v1310_v31 = vadd.f32 %v1054_v59, %v5424_v61  ;;  %v5429_v46 = vld [vmem:[#allocation70_spill] sm:$0xff]  ;;  %v5430_v59 = vld [vmem:[#allocation71_spill] sm:$0xff]  ;;  %v5436_v61 = vld [vmem:[#allocation77_spill] sm:$0xff] }
 0x158   : > { %2471 = vst [vmem:[%s4075_s6 + $0x98] sm:$0xff] %v2868_v0  ;;  %v1311_v33 = vadd.f32 %v1055_v1, %v5425_v32  ;;  %v1312_v34 = vadd.f32 %v1056_v2, %v5426_v49  ;;  %v1313_v17 = vadd.f32 %v1057_v50, %v5427_v35  ;;  %v1314_v56 = vadd.f32 %v1058_v51, %v5428_v55  ;;  %v5431_v0 = vld [vmem:[#allocation72_spill] sm:$0xff]  ;;  %v5432_v2 = vld [vmem:[#allocation73_spill] sm:$0xff]  ;;  %v5433_v51 = vld [vmem:[#allocation74_spill] sm:$0xff] }
 0x159   : > { %v1604_v52 = vadd.f32 %v3272_v10, %v1307_v60  ;;  %v1605_v36 = vadd.f32 %v3292_v22, %v1308_v28  ;;  %v1606_v37 = vadd.f32 %v3274_v11, %v1309_v30  ;;  %v1607_v38 = vadd.f32 %v3294_v23, %v1310_v31  ;;  %v5434_v60 = vld [vmem:[#allocation75_spill] sm:$0xff]  ;;  %v5435_v28 = vld [vmem:[#allocation76_spill] sm:$0xff]  ;;  %v821_v30 = vpop.permute.xlu1 %820 }
 0x15a   : > { %v1608_v41 = vadd.f32 %v3276_v12, %v1311_v33  ;;  %v1609_v63 = vadd.f32 %v3296_v24, %v1312_v34  ;;  %v1610_v42 = vadd.f32 %v3298_v25, %v1313_v17  ;;  %v1611_v43 = vadd.f32 %v3300_v26, %v1314_v56 }
 0x15b   : > { %v2827_v44 = vpack.c.bf16 %v1605_v36, %v1604_v52  ;;  %v1059_v53 = vmul.f32 %v3270_v9, %v817_v39  ;;  %2024 = vst [vmem:[%s4057_s26 + $0xa0] sm:$0xff] %v1606_v37  ;;  %2025 = vst [vmem:[%s4057_s26 + $0xa8] sm:$0xff] %v1607_v38  ;;  %v1060_v48 = vmul.f32 %v3278_v13, %v817_v39 }
 0x15c   : > { %v2869_v5 = vpack.c.bf16 %v1609_v63, %v1608_v41  ;;  %v1061_v6 = vmul.f32 %v3280_v14, %v817_v39  ;;  %v1062_v7 = vmul.f32 %v3282_v15, %v817_v39  ;;  %v2870_v54 = vpack.c.bf16 %v1611_v43, %v1610_v42 }
 0x15d   : > { %1982 = vst [vmem:[%s4066_s30 + $0x50] sm:$0xff] %v2827_v44  ;;  %v1063_v8 = vmul.f32 %v3284_v16, %v817_v39  ;;  %v1064_v57 = vmul.f32 %v3286_v19, %v817_v39  ;;  %v1065_v58 = vmul.f32 %v3288_v20, %v817_v39  ;;  %v1066_v45 = vmul.f32 %v3290_v21, %v817_v39 }
 0x15e   : > { %2472 = vst [vmem:[%s4075_s6 + $0xa0] sm:$0xff] %v2869_v5  ;;  %v1315_v47 = vadd.f32 %v1059_v53, %v5429_v46  ;;  %v1316_v62 = vadd.f32 %v1060_v48, %v5430_v59  ;;  %v1317_v1 = vadd.f32 %v1061_v6, %v5431_v0  ;;  %2473 = vst [vmem:[%s4075_s6 + $0xa8] sm:$0xff] %v2870_v54  ;;  %v5437_v5 = vld [vmem:[#allocation94_spill] sm:$0xff]  ;;  %v5438_v6 = vld [vmem:[#allocation95_spill] sm:$0xff] }
 0x15f   : > { %v1318_v50 = vadd.f32 %v1062_v7, %v5432_v2  ;;  %v1319_v40 = vadd.f32 %v1063_v8, %v5433_v51  ;;  %v1320_v27 = vadd.f32 %v1064_v57, %v5434_v60  ;;  %v1321_v29 = vadd.f32 %v1065_v58, %v5435_v28  ;;  %v5439_v54 = vld [vmem:[#allocation96_spill] sm:$0xff]  ;;  %v5440_v57 = vld [vmem:[#allocation97_spill] sm:$0xff] }
 0x160   : > { %v1322_v31 = vadd.f32 %v1066_v45, %v5436_v61  ;;  %v1612_v32 = vadd.f32 %v3272_v10, %v1315_v47  ;;  %v1613_v33 = vadd.f32 %v3292_v22, %v1316_v62  ;;  %v1614_v49 = vadd.f32 %v3274_v11, %v1317_v1  ;;  %v5441_v45 = vld [vmem:[#allocation98_spill] sm:$0xff]  ;;  %v5442_v47 = vld [vmem:[#allocation99_spill] sm:$0xff]  ;;  %v5443_v62 = vld [vmem:[#allocation100_spill] sm:$0xff] }
 0x161   : > { %v1615_v34 = vadd.f32 %v3294_v23, %v1318_v50  ;;  %v1616_v39 = vadd.f32 %v3276_v12, %v1319_v40  ;;  %v1617_v35 = vadd.f32 %v3296_v24, %v1320_v27  ;;  %v1618_v17 = vadd.f32 %v3298_v25, %v1321_v29  ;;  %v5444_v1 = vld [vmem:[#allocation101_spill] sm:$0xff]  ;;  %v825_v50 = vpop.permute.xlu0 %824 }
 0x162   : > { %v1619_v55 = vadd.f32 %v3300_v26, %v1322_v31  ;;  %v2828_v56 = vpack.c.bf16 %v1613_v33, %v1612_v32  ;;  %2026 = vst [vmem:[%s4057_s26 + $0xb0] sm:$0xff] %v1614_v49  ;;  %v1067_v52 = vmul.f32 %v3270_v9, %v821_v30  ;;  %v1068_v36 = vmul.f32 %v3278_v13, %v821_v30 }
 0x163   : > { %2027 = vst [vmem:[%s4057_s26 + $0xb8] sm:$0xff] %v1615_v34  ;;  %v2871_v37 = vpack.c.bf16 %v1617_v35, %v1616_v39  ;;  %v1069_v38 = vmul.f32 %v3280_v14, %v821_v30  ;;  %v1070_v41 = vmul.f32 %v3282_v15, %v821_v30  ;;  %v1071_v63 = vmul.f32 %v3284_v16, %v821_v30 }
 0x164   : > { %1983 = vst [vmem:[%s4066_s30 + $0x58] sm:$0xff] %v2828_v56  ;;  %v2872_v42 = vpack.c.bf16 %v1619_v55, %v1618_v17  ;;  %v1072_v43 = vmul.f32 %v3286_v19, %v821_v30  ;;  %v1073_v44 = vmul.f32 %v3288_v20, %v821_v30  ;;  %v1074_v53 = vmul.f32 %v3290_v21, %v821_v30 }
 0x165   : > { %2474 = vst [vmem:[%s4075_s6 + $0xb0] sm:$0xff] %v2871_v37  ;;  %v1323_v48 = vadd.f32 %v1067_v52, %v5437_v5  ;;  %v1324_v7 = vadd.f32 %v1068_v36, %v5438_v6  ;;  %v1325_v8 = vadd.f32 %v1069_v38, %v5439_v54  ;;  %v1326_v58 = vadd.f32 %v1070_v41, %v5440_v57  ;;  %v5445_v36 = vld [vmem:[#allocation86_spill] sm:$0xff]  ;;  %v5446_v38 = vld [vmem:[#allocation87_spill] sm:$0xff]  ;;  %v5451_v54 = vld [vmem:[#allocation92_spill] sm:$0xff] }
 0x166   : > { %2475 = vst [vmem:[%s4075_s6 + $0xb8] sm:$0xff] %v2872_v42  ;;  %v1327_v46 = vadd.f32 %v1071_v63, %v5441_v45  ;;  %v1328_v59 = vadd.f32 %v1072_v43, %v5442_v47  ;;  %v1329_v0 = vadd.f32 %v1073_v44, %v5443_v62  ;;  %v1330_v2 = vadd.f32 %v1074_v53, %v5444_v1  ;;  %v5447_v63 = vld [vmem:[#allocation88_spill] sm:$0xff]  ;;  %v5448_v43 = vld [vmem:[#allocation89_spill] sm:$0xff]  ;;  %v5449_v53 = vld [vmem:[#allocation90_spill] sm:$0xff] }
 0x167   : > { %v1620_v51 = vadd.f32 %v3272_v10, %v1323_v48  ;;  %v1621_v40 = vadd.f32 %v3292_v22, %v1324_v7  ;;  %v1622_v60 = vadd.f32 %v3274_v11, %v1325_v8  ;;  %v1623_v27 = vadd.f32 %v3294_v23, %v1326_v58  ;;  %v829_v48 = vpop.permute.xlu1 %828  ;;  %v5450_v6 = vld [vmem:[#allocation91_spill] sm:$0xff]  ;;  %v5452_v57 = vld [vmem:[#allocation93_spill] sm:$0xff] }
 0x168   : > { %v1624_v28 = vadd.f32 %v3276_v12, %v1327_v46  ;;  %v1625_v29 = vadd.f32 %v3296_v24, %v1328_v59  ;;  %v1626_v30 = vadd.f32 %v3298_v25, %v1329_v0  ;;  %v1627_v61 = vadd.f32 %v3300_v26, %v1330_v2 }
 0x169   : > { %v2829_v31 = vpack.c.bf16 %v1621_v40, %v1620_v51  ;;  %2028 = vst [vmem:[%s4057_s26 + $0xc0] sm:$0xff] %v1622_v60  ;;  %2029 = vst [vmem:[%s4057_s26 + $0xc8] sm:$0xff] %v1623_v27  ;;  %v1075_v32 = vmul.f32 %v3270_v9, %v825_v50  ;;  %v1076_v33 = vmul.f32 %v3278_v13, %v825_v50 }
 0x16a   : > { %v1077_v49 = vmul.f32 %v3280_v14, %v825_v50  ;;  %v2873_v34 = vpack.c.bf16 %v1625_v29, %v1624_v28  ;;  %v2874_v39 = vpack.c.bf16 %v1627_v61, %v1626_v30  ;;  %v1078_v35 = vmul.f32 %v3282_v15, %v825_v50 }
 0x16b   : > { %v1079_v17 = vmul.f32 %v3284_v16, %v825_v50  ;;  %1984 = vst [vmem:[%s4066_s30 + $0x60] sm:$0xff] %v2829_v31  ;;  %v1080_v55 = vmul.f32 %v3286_v19, %v825_v50  ;;  %v1081_v56 = vmul.f32 %v3288_v20, %v825_v50  ;;  %v1082_v52 = vmul.f32 %v3290_v21, %v825_v50 }
 0x16c   : > { %v1331_v37 = vadd.f32 %v1075_v32, %v5445_v36  ;;  %2476 = vst [vmem:[%s4075_s6 + $0xc0] sm:$0xff] %v2873_v34  ;;  %2477 = vst [vmem:[%s4075_s6 + $0xc8] sm:$0xff] %v2874_v39  ;;  %v1332_v41 = vadd.f32 %v1076_v33, %v5446_v38  ;;  %v1333_v42 = vadd.f32 %v1077_v49, %v5447_v63  ;;  %v5453_v33 = vld [vmem:[#allocation110_spill] sm:$0xff]  ;;  %v5454_v34 = vld [vmem:[#allocation111_spill] sm:$0xff] }
 0x16d   : > { %v1334_v44 = vadd.f32 %v1078_v35, %v5448_v43  ;;  %v1335_v5 = vadd.f32 %v1079_v17, %v5449_v53  ;;  %v1336_v7 = vadd.f32 %v1080_v55, %v5450_v6  ;;  %v1337_v8 = vadd.f32 %v1081_v56, %v5451_v54  ;;  %v5455_v35 = vld [vmem:[#allocation112_spill] sm:$0xff]  ;;  %v5456_v55 = vld [vmem:[#allocation113_spill] sm:$0xff] }
 0x16e   : > { %v1338_v58 = vadd.f32 %v1082_v52, %v5452_v57  ;;  %v1628_v45 = vadd.f32 %v3272_v10, %v1331_v37  ;;  %v1629_v46 = vadd.f32 %v3292_v22, %v1332_v41  ;;  %v1630_v47 = vadd.f32 %v3274_v11, %v1333_v42  ;;  %v5457_v52 = vld [vmem:[#allocation114_spill] sm:$0xff]  ;;  %v5458_v37 = vld [vmem:[#allocation115_spill] sm:$0xff]  ;;  %v833_v41 = vpop.permute.xlu0 %832  ;;  %v5459_v63 = vld [vmem:[#allocation116_spill] sm:$0xff] }
 0x16f   : > { %v1631_v59 = vadd.f32 %v3294_v23, %v1334_v44  ;;  %v1632_v62 = vadd.f32 %v3276_v12, %v1335_v5  ;;  %v1633_v0 = vadd.f32 %v3296_v24, %v1336_v7  ;;  %v1634_v1 = vadd.f32 %v3298_v25, %v1337_v8  ;;  %v5460_v43 = vld [vmem:[#allocation117_spill] sm:$0xff] }
 0x170   : > { %v1635_v2 = vadd.f32 %v3300_v26, %v1338_v58  ;;  %v1083_v50 = vmul.f32 %v3270_v9, %v829_v48  ;;  %v2830_v51 = vpack.c.bf16 %v1629_v46, %v1628_v45  ;;  %2030 = vst [vmem:[%s4057_s26 + $0xd0] sm:$0xff] %v1630_v47  ;;  %v1084_v40 = vmul.f32 %v3278_v13, %v829_v48 }
 0x171   : > { %2031 = vst [vmem:[%s4057_s26 + $0xd8] sm:$0xff] %v1631_v59  ;;  %v1085_v60 = vmul.f32 %v3280_v14, %v829_v48  ;;  %v1086_v27 = vmul.f32 %v3282_v15, %v829_v48  ;;  %v2875_v28 = vpack.c.bf16 %v1633_v0, %v1632_v62  ;;  %v1087_v30 = vmul.f32 %v3284_v16, %v829_v48 }
 0x172   : > { %v2876_v29 = vpack.c.bf16 %v1635_v2, %v1634_v1  ;;  %v1088_v61 = vmul.f32 %v3286_v19, %v829_v48  ;;  %1985 = vst [vmem:[%s4066_s30 + $0x68] sm:$0xff] %v2830_v51  ;;  %v1089_v31 = vmul.f32 %v3288_v20, %v829_v48  ;;  %v1090_v32 = vmul.f32 %v3290_v21, %v829_v48 }
 0x173   : > { %v1339_v49 = vadd.f32 %v1083_v50, %v5453_v33  ;;  %v1340_v39 = vadd.f32 %v1084_v40, %v5454_v34  ;;  %2478 = vst [vmem:[%s4075_s6 + $0xd0] sm:$0xff] %v2875_v28  ;;  %v1341_v17 = vadd.f32 %v1085_v60, %v5455_v35  ;;  %v1342_v56 = vadd.f32 %v1086_v27, %v5456_v55  ;;  %v5461_v40 = vld [vmem:[#allocation102_spill] sm:$0xff]  ;;  %v5462_v27 = vld [vmem:[#allocation103_spill] sm:$0xff]  ;;  %v5468_v55 = vld [vmem:[#allocation109_spill] sm:$0xff] }
 0x174   : > { %2479 = vst [vmem:[%s4075_s6 + $0xd8] sm:$0xff] %v2876_v29  ;;  %v1343_v36 = vadd.f32 %v1087_v30, %v5457_v52  ;;  %v1344_v38 = vadd.f32 %v1088_v61, %v5458_v37  ;;  %v1345_v42 = vadd.f32 %v1089_v31, %v5459_v63  ;;  %v1346_v44 = vadd.f32 %v1090_v32, %v5460_v43  ;;  %v5463_v29 = vld [vmem:[#allocation104_spill] sm:$0xff]  ;;  %v5464_v61 = vld [vmem:[#allocation105_spill] sm:$0xff]  ;;  %v5465_v32 = vld [vmem:[#allocation106_spill] sm:$0xff] }
 0x175   : > { %v1636_v53 = vadd.f32 %v3272_v10, %v1339_v49  ;;  %v1637_v5 = vadd.f32 %v3292_v22, %v1340_v39  ;;  %v1638_v48 = vadd.f32 %v3274_v11, %v1341_v17  ;;  %v1639_v6 = vadd.f32 %v3294_v23, %v1342_v56  ;;  %v5466_v49 = vld [vmem:[#allocation107_spill] sm:$0xff]  ;;  %v5467_v39 = vld [vmem:[#allocation108_spill] sm:$0xff]  ;;  %v837_v17 = vpop.permute.xlu1 %836 }
 0x176   : > { %v1640_v7 = vadd.f32 %v3276_v12, %v1343_v36  ;;  %v1641_v54 = vadd.f32 %v3296_v24, %v1344_v38  ;;  %v1642_v8 = vadd.f32 %v3298_v25, %v1345_v42  ;;  %v1643_v57 = vadd.f32 %v3300_v26, %v1346_v44 }
 0x177   : > { %v2831_v58 = vpack.c.bf16 %v1637_v5, %v1636_v53  ;;  %v1091_v45 = vmul.f32 %v3270_v9, %v833_v41  ;;  %2032 = vst [vmem:[%s4057_s26 + $0xe0] sm:$0xff] %v1638_v48  ;;  %2033 = vst [vmem:[%s4057_s26 + $0xe8] sm:$0xff] %v1639_v6  ;;  %v1092_v47 = vmul.f32 %v3278_v13, %v833_v41 }
 0x178   : > { %v2877_v46 = vpack.c.bf16 %v1641_v54, %v1640_v7  ;;  %v1093_v59 = vmul.f32 %v3280_v14, %v833_v41  ;;  %v1094_v62 = vmul.f32 %v3282_v15, %v833_v41  ;;  %v2878_v0 = vpack.c.bf16 %v1643_v57, %v1642_v8 }
 0x179   : > { %1986 = vst [vmem:[%s4066_s30 + $0x70] sm:$0xff] %v2831_v58  ;;  %v1095_v1 = vmul.f32 %v3284_v16, %v833_v41  ;;  %v1096_v2 = vmul.f32 %v3286_v19, %v833_v41  ;;  %v1097_v50 = vmul.f32 %v3288_v20, %v833_v41  ;;  %v1098_v51 = vmul.f32 %v3290_v21, %v833_v41 }
 0x17a   : > { %2480 = vst [vmem:[%s4075_s6 + $0xe0] sm:$0xff] %v2877_v46  ;;  %v1347_v60 = vadd.f32 %v1091_v45, %v5461_v40  ;;  %v1348_v28 = vadd.f32 %v1092_v47, %v5462_v27  ;;  %v1349_v30 = vadd.f32 %v1093_v59, %v5463_v29  ;;  %2481 = vst [vmem:[%s4075_s6 + $0xe8] sm:$0xff] %v2878_v0  ;;  %v5469_v46 = vld [vmem:[#allocation126_spill] sm:$0xff]  ;;  %v5470_v59 = vld [vmem:[#allocation127_spill] sm:$0xff] }
 0x17b   : > { %v1350_v31 = vadd.f32 %v1094_v62, %v5464_v61  ;;  %v1351_v33 = vadd.f32 %v1095_v1, %v5465_v32  ;;  %v1352_v34 = vadd.f32 %v1096_v2, %v5466_v49  ;;  %v1353_v35 = vadd.f32 %v1097_v50, %v5467_v39  ;;  %v5471_v0 = vld [vmem:[#allocation128_spill] sm:$0xff]  ;;  %v5472_v2 = vld [vmem:[#allocation129_spill] sm:$0xff] }
 0x17c   : > { %v1354_v56 = vadd.f32 %v1098_v51, %v5468_v55  ;;  %v1644_v52 = vadd.f32 %v3272_v10, %v1347_v60  ;;  %v1645_v36 = vadd.f32 %v3292_v22, %v1348_v28  ;;  %v1646_v37 = vadd.f32 %v3274_v11, %v1349_v30  ;;  %v5473_v51 = vld [vmem:[#allocation130_spill] sm:$0xff]  ;;  %v5474_v60 = vld [vmem:[#allocation131_spill] sm:$0xff]  ;;  %v5475_v28 = vld [vmem:[#allocation132_spill] sm:$0xff] }
 0x17d   : > { %v1647_v38 = vadd.f32 %v3294_v23, %v1350_v31  ;;  %v1648_v41 = vadd.f32 %v3276_v12, %v1351_v33  ;;  %v1649_v63 = vadd.f32 %v3296_v24, %v1352_v34  ;;  %v1650_v42 = vadd.f32 %v3298_v25, %v1353_v35  ;;  %v5476_v30 = vld [vmem:[#allocation133_spill] sm:$0xff]  ;;  %v841_v31 = vpop.permute.xlu0 %840 }
 0x17e   : > { %v1651_v43 = vadd.f32 %v3300_v26, %v1354_v56  ;;  %v2832_v44 = vpack.c.bf16 %v1645_v36, %v1644_v52  ;;  %2034 = vst [vmem:[%s4057_s26 + $0xf0] sm:$0xff] %v1646_v37  ;;  %v1099_v53 = vmul.f32 %v3270_v9, %v837_v17  ;;  %v1100_v5 = vmul.f32 %v3278_v13, %v837_v17 }
 0x17f   : > { %2035 = vst [vmem:[%s4057_s26 + $0xf8] sm:$0xff] %v1647_v38  ;;  %v2879_v48 = vpack.c.bf16 %v1649_v63, %v1648_v41  ;;  %v1101_v6 = vmul.f32 %v3280_v14, %v837_v17  ;;  %v1102_v7 = vmul.f32 %v3282_v15, %v837_v17  ;;  %v1103_v54 = vmul.f32 %v3284_v16, %v837_v17 }
 0x180   : > { %1987 = vst [vmem:[%s4066_s30 + $0x78] sm:$0xff] %v2832_v44  ;;  %v2880_v8 = vpack.c.bf16 %v1651_v43, %v1650_v42  ;;  %v1104_v57 = vmul.f32 %v3286_v19, %v837_v17  ;;  %v1105_v58 = vmul.f32 %v3288_v20, %v837_v17  ;;  %v1106_v45 = vmul.f32 %v3290_v21, %v837_v17 }
 0x181   : > { %2482 = vst [vmem:[%s4075_s6 + $0xf0] sm:$0xff] %v2879_v48  ;;  %v1355_v47 = vadd.f32 %v1099_v53, %v5469_v46  ;;  %v1356_v62 = vadd.f32 %v1100_v5, %v5470_v59  ;;  %v1357_v1 = vadd.f32 %v1101_v6, %v5471_v0  ;;  %v1358_v50 = vadd.f32 %v1102_v7, %v5472_v2  ;;  %v5477_v5 = vld [vmem:[#allocation118_spill] sm:$0xff]  ;;  %v5478_v6 = vld [vmem:[#allocation119_spill] sm:$0xff]  ;;  %v5483_v0 = vld [vmem:[#allocation124_spill] sm:$0xff] }
 0x182   : > { %2483 = vst [vmem:[%s4075_s6 + $0xf8] sm:$0xff] %v2880_v8  ;;  %v1359_v40 = vadd.f32 %v1103_v54, %v5473_v51  ;;  %v1360_v27 = vadd.f32 %v1104_v57, %v5474_v60  ;;  %v1361_v29 = vadd.f32 %v1105_v58, %v5475_v28  ;;  %v1362_v61 = vadd.f32 %v1106_v45, %v5476_v30  ;;  %v5479_v54 = vld [vmem:[#allocation120_spill] sm:$0xff]  ;;  %v5480_v57 = vld [vmem:[#allocation121_spill] sm:$0xff]  ;;  %v5481_v45 = vld [vmem:[#allocation122_spill] sm:$0xff] }
 0x183   : > { %v1652_v32 = vadd.f32 %v3272_v10, %v1355_v47  ;;  %v1653_v33 = vadd.f32 %v3292_v22, %v1356_v62  ;;  %v1654_v49 = vadd.f32 %v3274_v11, %v1357_v1  ;;  %v1655_v34 = vadd.f32 %v3294_v23, %v1358_v50  ;;  %v845_v47 = vpop.permute.xlu1 %844  ;;  %v5482_v59 = vld [vmem:[#allocation123_spill] sm:$0xff]  ;;  %v5484_v2 = vld [vmem:[#allocation125_spill] sm:$0xff] }
 0x184   : > { %v1656_v39 = vadd.f32 %v3276_v12, %v1359_v40  ;;  %v1657_v35 = vadd.f32 %v3296_v24, %v1360_v27  ;;  %v1658_v17 = vadd.f32 %v3298_v25, %v1361_v29  ;;  %v1659_v55 = vadd.f32 %v3300_v26, %v1362_v61 }
 0x185   : > { %v2833_v56 = vpack.c.bf16 %v1653_v33, %v1652_v32  ;;  %2036 = vst [vmem:[%s4057_s26 + $0x100] sm:$0xff] %v1654_v49  ;;  %2037 = vst [vmem:[%s4057_s26 + $0x108] sm:$0xff] %v1655_v34  ;;  %v1107_v52 = vmul.f32 %v3270_v9, %v841_v31  ;;  %v1108_v36 = vmul.f32 %v3278_v13, %v841_v31 }
 0x186   : > { %v1109_v37 = vmul.f32 %v3280_v14, %v841_v31  ;;  %v2881_v38 = vpack.c.bf16 %v1657_v35, %v1656_v39  ;;  %v2882_v41 = vpack.c.bf16 %v1659_v55, %v1658_v17  ;;  %v1110_v63 = vmul.f32 %v3282_v15, %v841_v31 }
 0x187   : > { %v1111_v42 = vmul.f32 %v3284_v16, %v841_v31  ;;  %1988 = vst [vmem:[%s4066_s30 + $0x80] sm:$0xff] %v2833_v56  ;;  %v1112_v43 = vmul.f32 %v3286_v19, %v841_v31  ;;  %v1113_v44 = vmul.f32 %v3288_v20, %v841_v31  ;;  %v1114_v53 = vmul.f32 %v3290_v21, %v841_v31 }
 0x188   : > { %v1363_v48 = vadd.f32 %v1107_v52, %v5477_v5  ;;  %2484 = vst [vmem:[%s4075_s6 + $0x100] sm:$0xff] %v2881_v38  ;;  %2485 = vst [vmem:[%s4075_s6 + $0x108] sm:$0xff] %v2882_v41  ;;  %v1364_v7 = vadd.f32 %v1108_v36, %v5478_v6  ;;  %v1365_v8 = vadd.f32 %v1109_v37, %v5479_v54  ;;  %v5485_v36 = vld [vmem:[#allocation142_spill] sm:$0xff]  ;;  %v5486_v38 = vld [vmem:[#allocation143_spill] sm:$0xff] }
 0x189   : > { %v1366_v58 = vadd.f32 %v1110_v63, %v5480_v57  ;;  %v1367_v46 = vadd.f32 %v1111_v42, %v5481_v45  ;;  %v1368_v62 = vadd.f32 %v1112_v43, %v5482_v59  ;;  %v1369_v1 = vadd.f32 %v1113_v44, %v5483_v0  ;;  %v5487_v63 = vld [vmem:[#allocation144_spill] sm:$0xff]  ;;  %v5488_v43 = vld [vmem:[#allocation145_spill] sm:$0xff] }
 0x18a   : > { %v1370_v50 = vadd.f32 %v1114_v53, %v5484_v2  ;;  %v1660_v51 = vadd.f32 %v3272_v10, %v1363_v48  ;;  %v1661_v40 = vadd.f32 %v3292_v22, %v1364_v7  ;;  %v1662_v60 = vadd.f32 %v3274_v11, %v1365_v8  ;;  %v5489_v53 = vld [vmem:[#allocation146_spill] sm:$0xff]  ;;  %v5490_v48 = vld [vmem:[#allocation147_spill] sm:$0xff]  ;;  %v849_v7 = vpop.permute.xlu0 %848  ;;  %v5491_v54 = vld [vmem:[#allocation148_spill] sm:$0xff] }
 0x18b   : > { %v1663_v27 = vadd.f32 %v3294_v23, %v1366_v58  ;;  %v1664_v28 = vadd.f32 %v3276_v12, %v1367_v46  ;;  %v1665_v29 = vadd.f32 %v3296_v24, %v1368_v62  ;;  %v1666_v30 = vadd.f32 %v3298_v25, %v1369_v1  ;;  %v5492_v57 = vld [vmem:[#allocation149_spill] sm:$0xff] }
 0x18c   : > { %v1667_v61 = vadd.f32 %v3300_v26, %v1370_v50  ;;  %v1115_v31 = vmul.f32 %v3270_v9, %v845_v47  ;;  %v2834_v32 = vpack.c.bf16 %v1661_v40, %v1660_v51  ;;  %2038 = vst [vmem:[%s4057_s26 + $0x110] sm:$0xff] %v1662_v60  ;;  %v1116_v33 = vmul.f32 %v3278_v13, %v845_v47 }
 0x18d   : > { %2039 = vst [vmem:[%s4057_s26 + $0x118] sm:$0xff] %v1663_v27  ;;  %v1117_v49 = vmul.f32 %v3280_v14, %v845_v47  ;;  %v1118_v34 = vmul.f32 %v3282_v15, %v845_v47  ;;  %v2883_v39 = vpack.c.bf16 %v1665_v29, %v1664_v28  ;;  %v1119_v17 = vmul.f32 %v3284_v16, %v845_v47 }
 0x18e   : > { %v2884_v35 = vpack.c.bf16 %v1667_v61, %v1666_v30  ;;  %v1120_v55 = vmul.f32 %v3286_v19, %v845_v47  ;;  %1989 = vst [vmem:[%s4066_s30 + $0x88] sm:$0xff] %v2834_v32  ;;  %v1121_v56 = vmul.f32 %v3288_v20, %v845_v47  ;;  %v1122_v52 = vmul.f32 %v3290_v21, %v845_v47 }
 0x18f   : > { %v1371_v37 = vadd.f32 %v1115_v31, %v5485_v36  ;;  %v1372_v41 = vadd.f32 %v1116_v33, %v5486_v38  ;;  %2486 = vst [vmem:[%s4075_s6 + $0x110] sm:$0xff] %v2883_v39  ;;  %v1373_v42 = vadd.f32 %v1117_v49, %v5487_v63  ;;  %v1374_v44 = vadd.f32 %v1118_v34, %v5488_v43  ;;  %v5493_v33 = vld [vmem:[#allocation134_spill] sm:$0xff]  ;;  %v5494_v34 = vld [vmem:[#allocation135_spill] sm:$0xff]  ;;  %v5500_v43 = vld [vmem:[#allocation141_spill] sm:$0xff] }
 0x190   : > { %2487 = vst [vmem:[%s4075_s6 + $0x118] sm:$0xff] %v2884_v35  ;;  %v1375_v5 = vadd.f32 %v1119_v17, %v5489_v53  ;;  %v1376_v6 = vadd.f32 %v1120_v55, %v5490_v48  ;;  %v1377_v8 = vadd.f32 %v1121_v56, %v5491_v54  ;;  %v1378_v58 = vadd.f32 %v1122_v52, %v5492_v57  ;;  %v5495_v35 = vld [vmem:[#allocation136_spill] sm:$0xff]  ;;  %v5496_v55 = vld [vmem:[#allocation137_spill] sm:$0xff]  ;;  %v5497_v52 = vld [vmem:[#allocation138_spill] sm:$0xff] }
 0x191   : > { %v1668_v45 = vadd.f32 %v3272_v10, %v1371_v37  ;;  %v1669_v46 = vadd.f32 %v3292_v22, %v1372_v41  ;;  %v1670_v47 = vadd.f32 %v3274_v11, %v1373_v42  ;;  %v1671_v59 = vadd.f32 %v3294_v23, %v1374_v44  ;;  %v5498_v37 = vld [vmem:[#allocation139_spill] sm:$0xff]  ;;  %v5499_v41 = vld [vmem:[#allocation140_spill] sm:$0xff]  ;;  %v853_v42 = vpop.permute.xlu1 %852 }
 0x192   : > { %v1672_v62 = vadd.f32 %v3276_v12, %v1375_v5  ;;  %v1673_v0 = vadd.f32 %v3296_v24, %v1376_v6  ;;  %v1674_v1 = vadd.f32 %v3298_v25, %v1377_v8  ;;  %v1675_v2 = vadd.f32 %v3300_v26, %v1378_v58 }
 0x193   : > { %v2835_v50 = vpack.c.bf16 %v1669_v46, %v1668_v45  ;;  %v1123_v51 = vmul.f32 %v3270_v9, %v849_v7  ;;  %2040 = vst [vmem:[%s4057_s26 + $0x120] sm:$0xff] %v1670_v47  ;;  %2041 = vst [vmem:[%s4057_s26 + $0x128] sm:$0xff] %v1671_v59  ;;  %v1124_v60 = vmul.f32 %v3278_v13, %v849_v7 }
 0x194   : > { %v2885_v40 = vpack.c.bf16 %v1673_v0, %v1672_v62  ;;  %v1125_v27 = vmul.f32 %v3280_v14, %v849_v7  ;;  %v1126_v28 = vmul.f32 %v3282_v15, %v849_v7  ;;  %v2886_v29 = vpack.c.bf16 %v1675_v2, %v1674_v1 }
 0x195   : > { %1990 = vst [vmem:[%s4066_s30 + $0x90] sm:$0xff] %v2835_v50  ;;  %v1127_v30 = vmul.f32 %v3284_v16, %v849_v7  ;;  %v1128_v61 = vmul.f32 %v3286_v19, %v849_v7  ;;  %v1129_v31 = vmul.f32 %v3288_v20, %v849_v7  ;;  %v1130_v32 = vmul.f32 %v3290_v21, %v849_v7 }
 0x196   : > { %2488 = vst [vmem:[%s4075_s6 + $0x120] sm:$0xff] %v2885_v40  ;;  %v1379_v49 = vadd.f32 %v1123_v51, %v5493_v33  ;;  %v1380_v39 = vadd.f32 %v1124_v60, %v5494_v34  ;;  %v1381_v17 = vadd.f32 %v1125_v27, %v5495_v35  ;;  %2489 = vst [vmem:[%s4075_s6 + $0x128] sm:$0xff] %v2886_v29  ;;  %v5501_v40 = vld [vmem:[#allocation158_spill] sm:$0xff]  ;;  %v5502_v27 = vld [vmem:[#allocation159_spill] sm:$0xff] }
 0x197   : > { %v1382_v56 = vadd.f32 %v1126_v28, %v5496_v55  ;;  %v1383_v36 = vadd.f32 %v1127_v30, %v5497_v52  ;;  %v1384_v38 = vadd.f32 %v1128_v61, %v5498_v37  ;;  %v1385_v63 = vadd.f32 %v1129_v31, %v5499_v41  ;;  %v5503_v29 = vld [vmem:[#allocation160_spill] sm:$0xff]  ;;  %v5504_v61 = vld [vmem:[#allocation161_spill] sm:$0xff] }
 0x198   : > { %v1386_v44 = vadd.f32 %v1130_v32, %v5500_v43  ;;  %v1676_v53 = vadd.f32 %v3272_v10, %v1379_v49  ;;  %v1677_v5 = vadd.f32 %v3292_v22, %v1380_v39  ;;  %v1678_v48 = vadd.f32 %v3274_v11, %v1381_v17  ;;  %v5505_v32 = vld [vmem:[#allocation162_spill] sm:$0xff]  ;;  %v5506_v49 = vld [vmem:[#allocation163_spill] sm:$0xff]  ;;  %v5507_v39 = vld [vmem:[#allocation164_spill] sm:$0xff] }
 0x199   : > { %v1679_v6 = vadd.f32 %v3294_v23, %v1382_v56  ;;  %v1680_v7 = vadd.f32 %v3276_v12, %v1383_v36  ;;  %v1681_v54 = vadd.f32 %v3296_v24, %v1384_v38  ;;  %v1682_v8 = vadd.f32 %v3298_v25, %v1385_v63  ;;  %v5508_v17 = vld [vmem:[#allocation165_spill] sm:$0xff]  ;;  %v857_v56 = vpop.permute.xlu0 %856 }
 0x19a   : > { %v1683_v57 = vadd.f32 %v3300_v26, %v1386_v44  ;;  %v2836_v58 = vpack.c.bf16 %v1677_v5, %v1676_v53  ;;  %2042 = vst [vmem:[%s4057_s26 + $0x130] sm:$0xff] %v1678_v48  ;;  %v1131_v45 = vmul.f32 %v3270_v9, %v853_v42  ;;  %v1132_v46 = vmul.f32 %v3278_v13, %v853_v42 }
 0x19b   : > { %2043 = vst [vmem:[%s4057_s26 + $0x138] sm:$0xff] %v1679_v6  ;;  %v2887_v47 = vpack.c.bf16 %v1681_v54, %v1680_v7  ;;  %v1133_v59 = vmul.f32 %v3280_v14, %v853_v42  ;;  %v1134_v62 = vmul.f32 %v3282_v15, %v853_v42  ;;  %v1135_v0 = vmul.f32 %v3284_v16, %v853_v42 }
 0x19c   : > { %1991 = vst [vmem:[%s4066_s30 + $0x98] sm:$0xff] %v2836_v58  ;;  %v2888_v1 = vpack.c.bf16 %v1683_v57, %v1682_v8  ;;  %v1136_v2 = vmul.f32 %v3286_v19, %v853_v42  ;;  %v1137_v50 = vmul.f32 %v3288_v20, %v853_v42  ;;  %v1138_v51 = vmul.f32 %v3290_v21, %v853_v42 }
 0x19d   : > { %2490 = vst [vmem:[%s4075_s6 + $0x130] sm:$0xff] %v2887_v47  ;;  %v1387_v60 = vadd.f32 %v1131_v45, %v5501_v40  ;;  %v1388_v28 = vadd.f32 %v1132_v46, %v5502_v27  ;;  %v1389_v30 = vadd.f32 %v1133_v59, %v5503_v29  ;;  %v1390_v31 = vadd.f32 %v1134_v62, %v5504_v61  ;;  %v5509_v46 = vld [vmem:[#allocation150_spill] sm:$0xff]  ;;  %v5510_v59 = vld [vmem:[#allocation151_spill] sm:$0xff]  ;;  %v5515_v29 = vld [vmem:[#allocation156_spill] sm:$0xff] }
 0x19e   : > { %2491 = vst [vmem:[%s4075_s6 + $0x138] sm:$0xff] %v2888_v1  ;;  %v1391_v33 = vadd.f32 %v1135_v0, %v5505_v32  ;;  %v1392_v34 = vadd.f32 %v1136_v2, %v5506_v49  ;;  %v1393_v35 = vadd.f32 %v1137_v50, %v5507_v39  ;;  %v1394_v55 = vadd.f32 %v1138_v51, %v5508_v17  ;;  %v5511_v0 = vld [vmem:[#allocation152_spill] sm:$0xff]  ;;  %v5512_v2 = vld [vmem:[#allocation153_spill] sm:$0xff]  ;;  %v5513_v51 = vld [vmem:[#allocation154_spill] sm:$0xff] }
 0x19f   : > { %v1684_v52 = vadd.f32 %v3272_v10, %v1387_v60  ;;  %v1685_v36 = vadd.f32 %v3292_v22, %v1388_v28  ;;  %v1686_v37 = vadd.f32 %v3274_v11, %v1389_v30  ;;  %v1687_v38 = vadd.f32 %v3294_v23, %v1390_v31  ;;  %v861_v60 = vpop.permute.xlu1 %860  ;;  %v5514_v27 = vld [vmem:[#allocation155_spill] sm:$0xff]  ;;  %v5516_v61 = vld [vmem:[#allocation157_spill] sm:$0xff] }
 0x1a0   : > { %v1688_v41 = vadd.f32 %v3276_v12, %v1391_v33  ;;  %v1689_v63 = vadd.f32 %v3296_v24, %v1392_v34  ;;  %v1690_v42 = vadd.f32 %v3298_v25, %v1393_v35  ;;  %v1691_v43 = vadd.f32 %v3300_v26, %v1394_v55 }
 0x1a1   : > { %v2837_v44 = vpack.c.bf16 %v1685_v36, %v1684_v52  ;;  %2044 = vst [vmem:[%s4057_s26 + $0x140] sm:$0xff] %v1686_v37  ;;  %2045 = vst [vmem:[%s4057_s26 + $0x148] sm:$0xff] %v1687_v38  ;;  %v1139_v53 = vmul.f32 %v3270_v9, %v857_v56  ;;  %v1140_v5 = vmul.f32 %v3278_v13, %v857_v56 }
 0x1a2   : > { %v1141_v48 = vmul.f32 %v3280_v14, %v857_v56  ;;  %v2889_v6 = vpack.c.bf16 %v1689_v63, %v1688_v41  ;;  %v2890_v7 = vpack.c.bf16 %v1691_v43, %v1690_v42  ;;  %v1142_v54 = vmul.f32 %v3282_v15, %v857_v56 }
 0x1a3   : > { %v1143_v8 = vmul.f32 %v3284_v16, %v857_v56  ;;  %1992 = vst [vmem:[%s4066_s30 + $0xa0] sm:$0xff] %v2837_v44  ;;  %v1144_v57 = vmul.f32 %v3286_v19, %v857_v56  ;;  %v1145_v58 = vmul.f32 %v3288_v20, %v857_v56  ;;  %v1146_v45 = vmul.f32 %v3290_v21, %v857_v56 }
 0x1a4   : > { %v1395_v47 = vadd.f32 %v1139_v53, %v5509_v46  ;;  %2492 = vst [vmem:[%s4075_s6 + $0x140] sm:$0xff] %v2889_v6  ;;  %2493 = vst [vmem:[%s4075_s6 + $0x148] sm:$0xff] %v2890_v7  ;;  %v1396_v62 = vadd.f32 %v1140_v5, %v5510_v59  ;;  %v1397_v1 = vadd.f32 %v1141_v48, %v5511_v0  ;;  %v5517_v48 = vld [vmem:[#allocation174_spill] sm:$0xff]  ;;  %v5518_v7 = vld [vmem:[#allocation175_spill] sm:$0xff]  ;;  %v865_v59 = vpop.permute.xlu0 %864 }
 0x1a5   : > { %v1398_v50 = vadd.f32 %v1142_v54, %v5512_v2  ;;  %v1399_v40 = vadd.f32 %v1143_v8, %v5513_v51  ;;  %v1400_v28 = vadd.f32 %v1144_v57, %v5514_v27  ;;  %v1401_v30 = vadd.f32 %v1145_v58, %v5515_v29  ;;  %v5519_v8 = vld [vmem:[#allocation176_spill] sm:$0xff]  ;;  %v5520_v58 = vld [vmem:[#allocation177_spill] sm:$0xff]  ;;  %v5521_v46 = vld [vmem:[#allocation178_spill] sm:$0xff] }
 0x1a6   : > { %v1402_v31 = vadd.f32 %v1146_v45, %v5516_v61  ;;  %v1692_v32 = vadd.f32 %v3272_v10, %v1395_v47  ;;  %v1693_v33 = vadd.f32 %v3292_v22, %v1396_v62  ;;  %v1694_v49 = vadd.f32 %v3274_v11, %v1397_v1  ;;  %v5522_v62 = vld [vmem:[#allocation179_spill] sm:$0xff]  ;;  %v5523_v1 = vld [vmem:[#allocation180_spill] sm:$0xff] }
 0x1a7   : > { %v1695_v34 = vadd.f32 %v3294_v23, %v1398_v50  ;;  %v1696_v39 = vadd.f32 %v3276_v12, %v1399_v40  ;;  %v1697_v35 = vadd.f32 %v3296_v24, %v1400_v28  ;;  %v1698_v17 = vadd.f32 %v3298_v25, %v1401_v30 }
 0x1a8   : > { %v1699_v55 = vadd.f32 %v3300_v26, %v1402_v31  ;;  %v1147_v56 = vmul.f32 %v3270_v9, %v861_v60  ;;  %v2838_v52 = vpack.c.bf16 %v1693_v33, %v1692_v32  ;;  %2046 = vst [vmem:[%s4057_s26 + $0x150] sm:$0xff] %v1694_v49  ;;  %v1148_v36 = vmul.f32 %v3278_v13, %v861_v60 }
 0x1a9   : > { %2047 = vst [vmem:[%s4057_s26 + $0x158] sm:$0xff] %v1695_v34  ;;  %v1149_v37 = vmul.f32 %v3280_v14, %v861_v60  ;;  %v1150_v38 = vmul.f32 %v3282_v15, %v861_v60  ;;  %v2891_v41 = vpack.c.bf16 %v1697_v35, %v1696_v39  ;;  %v1151_v42 = vmul.f32 %v3284_v16, %v861_v60 }
 0x1aa   : > { %v2892_v63 = vpack.c.bf16 %v1699_v55, %v1698_v17  ;;  %v1152_v43 = vmul.f32 %v3286_v19, %v861_v60  ;;  %1993 = vst [vmem:[%s4066_s30 + $0xa8] sm:$0xff] %v2838_v52  ;;  %v1153_v44 = vmul.f32 %v3288_v20, %v861_v60  ;;  %v1154_v53 = vmul.f32 %v3290_v21, %v861_v60 }
 0x1ab   : > { %v1403_v5 = vadd.f32 %v1147_v56, %v3855_v4  ;;  %v1404_v6 = vadd.f32 %v1148_v36, %v5517_v48  ;;  %2494 = vst [vmem:[%s4075_s6 + $0x150] sm:$0xff] %v2891_v41  ;;  %v1405_v54 = vadd.f32 %v1149_v37, %v5518_v7  ;;  %v1406_v57 = vadd.f32 %v1150_v38, %v5519_v8  ;;  %v5524_v56 = vld [vmem:[#allocation166_spill] sm:$0xff]  ;;  %v5525_v36 = vld [vmem:[#allocation167_spill] sm:$0xff]  ;;  %v5526_v38 = vld [vmem:[#allocation168_spill] sm:$0xff]  ;;  %v869_v7 = vpop.permute.xlu1 %868 }
 0x1ac   : > { %2495 = vst [vmem:[%s4075_s6 + $0x158] sm:$0xff] %v2892_v63  ;;  %v1407_v45 = vadd.f32 %v1151_v42, %v5520_v58  ;;  %v1408_v47 = vadd.f32 %v1152_v43, %v5521_v46  ;;  %v1409_v0 = vadd.f32 %v1153_v44, %v5522_v62  ;;  %v1410_v2 = vadd.f32 %v1154_v53, %v5523_v1  ;;  %v5527_v63 = vld [vmem:[#allocation169_spill] sm:$0xff]  ;;  %v5528_v43 = vld [vmem:[#allocation170_spill] sm:$0xff]  ;;  %v5529_v53 = vld [vmem:[#allocation171_spill] sm:$0xff] }
 0x1ad   : > { %v1700_v4 = vadd.f32 %v3272_v10, %v1403_v5  ;;  %v1701_v50 = vadd.f32 %v3292_v22, %v1404_v6  ;;  %v1702_v51 = vadd.f32 %v3274_v11, %v1405_v54  ;;  %v1703_v40 = vadd.f32 %v3294_v23, %v1406_v57  ;;  %v5530_v48 = vld [vmem:[#allocation172_spill] sm:$0xff]  ;;  %v5531_v54 = vld [vmem:[#allocation173_spill] sm:$0xff] }
 0x1ae   : > { %v1704_v60 = vadd.f32 %v3276_v12, %v1407_v45  ;;  %v1705_v27 = vadd.f32 %v3296_v24, %v1408_v47  ;;  %v1706_v28 = vadd.f32 %v3298_v25, %v1409_v0  ;;  %v1707_v29 = vadd.f32 %v3300_v26, %v1410_v2 }
 0x1af   : > { %v2839_v30 = vpack.c.bf16 %v1701_v50, %v1700_v4  ;;  %v1155_v61 = vmul.f32 %v3270_v9, %v865_v59  ;;  %2048 = vst [vmem:[%s4057_s26 + $0x160] sm:$0xff] %v1702_v51  ;;  %2049 = vst [vmem:[%s4057_s26 + $0x168] sm:$0xff] %v1703_v40  ;;  %v1156_v32 = vmul.f32 %v3278_v13, %v865_v59 }
 0x1b0   : > { %v2893_v31 = vpack.c.bf16 %v1705_v27, %v1704_v60  ;;  %v1157_v33 = vmul.f32 %v3280_v14, %v865_v59  ;;  %v1158_v49 = vmul.f32 %v3282_v15, %v865_v59  ;;  %v2894_v34 = vpack.c.bf16 %v1707_v29, %v1706_v28 }
 0x1b1   : > { %1994 = vst [vmem:[%s4066_s30 + $0xb0] sm:$0xff] %v2839_v30  ;;  %v1159_v39 = vmul.f32 %v3284_v16, %v865_v59  ;;  %v1160_v35 = vmul.f32 %v3286_v19, %v865_v59  ;;  %v1161_v17 = vmul.f32 %v3288_v20, %v865_v59  ;;  %v1162_v55 = vmul.f32 %v3290_v21, %v865_v59 }
 0x1b2   : > { %2496 = vst [vmem:[%s4075_s6 + $0x160] sm:$0xff] %v2893_v31  ;;  %v1411_v52 = vadd.f32 %v1155_v61, %v5524_v56  ;;  %v1412_v37 = vadd.f32 %v1156_v32, %v5525_v36  ;;  %v1413_v41 = vadd.f32 %v1157_v33, %v5526_v38  ;;  %2497 = vst [vmem:[%s4075_s6 + $0x168] sm:$0xff] %v2894_v34  ;;  %v5532_v61 = vld [vmem:[#allocation189_spill] sm:$0xff]  ;;  %v5533_v32 = vld [vmem:[#allocation190_spill] sm:$0xff] }
 0x1b3   : > { %v1414_v42 = vadd.f32 %v1158_v49, %v5527_v63  ;;  %v1415_v44 = vadd.f32 %v1159_v39, %v5528_v43  ;;  %v1416_v5 = vadd.f32 %v1160_v35, %v5529_v53  ;;  %v1417_v6 = vadd.f32 %v1161_v17, %v5530_v48  ;;  %v5534_v49 = vld [vmem:[#allocation191_spill] sm:$0xff]  ;;  %v5535_v39 = vld [vmem:[#allocation192_spill] sm:$0xff]  ;;  %v5536_v17 = vld [vmem:[#allocation193_spill] sm:$0xff] }
 0x1b4   : > { %v1418_v8 = vadd.f32 %v1162_v55, %v5531_v54  ;;  %v1708_v57 = vadd.f32 %v3272_v10, %v1411_v52  ;;  %v1709_v58 = vadd.f32 %v3292_v22, %v1412_v37  ;;  %v1710_v45 = vadd.f32 %v3274_v11, %v1413_v41  ;;  %v5537_v56 = vld [vmem:[#allocation194_spill] sm:$0xff]  ;;  %v5538_v36 = vld [vmem:[#allocation195_spill] sm:$0xff]  ;;  %v873_v41 = vpop.permute.xlu0 %872 }
 0x1b5   : > { %v1711_v46 = vadd.f32 %v3294_v23, %v1414_v42  ;;  %v1712_v47 = vadd.f32 %v3276_v12, %v1415_v44  ;;  %v1713_v59 = vadd.f32 %v3296_v24, %v1416_v5  ;;  %v1714_v62 = vadd.f32 %v3298_v25, %v1417_v6 }
 0x1b6   : > { %v1715_v0 = vadd.f32 %v3300_v26, %v1418_v8  ;;  %v2840_v1 = vpack.c.bf16 %v1709_v58, %v1708_v57  ;;  %2050 = vst [vmem:[%s4057_s26 + $0x170] sm:$0xff] %v1710_v45  ;;  %v1163_v2 = vmul.f32 %v3270_v9, %v869_v7  ;;  %v1164_v4 = vmul.f32 %v3278_v13, %v869_v7 }
 0x1b7   : > { %2051 = vst [vmem:[%s4057_s26 + $0x178] sm:$0xff] %v1711_v46  ;;  %v2895_v50 = vpack.c.bf16 %v1713_v59, %v1712_v47  ;;  %v1165_v51 = vmul.f32 %v3280_v14, %v869_v7  ;;  %v1166_v40 = vmul.f32 %v3282_v15, %v869_v7  ;;  %v1167_v60 = vmul.f32 %v3284_v16, %v869_v7 }
 0x1b8   : > { %1995 = vst [vmem:[%s4066_s30 + $0xb8] sm:$0xff] %v2840_v1  ;;  %v2896_v27 = vpack.c.bf16 %v1715_v0, %v1714_v62  ;;  %v1168_v28 = vmul.f32 %v3286_v19, %v869_v7  ;;  %v1169_v29 = vmul.f32 %v3288_v20, %v869_v7  ;;  %v1170_v30 = vmul.f32 %v3290_v21, %v869_v7  ;;  %v5539_v0 = vld [vmem:[#allocation181_spill] sm:$0xff] }
 0x1b9   : > { %2498 = vst [vmem:[%s4075_s6 + $0x170] sm:$0xff] %v2895_v50  ;;  %v1419_v31 = vadd.f32 %v1163_v2, %v5532_v61  ;;  %v1420_v33 = vadd.f32 %v1164_v4, %v5533_v32  ;;  %v1421_v34 = vadd.f32 %v1165_v51, %v5534_v49  ;;  %v1422_v35 = vadd.f32 %v1166_v40, %v5535_v39  ;;  %v5540_v2 = vld [vmem:[#allocation182_spill] sm:$0xff]  ;;  %v5541_v50 = vld [vmem:[#allocation183_spill] sm:$0xff]  ;;  %v5542_v40 = vld [vmem:[#allocation184_spill] sm:$0xff] }
 0x1ba   : > { %2499 = vst [vmem:[%s4075_s6 + $0x178] sm:$0xff] %v2896_v27  ;;  %v1423_v55 = vadd.f32 %v1167_v60, %v5536_v17  ;;  %v1424_v52 = vadd.f32 %v1168_v28, %v5537_v56  ;;  %v1425_v37 = vadd.f32 %v1169_v29, %v5538_v36  ;;  %v1426_v38 = vadd.f32 %v1170_v30, %v3924_v3  ;;  %v5543_v27 = vld [vmem:[#allocation185_spill] sm:$0xff]  ;;  %v877_v29 = vpop.permute.xlu1 %876  ;;  %v5544_v30 = vld [vmem:[#allocation186_spill] sm:$0xff] }
 0x1bb   : > { %v1716_v63 = vadd.f32 %v3272_v10, %v1419_v31  ;;  %v1717_v42 = vadd.f32 %v3292_v22, %v1420_v33  ;;  %v1718_v43 = vadd.f32 %v3274_v11, %v1421_v34  ;;  %v1719_v44 = vadd.f32 %v3294_v23, %v1422_v35  ;;  %v5545_v31 = vld [vmem:[#allocation187_spill] sm:$0xff]  ;;  %v5546_v33 = vld [vmem:[#allocation188_spill] sm:$0xff] }
 0x1bc   : > { %v1720_v53 = vadd.f32 %v3276_v12, %v1423_v55  ;;  %v1721_v5 = vadd.f32 %v3296_v24, %v1424_v52  ;;  %v1722_v48 = vadd.f32 %v3298_v25, %v1425_v37  ;;  %v1723_v6 = vadd.f32 %v3300_v26, %v1426_v38 }
 0x1bd   : > { %v2841_v3 = vpack.c.bf16 %v1717_v42, %v1716_v63  ;;  %2052 = vst [vmem:[%s4057_s26 + $0x180] sm:$0xff] %v1718_v43  ;;  %2053 = vst [vmem:[%s4057_s26 + $0x188] sm:$0xff] %v1719_v44  ;;  %v1171_v7 = vmul.f32 %v3270_v9, %v873_v41  ;;  %v1172_v54 = vmul.f32 %v3278_v13, %v873_v41 }
 0x1be   : > { %v1173_v8 = vmul.f32 %v3280_v14, %v873_v41  ;;  %v2897_v57 = vpack.c.bf16 %v1721_v5, %v1720_v53  ;;  %v2898_v58 = vpack.c.bf16 %v1723_v6, %v1722_v48  ;;  %v1174_v45 = vmul.f32 %v3282_v15, %v873_v41 }
 0x1bf   : > { %v1175_v46 = vmul.f32 %v3284_v16, %v873_v41  ;;  %1996 = vst [vmem:[%s4066_s30 + $0xc0] sm:$0xff] %v2841_v3  ;;  %v1176_v47 = vmul.f32 %v3286_v19, %v873_v41  ;;  %v1177_v59 = vmul.f32 %v3288_v20, %v873_v41  ;;  %v1178_v62 = vmul.f32 %v3290_v21, %v873_v41  ;;  %v5547_v3 = vld [vmem:[#allocation204_spill] sm:$0xff] }
 0x1c0   : > { %v1427_v1 = vadd.f32 %v1171_v7, %v5539_v0  ;;  %2500 = vst [vmem:[%s4075_s6 + $0x180] sm:$0xff] %v2897_v57  ;;  %2501 = vst [vmem:[%s4075_s6 + $0x188] sm:$0xff] %v2898_v58  ;;  %v1428_v4 = vadd.f32 %v1172_v54, %v5540_v2  ;;  %v1429_v51 = vadd.f32 %v1173_v8, %v5541_v50  ;;  %v5548_v54 = vld [vmem:[#allocation205_spill] sm:$0xff]  ;;  %v5549_v57 = vld [vmem:[#allocation206_spill] sm:$0xff]  ;;  %v881_v0 = vpop.permute.xlu0 %880 }
 0x1c1   : > { %v1430_v60 = vadd.f32 %v1174_v45, %v5542_v40  ;;  %v1431_v28 = vadd.f32 %v1175_v46, %v5543_v27  ;;  %v1432_v61 = vadd.f32 %v1176_v47, %v5544_v30  ;;  %v1433_v32 = vadd.f32 %v1177_v59, %v5545_v31  ;;  %v5550_v46 = vld [vmem:[#allocation208_spill] sm:$0xff]  ;;  %v5551_v59 = vld [vmem:[#allocation209_spill] sm:$0xff] }
 0x1c2   : > { %v1434_v49 = vadd.f32 %v1178_v62, %v5546_v33  ;;  %v1724_v34 = vadd.f32 %v3272_v10, %v1427_v1  ;;  %v1725_v39 = vadd.f32 %v3292_v22, %v1428_v4  ;;  %v1726_v35 = vadd.f32 %v3274_v11, %v1429_v51  ;;  %v5552_v1 = vld [vmem:[#allocation210_spill] sm:$0xff]  ;;  %v5553_v4 = vld [vmem:[#allocation211_spill] sm:$0xff] }
 0x1c3   : > { %v1727_v17 = vadd.f32 %v3294_v23, %v1430_v60  ;;  %v1728_v55 = vadd.f32 %v3276_v12, %v1431_v28  ;;  %v1729_v56 = vadd.f32 %v3296_v24, %v1432_v61  ;;  %v1730_v52 = vadd.f32 %v3298_v25, %v1433_v32 }
 0x1c4   : > { %v1731_v36 = vadd.f32 %v3300_v26, %v1434_v49  ;;  %v1179_v37 = vmul.f32 %v3270_v9, %v877_v29  ;;  %v2842_v38 = vpack.c.bf16 %v1725_v39, %v1724_v34  ;;  %2054 = vst [vmem:[%s4057_s26 + $0x190] sm:$0xff] %v1726_v35  ;;  %v1180_v41 = vmul.f32 %v3278_v13, %v877_v29 }
 0x1c5   : > { %2055 = vst [vmem:[%s4057_s26 + $0x198] sm:$0xff] %v1727_v17  ;;  %v1181_v63 = vmul.f32 %v3280_v14, %v877_v29  ;;  %v1182_v42 = vmul.f32 %v3282_v15, %v877_v29  ;;  %v2899_v43 = vpack.c.bf16 %v1729_v56, %v1728_v55  ;;  %v1183_v53 = vmul.f32 %v3284_v16, %v877_v29 }
 0x1c6   : > { %v2900_v44 = vpack.c.bf16 %v1731_v36, %v1730_v52  ;;  %v1184_v5 = vmul.f32 %v3286_v19, %v877_v29  ;;  %1997 = vst [vmem:[%s4066_s30 + $0xc8] sm:$0xff] %v2842_v38  ;;  %v1185_v48 = vmul.f32 %v3288_v20, %v877_v29  ;;  %v1186_v6 = vmul.f32 %v3290_v21, %v877_v29  ;;  %v5554_v52 = vld [vmem:[#allocation196_spill] sm:$0xff] }
 0x1c7   : > { %v1435_v7 = vadd.f32 %v1179_v37, %v5547_v3  ;;  %v1436_v8 = vadd.f32 %v1180_v41, %v5548_v54  ;;  %2502 = vst [vmem:[%s4075_s6 + $0x190] sm:$0xff] %v2899_v43  ;;  %v1437_v58 = vadd.f32 %v1181_v63, %v5549_v57  ;;  %v1438_v45 = vadd.f32 %v1182_v42, %v3960_v18  ;;  %v5555_v37 = vld [vmem:[#allocation197_spill] sm:$0xff]  ;;  %v5556_v41 = vld [vmem:[#allocation198_spill] sm:$0xff]  ;;  %v5557_v42 = vld [vmem:[#allocation199_spill] sm:$0xff] }
 0x1c8   : > { %2503 = vst [vmem:[%s4075_s6 + $0x198] sm:$0xff] %v2900_v44  ;;  %v1439_v47 = vadd.f32 %v1183_v53, %v5550_v46  ;;  %v1440_v62 = vadd.f32 %v1184_v5, %v5551_v59  ;;  %v1441_v2 = vadd.f32 %v1185_v48, %v5552_v1  ;;  %v1442_v50 = vadd.f32 %v1186_v6, %v5553_v4  ;;  %v5558_v44 = vld [vmem:[#allocation200_spill] sm:$0xff]  ;;  %v5559_v5 = vld [vmem:[#allocation201_spill] sm:$0xff]  ;;  %v5560_v6 = vld [vmem:[#allocation202_spill] sm:$0xff] }
 0x1c9   : > { %v1732_v51 = vadd.f32 %v3272_v10, %v1435_v7  ;;  %v1733_v40 = vadd.f32 %v3292_v22, %v1436_v8  ;;  %v1734_v60 = vadd.f32 %v3274_v11, %v1437_v58  ;;  %v1735_v18 = vadd.f32 %v3294_v23, %v1438_v45  ;;  %v885_v7 = vpop.permute.xlu1 %884  ;;  %v5561_v54 = vld [vmem:[#allocation203_spill] sm:$0xff] }
 0x1ca   : > { %v1736_v27 = vadd.f32 %v3276_v12, %v1439_v47  ;;  %v1737_v28 = vadd.f32 %v3296_v24, %v1440_v62  ;;  %v1738_v29 = vadd.f32 %v3298_v25, %v1441_v2  ;;  %v1739_v30 = vadd.f32 %v3300_v26, %v1442_v50 }
 0x1cb   : > { %v2843_v61 = vpack.c.bf16 %v1733_v40, %v1732_v51  ;;  %v1187_v31 = vmul.f32 %v3270_v9, %v881_v0  ;;  %2056 = vst [vmem:[%s4057_s26 + $0x1a0] sm:$0xff] %v1734_v60  ;;  %2057 = vst [vmem:[%s4057_s26 + $0x1a8] sm:$0xff] %v1735_v18  ;;  %v1188_v33 = vmul.f32 %v3278_v13, %v881_v0 }
 0x1cc   : > { %v2901_v32 = vpack.c.bf16 %v1737_v28, %v1736_v27  ;;  %v1189_v49 = vmul.f32 %v3280_v14, %v881_v0  ;;  %v1190_v34 = vmul.f32 %v3282_v15, %v881_v0  ;;  %v2902_v39 = vpack.c.bf16 %v1739_v30, %v1738_v29  ;;  %v5562_v30 = vld [vmem:[#allocation221_spill] sm:$0xff] }
 0x1cd   : > { %1998 = vst [vmem:[%s4066_s30 + $0xd0] sm:$0xff] %v2843_v61  ;;  %v1191_v35 = vmul.f32 %v3284_v16, %v881_v0  ;;  %v1192_v17 = vmul.f32 %v3286_v19, %v881_v0  ;;  %v1193_v55 = vmul.f32 %v3288_v20, %v881_v0  ;;  %v1194_v56 = vmul.f32 %v3290_v21, %v881_v0 }
 0x1ce   : > { %2504 = vst [vmem:[%s4075_s6 + $0x1a0] sm:$0xff] %v2901_v32  ;;  %v1443_v36 = vadd.f32 %v1187_v31, %v5554_v52  ;;  %v1444_v38 = vadd.f32 %v1188_v33, %v5555_v37  ;;  %v1445_v63 = vadd.f32 %v1189_v49, %v5556_v41  ;;  %2505 = vst [vmem:[%s4075_s6 + $0x1a8] sm:$0xff] %v2902_v39  ;;  %v5563_v31 = vld [vmem:[#allocation222_spill] sm:$0xff]  ;;  %v5564_v33 = vld [vmem:[#allocation223_spill] sm:$0xff]  ;;  %v889_v41 = vpop.permute.xlu0 %888 }
 0x1cf   : > { %v1446_v43 = vadd.f32 %v1190_v34, %v5557_v42  ;;  %v1447_v53 = vadd.f32 %v1191_v35, %v5558_v44  ;;  %v1448_v48 = vadd.f32 %v1192_v17, %v5559_v5  ;;  %v1449_v3 = vadd.f32 %v1193_v55, %v5560_v6  ;;  %v5565_v34 = vld [vmem:[#allocation224_spill] sm:$0xff]  ;;  %v5566_v35 = vld [vmem:[#allocation225_spill] sm:$0xff]  ;;  %v5567_v55 = vld [vmem:[#allocation226_spill] sm:$0xff] }
 0x1d0   : > { %v1450_v8 = vadd.f32 %v1194_v56, %v5561_v54  ;;  %v1740_v57 = vadd.f32 %v3272_v10, %v1443_v36  ;;  %v1741_v58 = vadd.f32 %v3292_v22, %v1444_v38  ;;  %v1742_v45 = vadd.f32 %v3274_v11, %v1445_v63  ;;  %v5568_v52 = vld [vmem:[#allocation227_spill] sm:$0xff]  ;;  %v5569_v37 = vld [vmem:[#allocation228_spill] sm:$0xff] }
 0x1d1   : > { %v1743_v46 = vadd.f32 %v3294_v23, %v1446_v43  ;;  %v1744_v47 = vadd.f32 %v3276_v12, %v1447_v53  ;;  %v1745_v59 = vadd.f32 %v3296_v24, %v1448_v48  ;;  %v1746_v62 = vadd.f32 %v3298_v25, %v1449_v3 }
 0x1d2   : > { %v1747_v0 = vadd.f32 %v3300_v26, %v1450_v8  ;;  %v2844_v1 = vpack.c.bf16 %v1741_v58, %v1740_v57  ;;  %2058 = vst [vmem:[%s4057_s26 + $0x1b0] sm:$0xff] %v1742_v45  ;;  %v1195_v2 = vmul.f32 %v3270_v9, %v885_v7  ;;  %v1196_v4 = vmul.f32 %v3278_v13, %v885_v7 }
 0x1d3   : > { %2059 = vst [vmem:[%s4057_s26 + $0x1b8] sm:$0xff] %v1743_v46  ;;  %v2903_v50 = vpack.c.bf16 %v1745_v59, %v1744_v47  ;;  %v1197_v51 = vmul.f32 %v3280_v14, %v885_v7  ;;  %v1198_v40 = vmul.f32 %v3282_v15, %v885_v7  ;;  %v1199_v60 = vmul.f32 %v3284_v16, %v885_v7 }
 0x1d4   : > { %1999 = vst [vmem:[%s4066_s30 + $0xd8] sm:$0xff] %v2844_v1  ;;  %v2904_v18 = vpack.c.bf16 %v1747_v0, %v1746_v62  ;;  %v1200_v27 = vmul.f32 %v3286_v19, %v885_v7  ;;  %v1201_v28 = vmul.f32 %v3288_v20, %v885_v7  ;;  %v1202_v29 = vmul.f32 %v3290_v21, %v885_v7  ;;  %v5570_v0 = vld [vmem:[#allocation212_spill] sm:$0xff] }
 0x1d5   : > { %2506 = vst [vmem:[%s4075_s6 + $0x1b0] sm:$0xff] %v2903_v50  ;;  %v1451_v61 = vadd.f32 %v1195_v2, %v5562_v30  ;;  %v1452_v32 = vadd.f32 %v1196_v4, %v5563_v31  ;;  %v1453_v49 = vadd.f32 %v1197_v51, %v5564_v33  ;;  %v1454_v39 = vadd.f32 %v1198_v40, %v5565_v34  ;;  %v5571_v2 = vld [vmem:[#allocation213_spill] sm:$0xff]  ;;  %v5572_v50 = vld [vmem:[#allocation214_spill] sm:$0xff]  ;;  %v5573_v40 = vld [vmem:[#allocation215_spill] sm:$0xff] }
 0x1d6   : > { %2507 = vst [vmem:[%s4075_s6 + $0x1b8] sm:$0xff] %v2904_v18  ;;  %v1455_v17 = vadd.f32 %v1199_v60, %v5566_v35  ;;  %v1456_v56 = vadd.f32 %v1200_v27, %v5567_v55  ;;  %v1457_v36 = vadd.f32 %v1201_v28, %v5568_v52  ;;  %v1458_v38 = vadd.f32 %v1202_v29, %v5569_v37  ;;  %v5574_v18 = vld [vmem:[#allocation216_spill] sm:$0xff]  ;;  %v5575_v28 = vld [vmem:[#allocation217_spill] sm:$0xff]  ;;  %v5576_v30 = vld [vmem:[#allocation218_spill] sm:$0xff]  ;;  %v893_v52 = vpop.permute.xlu1 %892 }
 0x1d7   : > { %v1748_v63 = vadd.f32 %v3272_v10, %v1451_v61  ;;  %v1749_v42 = vadd.f32 %v3292_v22, %v1452_v32  ;;  %v1750_v43 = vadd.f32 %v3274_v11, %v1453_v49  ;;  %v1751_v44 = vadd.f32 %v3294_v23, %v1454_v39  ;;  %v5577_v31 = vld [vmem:[#allocation219_spill] sm:$0xff]  ;;  %v5579_v37 = vld [vmem:[#allocation9_spill] sm:$0xff] }
 0x1d8   : > { %v1752_v53 = vadd.f32 %v3276_v12, %v1455_v17  ;;  %v1753_v5 = vadd.f32 %v3296_v24, %v1456_v56  ;;  %v1754_v48 = vadd.f32 %v3298_v25, %v1457_v36  ;;  %v1755_v6 = vadd.f32 %v3300_v26, %v1458_v38  ;;  %v5578_v36 = vld [vmem:[#allocation220_spill] sm:$0xff] }
 0x1d9   : > { %v2845_v3 = vpack.c.bf16 %v1749_v42, %v1748_v63  ;;  %2060 = vst [vmem:[%s4057_s26 + $0x1c0] sm:$0xff] %v1750_v43  ;;  %2061 = vst [vmem:[%s4057_s26 + $0x1c8] sm:$0xff] %v1751_v44  ;;  %v1203_v7 = vmul.f32 %v3270_v9, %v889_v41  ;;  %v1204_v54 = vmul.f32 %v3278_v13, %v889_v41  ;;  %v5580_v63 = vld [vmem:[#allocation10_spill] sm:$0xff]  ;;  %v5581_v43 = vld [vmem:[#allocation11_spill] sm:$0xff] }
 0x1da   : > { %v1205_v8 = vmul.f32 %v3280_v14, %v889_v41  ;;  %v2905_v57 = vpack.c.bf16 %v1753_v5, %v1752_v53  ;;  %v2906_v58 = vpack.c.bf16 %v1755_v6, %v1754_v48  ;;  %v1206_v45 = vmul.f32 %v3282_v15, %v889_v41  ;;  %v5582_v53 = vld [vmem:[#allocation12_spill] sm:$0xff] }
 0x1db   : > { %v1207_v46 = vmul.f32 %v3284_v16, %v889_v41  ;;  %2000 = vst [vmem:[%s4066_s30 + $0xe0] sm:$0xff] %v2845_v3  ;;  %v1208_v47 = vmul.f32 %v3286_v19, %v889_v41  ;;  %v1209_v59 = vmul.f32 %v3288_v20, %v889_v41  ;;  %v1210_v62 = vmul.f32 %v3290_v21, %v889_v41  ;;  %v5583_v3 = vld [vmem:[#allocation13_spill] sm:$0xff] }
 0x1dc   : > { %v1459_v1 = vadd.f32 %v1203_v7, %v5570_v0  ;;  %2508 = vst [vmem:[%s4075_s6 + $0x1c0] sm:$0xff] %v2905_v57  ;;  %2509 = vst [vmem:[%s4075_s6 + $0x1c8] sm:$0xff] %v2906_v58  ;;  %v1460_v4 = vadd.f32 %v1204_v54, %v5571_v2  ;;  %v1461_v51 = vadd.f32 %v1205_v8, %v5572_v50  ;;  %v5584_v54 = vld [vmem:[#allocation14_spill] sm:$0xff]  ;;  %v5585_v57 = vld [vmem:[#allocation15_spill] sm:$0xff] }
 0x1dd   : > { %v1462_v60 = vadd.f32 %v1206_v45, %v5573_v40  ;;  %v1463_v27 = vadd.f32 %v1207_v46, %v5574_v18  ;;  %v1464_v29 = vadd.f32 %v1208_v47, %v5575_v28  ;;  %v1465_v61 = vadd.f32 %v1209_v59, %v5576_v30  ;;  %v5586_v45 = vld [vmem:[#allocation16_spill] sm:$0xff] }
 0x1de   : > { %v1466_v32 = vadd.f32 %v1210_v62, %v5577_v31  ;;  %v1756_v33 = vadd.f32 %v3272_v10, %v1459_v1  ;;  %v1757_v49 = vadd.f32 %v3292_v22, %v1460_v4  ;;  %v1758_v34 = vadd.f32 %v3274_v11, %v1461_v51 }
 0x1df   : > { %v1759_v39 = vadd.f32 %v3294_v23, %v1462_v60  ;;  %v1760_v35 = vadd.f32 %v3276_v12, %v1463_v27  ;;  %v1761_v17 = vadd.f32 %v3296_v24, %v1464_v29  ;;  %v1762_v55 = vadd.f32 %v3298_v25, %v1465_v61 }
 0x1e0   : > { %v1763_v56 = vadd.f32 %v3300_v26, %v1466_v32  ;;  %v755_v38 = vmul.f32 %v5579_v37, %v5578_v36  ;;  %v2846_v41 = vpack.c.bf16 %v1757_v49, %v1756_v33  ;;  %2062 = vst [vmem:[%s4057_s26 + $0x1d0] sm:$0xff] %v1758_v34  ;;  %v756_v42 = vmul.f32 %v5580_v63, %v5578_v36 }
 0x1e1   : > { %2063 = vst [vmem:[%s4057_s26 + $0x1d8] sm:$0xff] %v1759_v39  ;;  %v757_v44 = vmul.f32 %v5581_v43, %v5578_v36  ;;  %v758_v5 = vmul.f32 %v5582_v53, %v5578_v36  ;;  %v2907_v48 = vpack.c.bf16 %v1761_v17, %v1760_v35  ;;  %v759_v7 = vmul.f32 %v5583_v3, %v5578_v36 }
 0x1e2   : > { %v2908_v6 = vpack.c.bf16 %v1763_v56, %v1762_v55  ;;  %v760_v8 = vmul.f32 %v5584_v54, %v5578_v36  ;;  %2001 = vst [vmem:[%s4066_s30 + $0xe8] sm:$0xff] %v2846_v41  ;;  %v761_v58 = vmul.f32 %v5585_v57, %v5578_v36  ;;  %v762_v46 = vmul.f32 %v5586_v45, %v5578_v36  ;;  %v5587_v55 = vld [vmem:[#allocation207_spill] sm:$0xff] }
 0x1e3   : > { %v1211_v47 = vmul.f32 %v3270_v9, %v893_v52  ;;  %v1212_v59 = vmul.f32 %v3278_v13, %v893_v52  ;;  %2510 = vst [vmem:[%s4075_s6 + $0x1d0] sm:$0xff] %v2907_v48  ;;  %v1213_v62 = vmul.f32 %v3280_v14, %v893_v52  ;;  %v1214_v0 = vmul.f32 %v3282_v15, %v893_v52 }
 0x1e4   : > { %2511 = vst [vmem:[%s4075_s6 + $0x1d8] sm:$0xff] %v2908_v6  ;;  %v1215_v1 = vmul.f32 %v3284_v16, %v893_v52  ;;  %v1216_v2 = vmul.f32 %v3286_v19, %v893_v52  ;;  %v1217_v4 = vmul.f32 %v3288_v20, %v893_v52  ;;  %v1218_v50 = vmul.f32 %v3290_v21, %v893_v52  ;;  %v897_v52 = vpop.permute.xlu0 %896 }
 0x1e5   : > { %v1467_v51 = vadd.f32 %v1211_v47, %v755_v38  ;;  %v1468_v40 = vadd.f32 %v1212_v59, %v756_v42  ;;  %v1469_v60 = vadd.f32 %v1213_v62, %v757_v44  ;;  %v1470_v18 = vadd.f32 %v1214_v0, %v758_v5 }
 0x1e6   : > { %v1471_v27 = vadd.f32 %v1215_v1, %v759_v7  ;;  %v1472_v28 = vadd.f32 %v1216_v2, %v760_v8  ;;  %v1473_v29 = vadd.f32 %v1217_v4, %v761_v58  ;;  %v1474_v30 = vadd.f32 %v1218_v50, %v762_v46 }
 0x1e7   : > { %v1764_v61 = vadd.f32 %v3272_v10, %v1467_v51  ;;  %v1765_v31 = vadd.f32 %v3292_v22, %v1468_v40  ;;  %v1766_v32 = vadd.f32 %v3274_v11, %v1469_v60  ;;  %v1767_v33 = vadd.f32 %v3294_v23, %v1470_v18 }
 0x1e8   : > { %v1768_v49 = vadd.f32 %v3276_v12, %v1471_v27  ;;  %v1769_v34 = vadd.f32 %v3296_v24, %v1472_v28  ;;  %v1770_v39 = vadd.f32 %v3298_v25, %v1473_v29  ;;  %v1771_v35 = vadd.f32 %v3300_v26, %v1474_v30 }
 0x1e9   : > { %v2847_v17 = vpack.c.bf16 %v1765_v31, %v1764_v61  ;;  %v763_v56 = vmul.f32 %v5579_v37, %v5587_v55  ;;  %2064 = vst [vmem:[%s4057_s26 + $0x1e0] sm:$0xff] %v1766_v32  ;;  %2065 = vst [vmem:[%s4057_s26 + $0x1e8] sm:$0xff] %v1767_v33  ;;  %v764_v38 = vmul.f32 %v5580_v63, %v5587_v55 }
 0x1ea   : > { %v2909_v36 = vpack.c.bf16 %v1769_v34, %v1768_v49  ;;  %v765_v41 = vmul.f32 %v5581_v43, %v5587_v55  ;;  %v766_v42 = vmul.f32 %v5582_v53, %v5587_v55  ;;  %v2910_v37 = vpack.c.bf16 %v1771_v35, %v1770_v39 }
 0x1eb   : > { %2002 = vst [vmem:[%s4066_s30 + $0xf0] sm:$0xff] %v2847_v17  ;;  %v767_v44 = vmul.f32 %v5583_v3, %v5587_v55  ;;  %v768_v5 = vmul.f32 %v5584_v54, %v5587_v55  ;;  %v769_v48 = vmul.f32 %v5585_v57, %v5587_v55  ;;  %v770_v63 = vmul.f32 %v5586_v45, %v5587_v55 }
 0x1ec   : > { %2512 = vst [vmem:[%s4075_s6 + $0x1e0] sm:$0xff] %v2909_v36  ;;  %v1219_v43 = vmul.f32 %v3270_v9, %v897_v52  ;;  %v1220_v53 = vmul.f32 %v3278_v13, %v897_v52  ;;  %v1221_v6 = vmul.f32 %v3280_v14, %v897_v52  ;;  %2513 = vst [vmem:[%s4075_s6 + $0x1e8] sm:$0xff] %v2910_v37 }
 0x1ed   : > { %v1222_v3 = vmul.f32 %v3282_v15, %v897_v52  ;;  %v1223_v7 = vmul.f32 %v3284_v16, %v897_v52  ;;  %v1224_v54 = vmul.f32 %v3286_v19, %v897_v52  ;;  %v1225_v8 = vmul.f32 %v3288_v20, %v897_v52 }
 0x1ee   : > { %v1226_v9 = vmul.f32 %v3290_v21, %v897_v52  ;;  %v1475_v13 = vadd.f32 %v1219_v43, %v763_v56  ;;  %v1476_v14 = vadd.f32 %v1220_v53, %v764_v38  ;;  %v1477_v57 = vadd.f32 %v1221_v6, %v765_v41 }
 0x1ef   : > { %v1478_v15 = vadd.f32 %v1222_v3, %v766_v42  ;;  %v1479_v16 = vadd.f32 %v1223_v7, %v767_v44  ;;  %v1480_v58 = vadd.f32 %v1224_v54, %v768_v5  ;;  %v1481_v19 = vadd.f32 %v1225_v8, %v769_v48 }
 0x1f0   : > { %v1482_v20 = vadd.f32 %v1226_v9, %v770_v63  ;;  %v1772_v45 = vadd.f32 %v3272_v10, %v1475_v13  ;;  %v1773_v46 = vadd.f32 %v3292_v22, %v1476_v14  ;;  %v1774_v21 = vadd.f32 %v3274_v11, %v1477_v57 }
 0x1f1   : > { %v1775_v47 = vadd.f32 %v3294_v23, %v1478_v15  ;;  %v1776_v59 = vadd.f32 %v3276_v12, %v1479_v16  ;;  %v1777_v62 = vadd.f32 %v3296_v24, %v1480_v58  ;;  %v4994_v0 = vadd.f32 %v3298_v25, %v1481_v19 }
 0x1f2   : > { %v5004_v10 = vadd.f32 %v3300_v26, %v1482_v20  ;;  %v2848_v11 = vpack.c.bf16 %v1773_v46, %v1772_v45  ;;  %2066 = vst [vmem:[%s4057_s26 + $0x1f0] sm:$0xff] %v1774_v21 }
 0x1f3   : > { %2067 = vst [vmem:[%s4057_s26 + $0x1f8] sm:$0xff] %v1775_v47  ;;  %v2911_v12 = vpack.c.bf16 %v1777_v62, %v1776_v59  ;;  %s3104_s26 = smov [#allocation4]  }
 0x1f4   : > { %2003 = vst [vmem:[%s4066_s30 + $0xf8] sm:$0xff] %v2848_v11  ;;  %v2912_v22 = vpack.c.bf16 %v5004_v10, %v4994_v0  ;;  %s2982_s0 = sshll.u32 %s3104_s26, 4  ;;  %s2983_s0 = int_to_ptr.vmem [resolvable:$false] %s2982_s0 }
 0x1f5   : > { %s2984_s23 = scalar_lea.vmem %s2983_s0, 16384  ;;  %p2985_p0 = scmp.lt.s32.totalorder %s4984_s9, %s2983_s0 }
 0x1f6   : > { %p2986_p1 = scmp.lt.s32.totalorder %s2984_s23, %s2978_s25 }
 0x1f8   : > { %p2987_p2 = por %p2986_p1, %p2985_p0 }
 0x1fa   : > { %p2988_p3 = pnand %p2987_p2, %p2981_p13 }
 0x1fc   : > { %2991 = shalt.err (!%p2988_p3)
}
 0x1fd   : > { %s2992_s22 = scalar_lea.hbm %s4979_s12, 8192  ;;  %s2996_s11 = scalar_lea.hbm %s5123_s4, 16384 }
 0x1fe   : > { %p2993_p4 = scmp.ne.s32.totalorder %s4979_s12, %s2992_s22  ;;  %p2997_p9 = scmp.lt.u32.totalorder %s4979_s12, %s5123_s4 }
 0x1ff   : > { %p2998_p10 = scmp.lt.u32.totalorder %s2996_s11, %s2992_s22  ;;  %p3000_p12 = scmp.lt.u32.totalorder %s2992_s22, %s4979_s12 }
 0x200   : > { %p2994_p7 = pnand %p2993_p4, %p3181_p5 }
 0x201   : > { %p2999_p11 = por %p2998_p10, %p2997_p9 }
 0x202   : > { %p2995_p8 = pneg %p2994_p7 }
 0x203   : > { %p3001_p13 = por %p3000_p12, %p2999_p11 }
 0x205   : > { %p3002_p0 = pnand %p3001_p13, %p2995_p8 }
 0x207   : > { %3005 = shalt.err (!%p3002_p0)
}
 0x208   : > { %s3105_s25 = smov 256   ;;  %s3106_s26 = smov 16   ;;  %2514 = vst [vmem:[%s4075_s6 + $0x1f0] sm:$0xff] %v2911_v12 }
 0x209   : > { %2920 = dma.vmem_to_hbm [thread:$0]  (%p3181_p5), %s4984_s9, 8192, %s4979_s12, %s5022_s17, %s3105_s25, %s3105_s25, %s3106_s26  }
 0x20a   : > { %s2517_s23 = scalar_lea.sflag [#allocation3], %s4003_s16  ;;  %s3006_s22 = scalar_lea.vmem %s5001_s14, 4096 }
 0x20b   : > { %p3007_p1 = scmp.ne.s32.totalorder %s5001_s14, %s3006_s22  ;;  %s3107_s30 = smov [#allocation2]  }
 0x20c   : > { %s3010_s8 = sshll.u32 %s3107_s30, 4  ;;  %s3011_s8 = int_to_ptr.vmem [resolvable:$false] %s3010_s8 }
 0x20d   : > { %p3008_p2 = pnand %p3007_p1, %p3181_p5  ;;  %s3012_s11 = scalar_lea.vmem %s3011_s8, 8192 }
 0x20e   : > { %p3013_p4 = scmp.lt.s32.totalorder %s5001_s14, %s3011_s8  ;;  %p3014_p7 = scmp.lt.s32.totalorder %s3012_s11, %s3006_s22 }
 0x20f   : > { %p3009_p3 = pneg %p3008_p2 }
 0x210   : > { %p3015_p8 = por %p3014_p7, %p3013_p4 }
 0x212   : > { %p3016_p9 = pnand %p3015_p8, %p3009_p3 }
 0x214   : > { %3019 = shalt.err (!%p3016_p9)
}
 0x215   : > { %s3020_s9 = scalar_lea.hbm %s4999_s10, 4096  ;;  %s3024_s0 = scalar_lea.hbm %s5122_s3, 8192 }
 0x216   : > { %p3021_p10 = scmp.ne.s32.totalorder %s4999_s10, %s3020_s9  ;;  %p3025_p13 = scmp.lt.u32.totalorder %s4999_s10, %s5122_s3 }
 0x217   : > { %p3026_p0 = scmp.lt.u32.totalorder %s3024_s0, %s3020_s9  ;;  %p3028_p2 = scmp.lt.u32.totalorder %s3020_s9, %s4999_s10 }
 0x218   : > { %p3022_p11 = pnand %p3021_p10, %p3181_p5 }
 0x219   : > { %p3027_p1 = por %p3026_p0, %p3025_p13 }
 0x21a   : > { %p3023_p12 = pneg %p3022_p11 }
 0x21b   : > { %p3029_p3 = por %p3028_p2, %p3027_p1 }
 0x21d   : > { %p3030_p4 = pnand %p3029_p3, %p3023_p12 }
 0x21f   : > { %3033 = shalt.err (!%p3030_p4)
}
 0x220   : > { %s3108_s22 = smov 128   ;;  %s3109_s11 = smov 8   ;;  %2515 = vst [vmem:[%s4075_s6 + $0x1f8] sm:$0xff] %v2912_v22 }
 0x221   : > { %2919 = dma.vmem_to_hbm [thread:$0]  (%p3181_p5), %s5001_s14, 4096, %s4999_s10, %s2517_s23, %s3108_s22, %s3108_s22, %s3109_s11  }
 0x222   : > { %s3034_s12 = scalar_lea.vmem %s5015_s15, 8192  ;;  %s3110_s9 = smov [#allocation6]  }
 0x223   : > { %p3035_p7 = scmp.ne.s32.totalorder %s5015_s15, %s3034_s12  ;;  %s3038_s13 = sshll.u32 %s3110_s9, 4  ;;  %s3039_s13 = int_to_ptr.vmem [resolvable:$false] %s3038_s13 }
 0x224   : > { %s3040_s0 = scalar_lea.vmem %s3039_s13, 16384  ;;  %p3041_p10 = scmp.lt.s32.totalorder %s5015_s15, %s3039_s13 }
 0x225   : > { %p3036_p8 = pnand %p3035_p7, %p3181_p5  ;;  %p3042_p11 = scmp.lt.s32.totalorder %s3040_s0, %s3034_s12 }
 0x227   : > { %p3037_p9 = pneg %p3036_p8  ;;  %p3043_p12 = por %p3042_p11, %p3041_p10 }
 0x229   : > { %p3044_p13 = pnand %p3043_p12, %p3037_p9 }
 0x22b   : > { %3047 = shalt.err (!%p3044_p13)
}
 0x22c   : > { %s3048_s16 = scalar_lea.hbm %s5013_s7, 8192  ;;  %s3052_s10 = scalar_lea.hbm %s5124_s5, 16384 }
 0x22d   : > { %p3049_p0 = scmp.ne.s32.totalorder %s5013_s7, %s3048_s16  ;;  %p3053_p3 = scmp.lt.u32.totalorder %s5013_s7, %s5124_s5 }
 0x22e   : > { %p3054_p4 = scmp.lt.u32.totalorder %s3052_s10, %s3048_s16  ;;  %p3056_p8 = scmp.lt.u32.totalorder %s3048_s16, %s5013_s7 }
 0x22f   : > { %p3050_p1 = pnand %p3049_p0, %p3181_p5 }
 0x230   : > { %p3055_p7 = por %p3054_p4, %p3053_p3 }
 0x231   : > { %p3051_p2 = pneg %p3050_p1 }
 0x232   : > { %p3057_p9 = por %p3056_p8, %p3055_p7 }
 0x234   : > { %p3058_p10 = pnand %p3057_p9, %p3051_p2 }
 0x236   : > { %3061 = shalt.err (!%p3058_p10)
}
 0x237   : > { %2921 = dma.vmem_to_hbm [thread:$0]  (%p3181_p5), %s5015_s15, 8192, %s5013_s7, %s5022_s17, %s3105_s25, %s3105_s25, %s3106_s26  }
 0x238 PF: > { %p2935_p11 = scmp.ge.s32.totalorder %s3100_s21, 2  ;;  %s2590_s8 = sand.u32 1, %s3088_s18  }
 0x239   : > { %s2591_s22 = scalar_lea.sflag [#allocation3], %s2590_s8 }
 0x23a   : > { %p2926_p12 = pnand %p2935_p11, %p3185_p6 }
 0x23c   : > { %3079 = dma.done.wait (!%p2926_p12), %s2591_s22, 4096  }
 0x23d   : > { %3081 = vsyncadd (!%p2926_p12), %s2591_s22, 4294963200  ;;  %s5589_s28 = sadd.s32 4294967294, %s3100_s21  }
 0x23e   : > { %s2599_s11 = sand.u32 1, %s5589_s28  }
 0x23f   : > { %s2600_s12 = scalar_lea.sflag [#allocation5], %s2599_s11 }
 0x240   : > { %3083 = dma.done.wait (!%p2926_p12), %s2600_s12, 16384  }
 0x241   : > { %3085 = vsyncadd (!%p2926_p12), %s2600_s12, 4294950912  ;;  %p19_p5 = scmp.ge.s32.totalorder %s3166_s24, 4   ;;  %s5590_s18 = smov %s3092_s19 }
 0x242   : > { %s5591_s19 = smov %s3096_s20  ;;  %s5592_s20 = smov %s3179_s27 }
 0x243   : > { %s5593_s21 = smov %s3166_s24  ;;  %21 = sbr.rel (!%p19_p5) target bundleno = 7 (0x7), region = 99 }
 0x24a   :  { %2614 = vsyncpa [#allocation3], 1 }
 0x24b   :  { %2616 = vsyncpa [#allocation3 + $0x1], 1 }
 0x24c   :  { %2617 = vsyncpa [#allocation5], 1 }
 0x24d   :  { %2619 = vsyncpa [#allocation5 + $0x1], 1 }

</bundles_post_ra>
